<compile_context>
chip_gen: v6e
topology: v6e:2x2x1
jax: 0.10.0
libtpu: 0.0.40
codegen_flags: <defaults>
</compile_context>

<pallas_src>
import math

import jax
import jax.numpy as jnp
import numpy as np
from jax import lax
from jax.experimental import pallas as pl
from jax.experimental.pallas import tpu as pltpu

EPS = 1e-5          # nn.LayerNorm default eps
NEG_INF = -1e9      # masked_fill value used by the PyTorch attention

WEIGHT_ORDER = ("n1_g", "n1_b",
                "wq", "bq", "wk", "bk", "wv", "bv", "wo", "bo",
                "n2_g", "n2_b",
                "c1_w", "c1_b", "c2_w", "c2_b")


def _layer_norm(v, g, b):
    mu = jnp.mean(v, axis=-1, keepdims=True)
    var = jnp.mean((v - mu) ** 2, axis=-1, keepdims=True)
    return (v - mu) * lax.rsqrt(var + EPS) * g + b


def _make_kernel(with_attn: bool):
    def kernel(x_ref, mask_ref,
               n1g_ref, n1b_ref,
               wq_ref, bq_ref, wk_ref, bk_ref, wv_ref, bv_ref, wo_ref, bo_ref,
               n2g_ref, n2b_ref,
               c1w_ref, c1b_ref, c2w_ref, c2b_ref,
               *out_refs):
        y_ref = out_refs[0]
        attn_ref = out_refs[1] if with_attn else None

        T, D = x_ref.shape[1], x_ref.shape[2]
        H, dk = wq_ref.shape[0], wq_ref.shape[2]
        Dff = c1b_ref.shape[1]
        K = c1w_ref.shape[0] // D          # conv kernel size (odd, "same" padding)
        pad = (K - 1) // 2
        scale = 1.0 / math.sqrt(dk)

        x = x_ref[0].astype(jnp.float32)                      # (T, D)
        mask2d = mask_ref[0].astype(jnp.float32)              # (1, T) key mask

        # ---- sublayer 1: pre-norm multi-head self-attention ------------------
        xn = _layer_norm(x, n1g_ref[...], n1b_ref[...])
        xn_b = xn.astype(jnp.bfloat16)

        def head_body(h, mha_acc):
            # Head-major weights -> per-head projection is a plain (D, dk)
            # matmul at a dynamic leading-dim index; no lane sub-slicing.
            q_h = (jnp.dot(xn_b, wq_ref[h], preferred_element_type=jnp.float32)
                   + bq_ref[h]).astype(jnp.bfloat16)                    # (T, dk)
            k_h = (jnp.dot(xn_b, wk_ref[h], preferred_element_type=jnp.float32)
                   + bk_ref[h]).astype(jnp.bfloat16)
            v_h = (jnp.dot(xn_b, wv_ref[h], preferred_element_type=jnp.float32)
                   + bv_ref[h]).astype(jnp.bfloat16)

            s = jnp.einsum("qd,kd->qk", q_h, k_h,
                           preferred_element_type=jnp.float32) * scale  # (T, T)
            s = jnp.where(mask2d > 0.0, s, NEG_INF)   # exact masked_fill semantics
            s = s - jnp.max(s, axis=-1, keepdims=True)
            e = jnp.exp(s)                             # f32 (safe on v5e)
            denom = jnp.sum(e, axis=-1, keepdims=True)

            if attn_ref is not None:
                # Exported probabilities: exact reciprocal so rows sum to 1.
                attn_ref[0, h] = (e * pl.reciprocal(denom, approx=False)
                                  ).astype(attn_ref.dtype)

            # Internal path keeps the approximate (EUP-slot) reciprocal.
            p = (e * pl.reciprocal(denom, approx=True)).astype(jnp.bfloat16)
            ctx_h = jnp.dot(p, v_h, preferred_element_type=jnp.float32)  # (T, dk)
            # Merge heads by accumulating ctx_h @ Wo[h]; no ctx scratch,
            # no masked partial stores.
            return mha_acc + jnp.dot(ctx_h.astype(jnp.bfloat16), wo_ref[h],
                                     preferred_element_type=jnp.float32)

        mha = lax.fori_loop(0, H, head_body, jnp.zeros((T, D), jnp.float32))
        x1 = x + mha + bo_ref[...]             # dropout_1 == identity (eval mode)

        # ---- sublayer 2: pre-norm conv feed-forward ---------------------------
        xn2 = _layer_norm(x1, n2g_ref[...], n2b_ref[...]).astype(jnp.bfloat16)

        def conv_taps(v_b, C):
            # "same"-padded tap stack: (T, C) -> (T, K*C); one big-contraction
            # matmul per conv layer instead of K small ones.
            # TODO(synk): replace the shifted sublane slices with pltpu.roll +
            #   border masks (XLU slot) to avoid the padded temporaries.
            if pad > 0:
                zp = jnp.zeros((pad, C), jnp.bfloat16)
                vp = jnp.concatenate([zp, v_b, zp], axis=0)             # (T+2p, C)
            else:
                vp = v_b
            return jnp.concatenate([vp[j:j + T, :] for j in range(K)], axis=-1)

        h1 = (jnp.dot(conv_taps(xn2, D), c1w_ref[...],
                      preferred_element_type=jnp.float32) + c1b_ref[...])
        h1 = jnp.maximum(h1, 0.0).astype(jnp.bfloat16)                  # ReLU
        h2 = (jnp.dot(conv_taps(h1, Dff), c2w_ref[...],
                      preferred_element_type=jnp.float32) + c2b_ref[...])

        # TODO(synk): optionally emit y in bf16 to halve activation writeback.
        y_ref[0] = (x1 + h2).astype(y_ref.dtype)   # dropout_2 == identity

    return kernel


def _const_index_map(ndim):
    def idx(b):
        return (0,) * ndim
    return idx


def _vmem_limit_bytes(T, D, H, Dff, K, with_attn):
    f32, bf16 = 4, 2
    dk = D // H
    acts = T * D * f32 + T * f32                        # x block + mask block
    outs = T * D * f32 + (H * T * T * bf16 if with_attn else 0)
    weights = (4 * D * f32                              # LayerNorm gammas/betas
               + 3 * (H * D * dk * bf16 + H * dk * f32)
               + H * dk * D * bf16 + D * f32
               + K * D * Dff * bf16 + Dff * f32
               + K * Dff * D * bf16 + D * f32)
    temps = 2 * T * K * max(D, Dff) * bf16 + 4 * T * D * f32
    est = 2 * (acts + outs) + weights + temps + (4 << 20)
    # Clamp to a value safe on every generation (v7x physical VMEM is 64 MiB).
    return int(min(56 << 20, max(32 << 20, 2 * est)))


def encoder_layer_v2(x, mask, params, return_attn=True):
    """Forward of EncoderLayer_v2 (eval mode). Returns (y, attn) or y."""
    B, T, D = x.shape
    H = params["heads"]
    K = params["kernel_size"]
    Dff = params["c1_b"].shape[1]
    weights = [params[k] for k in WEIGHT_ORDER]

    out_shapes = [jax.ShapeDtypeStruct((B, T, D), jnp.float32)]
    out_specs = [pl.BlockSpec((1, T, D), lambda b: (b, 0, 0))]
    if return_attn:
        # Attention probabilities exported in bf16 (half the HBM writeback).
        out_shapes.append(jax.ShapeDtypeStruct((B, H, T, T), jnp.bfloat16))
        out_specs.append(pl.BlockSpec((1, H, T, T), lambda b: (b, 0, 0, 0)))

    kernel = _make_kernel(return_attn)
    cparams = pltpu.CompilerParams(
        dimension_semantics=("parallel",),
        vmem_limit_bytes=_vmem_limit_bytes(T, D, H, Dff, K, return_attn))

    def build(single_buffer_weights):
        if single_buffer_weights:
            # Constant index maps -> double-buffering these is pure VMEM waste.
            wspecs = [pl.BlockSpec(w.shape, _const_index_map(w.ndim),
                                   pipeline_mode=pl.Buffered(1))
                      for w in weights]
        else:
            wspecs = [pl.BlockSpec(w.shape, _const_index_map(w.ndim))
                      for w in weights]
        grid_spec = pltpu.PrefetchScalarGridSpec(
            num_scalar_prefetch=0,
            grid=(B,),                                 # one grid step per batch row
            in_specs=[pl.BlockSpec((1, T, D), lambda b: (b, 0, 0)),   # x
                      pl.BlockSpec((1, 1, T), lambda b: (b, 0, 0)),   # key mask
                      ] + wspecs,
            out_specs=tuple(out_specs))
        return pl.pallas_call(kernel, out_shape=tuple(out_shapes),
                              grid_spec=grid_spec, compiler_params=cparams)

    try:
        outs = build(True)(x, mask, *weights)
        outs = jax.block_until_ready(outs)
    except Exception:
        # Fallback for jax versions without BlockSpec(pipeline_mode=...).
        outs = build(False)(x, mask, *weights)

    return (outs[0], outs[1]) if return_attn else outs[0]


def init_params(key, d_model, heads, kernel_size, d_ff):
    dk = d_model // heads
    ks = jax.random.split(key, 12)
    s = 0.1
    f32, bf16 = jnp.float32, jnp.bfloat16
    nrm = jax.random.normal
    return {
        "heads": heads,
        "kernel_size": kernel_size,
        "n1_g": jnp.ones((1, d_model), f32),
        "n1_b": jnp.zeros((1, d_model), f32),
        # Head-major projection weights: the kernel's per-head split becomes a
        # free leading-dim index (no 32-lane slicing / relayouts).
        "wq": (s * nrm(ks[0], (heads, d_model, dk), f32)).astype(bf16),
        "bq": s * nrm(ks[1], (heads, 1, dk), f32),
        "wk": (s * nrm(ks[2], (heads, d_model, dk), f32)).astype(bf16),
        "bk": s * nrm(ks[3], (heads, 1, dk), f32),
        "wv": (s * nrm(ks[4], (heads, d_model, dk), f32)).astype(bf16),
        "bv": s * nrm(ks[5], (heads, 1, dk), f32),
        "wo": (s * nrm(ks[6], (heads, dk, d_model), f32)).astype(bf16),
        "bo": s * nrm(ks[7], (1, d_model), f32),
        "n2_g": jnp.ones((1, d_model), f32),
        "n2_b": jnp.zeros((1, d_model), f32),
        # Conv1d weights pre-reshaped to tap-stacked 2-D matmul form (bf16):
        #   conv1: (K*d_model, d_ff) ; conv2: (K*d_ff, d_model)
        "c1_w": (s * nrm(ks[8], (kernel_size * d_model, d_ff), f32)).astype(bf16),
        "c1_b": s * nrm(ks[9], (1, d_ff), f32),
        "c2_w": (s * nrm(ks[10], (kernel_size * d_ff, d_model), f32)).astype(bf16),
        "c2_b": s * nrm(ks[11], (1, d_model), f32),
    }


def reference(x, mask, p):
    """Pure-JAX f32 reference matching the PyTorch forward (eval mode)."""
    B, T, D = x.shape
    H = p["heads"]
    dk = D // H
    f32 = jnp.float32

    def ln(v, g, b):
        mu = v.mean(-1, keepdims=True)
        var = ((v - mu) ** 2).mean(-1, keepdims=True)
        return (v - mu) / jnp.sqrt(var + EPS) * g[0] + b[0]

    xn = ln(x, p["n1_g"], p["n1_b"])
    qh = jnp.einsum("btd,hdc->bhtc", xn, p["wq"].astype(f32)) + p["bq"][None]
    kh = jnp.einsum("btd,hdc->bhtc", xn, p["wk"].astype(f32)) + p["bk"][None]
    vh = jnp.einsum("btd,hdc->bhtc", xn, p["wv"].astype(f32)) + p["bv"][None]
    s = jnp.einsum("bhqd,bhkd->bhqk", qh, kh) / math.sqrt(dk)
    s = jnp.where(mask[:, :, None, :] > 0, s, NEG_INF)      # masked_fill semantics
    attn = jax.nn.softmax(s, axis=-1)
    ctx = jnp.einsum("bhqk,bhkd->bhqd", attn, vh)
    mha = jnp.einsum("bhtc,hcd->btd", ctx, p["wo"].astype(f32)) + p["bo"][0]
    x1 = x + mha

    xn2 = ln(x1, p["n2_g"], p["n2_b"])
    K = p["kernel_size"]
    pad = (K - 1) // 2
    Dff = p["c1_b"].shape[1]
    c1 = p["c1_w"].astype(f32).reshape(K, D, Dff)
    c2 = p["c2_w"].astype(f32).reshape(K, Dff, D)
    xp = jnp.pad(xn2, ((0, 0), (pad, pad), (0, 0)))
    h1 = jnp.broadcast_to(p["c1_b"][0], (B, T, Dff))
    for j in range(K):
        h1 = h1 + jnp.einsum("btd,df->btf", xp[:, j:j + T], c1[j])
    h1 = jax.nn.relu(h1)
    hp = jnp.pad(h1, ((0, 0), (pad, pad), (0, 0)))
    h2 = jnp.broadcast_to(p["c2_b"][0], (B, T, D))
    for j in range(K):
        h2 = h2 + jnp.einsum("btf,fd->btd", hp[:, j:j + T], c2[j])
    return x1 + h2, attn


if __name__ == "__main__":
    # Small but lane-dense config: d_model=128 (128-wide last dims), 4 heads
    # (dk=32), conv kernel 3, d_ff=512, seq=16, batch=2.
    B, T, D, H, K, DFF = 2, 16, 128, 4, 3, 512

    key = jax.random.PRNGKey(0)
    kx, kp = jax.random.split(key)
    x = jax.random.normal(kx, (B, T, D), jnp.float32)
    mask = jnp.ones((B, 1, T), jnp.float32).at[1, 0, 12:].set(0.0)  # mask last 4 keys of b=1
    params = init_params(kp, D, H, K, DFF)

    y, attn = encoder_layer_v2(x, mask, params, return_attn=True)
    jax.block_until_ready((y, attn))

    y_ref, attn_ref = reference(x, mask, params)
    # Kernel uses bf16 MXU operands (+ bf16 attention export) vs an f32
    # reference; tolerances cover accumulated bf16-cast error through the
    # chained matmuls (tap ordering verified identical to the reference) while
    # staying far below any structural-bug magnitude.
    np.testing.assert_allclose(np.asarray(attn.astype(jnp.float32)),
                               np.asarray(attn_ref), rtol=2e-2, atol=2e-2)
    np.testing.assert_allclose(np.asarray(y), np.asarray(y_ref),
                               rtol=5e-2, atol=2e-1)

    print("KERNEL_OK")
</pallas_src>

<mosaic_0001>
module attributes {stable_mosaic.version = 11 : i64} {
  func.func @kernel(%arg0: i32, %arg1: memref<1x16x128xf32, #tpu.memory_space<vmem>>, %arg2: memref<1x1x16xf32, #tpu.memory_space<vmem>>, %arg3: memref<1x128xf32, #tpu.memory_space<vmem>>, %arg4: memref<1x128xf32, #tpu.memory_space<vmem>>, %arg5: memref<4x128x32xbf16, #tpu.memory_space<vmem>>, %arg6: memref<4x1x32xf32, #tpu.memory_space<vmem>>, %arg7: memref<4x128x32xbf16, #tpu.memory_space<vmem>>, %arg8: memref<4x1x32xf32, #tpu.memory_space<vmem>>, %arg9: memref<4x128x32xbf16, #tpu.memory_space<vmem>>, %arg10: memref<4x1x32xf32, #tpu.memory_space<vmem>>, %arg11: memref<4x32x128xbf16, #tpu.memory_space<vmem>>, %arg12: memref<1x128xf32, #tpu.memory_space<vmem>>, %arg13: memref<1x128xf32, #tpu.memory_space<vmem>>, %arg14: memref<1x128xf32, #tpu.memory_space<vmem>>, %arg15: memref<384x512xbf16, #tpu.memory_space<vmem>>, %arg16: memref<1x512xf32, #tpu.memory_space<vmem>>, %arg17: memref<1536x128xbf16, #tpu.memory_space<vmem>>, %arg18: memref<1x128xf32, #tpu.memory_space<vmem>>, %arg19: memref<1x16x128xf32, #tpu.memory_space<vmem>>, %arg20: memref<1x4x16x16xbf16, #tpu.memory_space<vmem>>) attributes {dimension_semantics = [#tpu.dimension_semantics<parallel>], iteration_bounds = array<i64: 2>, scalar_prefetch = 0 : i64, scratch_operands = 0 : i64, tpu.core_type = #tpu.core_type<tc>, window_params = [{transform_indices = @transform_0, window_bounds = array<i64: 1, 16, 128>}, {transform_indices = @transform_1, window_bounds = array<i64: 1, 1, 16>}, {pipeline_mode = #tpu.pipeline_mode<synchronous>, transform_indices = @transform_2, window_bounds = array<i64: 1, 128>}, {pipeline_mode = #tpu.pipeline_mode<synchronous>, transform_indices = @transform_3, window_bounds = array<i64: 1, 128>}, {pipeline_mode = #tpu.pipeline_mode<synchronous>, transform_indices = @transform_4, window_bounds = array<i64: 4, 128, 32>}, {pipeline_mode = #tpu.pipeline_mode<synchronous>, transform_indices = @transform_5, window_bounds = array<i64: 4, 1, 32>}, {pipeline_mode = #tpu.pipeline_mode<synchronous>, transform_indices = @transform_6, window_bounds = array<i64: 4, 128, 32>}, {pipeline_mode = #tpu.pipeline_mode<synchronous>, transform_indices = @transform_7, window_bounds = array<i64: 4, 1, 32>}, {pipeline_mode = #tpu.pipeline_mode<synchronous>, transform_indices = @transform_8, window_bounds = array<i64: 4, 128, 32>}, {pipeline_mode = #tpu.pipeline_mode<synchronous>, transform_indices = @transform_9, window_bounds = array<i64: 4, 1, 32>}, {pipeline_mode = #tpu.pipeline_mode<synchronous>, transform_indices = @transform_10, window_bounds = array<i64: 4, 32, 128>}, {pipeline_mode = #tpu.pipeline_mode<synchronous>, transform_indices = @transform_11, window_bounds = array<i64: 1, 128>}, {pipeline_mode = #tpu.pipeline_mode<synchronous>, transform_indices = @transform_12, window_bounds = array<i64: 1, 128>}, {pipeline_mode = #tpu.pipeline_mode<synchronous>, transform_indices = @transform_13, window_bounds = array<i64: 1, 128>}, {pipeline_mode = #tpu.pipeline_mode<synchronous>, transform_indices = @transform_14, window_bounds = array<i64: 384, 512>}, {pipeline_mode = #tpu.pipeline_mode<synchronous>, transform_indices = @transform_15, window_bounds = array<i64: 1, 512>}, {pipeline_mode = #tpu.pipeline_mode<synchronous>, transform_indices = @transform_16, window_bounds = array<i64: 1536, 128>}, {pipeline_mode = #tpu.pipeline_mode<synchronous>, transform_indices = @transform_17, window_bounds = array<i64: 1, 128>}, {transform_indices = @transform_18, window_bounds = array<i64: 1, 16, 128>}, {transform_indices = @transform_19, window_bounds = array<i64: 1, 4, 16, 16>}]} {
    %c0 = arith.constant 0 : index
    %c0_0 = arith.constant 0 : index
    %c0_1 = arith.constant 0 : index
    %0 = vector.load %arg1[%c0, %c0_0, %c0_1] : memref<1x16x128xf32, #tpu.memory_space<vmem>>, vector<1x16x128xf32>
    %1 = vector.shape_cast %0 : vector<1x16x128xf32> to vector<16x128xf32>
    %c0_2 = arith.constant 0 : index
    %c0_3 = arith.constant 0 : index
    %c0_4 = arith.constant 0 : index
    %2 = vector.load %arg2[%c0_2, %c0_3, %c0_4] : memref<1x1x16xf32, #tpu.memory_space<vmem>>, vector<1x1x16xf32>
    %3 = vector.shape_cast %2 : vector<1x1x16xf32> to vector<1x16xf32>
    %c0_5 = arith.constant 0 : index
    %c0_6 = arith.constant 0 : index
    %4 = vector.load %arg3[%c0_5, %c0_6] : memref<1x128xf32, #tpu.memory_space<vmem>>, vector<1x128xf32>
    %c0_7 = arith.constant 0 : index
    %c0_8 = arith.constant 0 : index
    %5 = vector.load %arg4[%c0_7, %c0_8] : memref<1x128xf32, #tpu.memory_space<vmem>>, vector<1x128xf32>
    %cst = arith.constant dense<0.000000e+00> : vector<16xf32>
    %6 = vector.multi_reduction <add>, %1, %cst [1] : vector<16x128xf32> to vector<16xf32>
    %7 = vector.shape_cast %6 : vector<16xf32> to vector<16x1xf32>
    %cst_9 = arith.constant 1.280000e+02 : f32
    %8 = vector.broadcast %cst_9 : f32 to vector<16x1xf32>
    %9 = arith.divf %7, %8 : vector<16x1xf32>
    %10 = vector.broadcast %9 : vector<16x1xf32> to vector<16x128xf32>
    %11 = arith.subf %1, %10 : vector<16x128xf32>
    %12 = arith.mulf %11, %11 : vector<16x128xf32>
    %cst_10 = arith.constant dense<0.000000e+00> : vector<16xf32>
    %13 = vector.multi_reduction <add>, %12, %cst_10 [1] : vector<16x128xf32> to vector<16xf32>
    %14 = vector.shape_cast %13 : vector<16xf32> to vector<16x1xf32>
    %cst_11 = arith.constant 1.280000e+02 : f32
    %15 = vector.broadcast %cst_11 : f32 to vector<16x1xf32>
    %16 = arith.divf %14, %15 : vector<16x1xf32>
    %17 = vector.broadcast %9 : vector<16x1xf32> to vector<16x128xf32>
    %18 = arith.subf %1, %17 : vector<16x128xf32>
    %cst_12 = arith.constant 9.99999974E-6 : f32
    %19 = vector.broadcast %cst_12 : f32 to vector<16x1xf32>
    %20 = arith.addf %16, %19 : vector<16x1xf32>
    %21 = math.rsqrt %20 : vector<16x1xf32>
    %22 = vector.broadcast %21 : vector<16x1xf32> to vector<16x128xf32>
    %23 = arith.mulf %18, %22 : vector<16x128xf32>
    %24 = vector.broadcast %4 : vector<1x128xf32> to vector<16x128xf32>
    %25 = arith.mulf %23, %24 : vector<16x128xf32>
    %26 = vector.broadcast %5 : vector<1x128xf32> to vector<16x128xf32>
    %27 = arith.addf %25, %26 : vector<16x128xf32>
    %28 = arith.truncf %27 : vector<16x128xf32> to vector<16x128xbf16>
    %cst_13 = arith.constant 0.000000e+00 : f32
    %29 = vector.broadcast %cst_13 : f32 to vector<16x128xf32>
    %c0_i32 = arith.constant 0 : i32
    %c4_i32 = arith.constant 4 : i32
    %30 = arith.addi %c0_i32, %c4_i32 : i32
    %c1_i32 = arith.constant 1 : i32
    %31 = scf.for %arg21 = %c0_i32 to %30 step %c1_i32 iter_args(%arg22 = %29) -> (vector<16x128xf32>)  : i32 {
      %90 = arith.index_cast %arg21 : i32 to index
      %c0_42 = arith.constant 0 : index
      %c0_43 = arith.constant 0 : index
      %91 = vector.load %arg5[%90, %c0_42, %c0_43] : memref<4x128x32xbf16, #tpu.memory_space<vmem>>, vector<1x128x32xbf16>
      %92 = vector.shape_cast %91 : vector<1x128x32xbf16> to vector<128x32xbf16>
      %cst_44 = arith.constant dense<0.000000e+00> : vector<16x32xf32>
      %93 = tpu.matmul %28, %92, %cst_44 {dimension_numbers = #tpu.dot_dimension_numbers<[1], [0], [0], [1], [0, 0, 1, 1], [], []>} : vector<16x128xbf16>, vector<128x32xbf16>, vector<16x32xf32> -> vector<16x32xf32>
      %94 = arith.index_cast %arg21 : i32 to index
      %c0_45 = arith.constant 0 : index
      %c0_46 = arith.constant 0 : index
      %95 = vector.load %arg6[%94, %c0_45, %c0_46] : memref<4x1x32xf32, #tpu.memory_space<vmem>>, vector<1x1x32xf32>
      %96 = vector.shape_cast %95 : vector<1x1x32xf32> to vector<1x32xf32>
      %97 = vector.broadcast %96 : vector<1x32xf32> to vector<16x32xf32>
      %98 = arith.addf %93, %97 : vector<16x32xf32>
      %99 = arith.truncf %98 : vector<16x32xf32> to vector<16x32xbf16>
      %100 = arith.index_cast %arg21 : i32 to index
      %c0_47 = arith.constant 0 : index
      %c0_48 = arith.constant 0 : index
      %101 = vector.load %arg7[%100, %c0_47, %c0_48] : memref<4x128x32xbf16, #tpu.memory_space<vmem>>, vector<1x128x32xbf16>
      %102 = vector.shape_cast %101 : vector<1x128x32xbf16> to vector<128x32xbf16>
      %cst_49 = arith.constant dense<0.000000e+00> : vector<16x32xf32>
      %103 = tpu.matmul %28, %102, %cst_49 {dimension_numbers = #tpu.dot_dimension_numbers<[1], [0], [0], [1], [0, 0, 1, 1], [], []>} : vector<16x128xbf16>, vector<128x32xbf16>, vector<16x32xf32> -> vector<16x32xf32>
      %104 = arith.index_cast %arg21 : i32 to index
      %c0_50 = arith.constant 0 : index
      %c0_51 = arith.constant 0 : index
      %105 = vector.load %arg8[%104, %c0_50, %c0_51] : memref<4x1x32xf32, #tpu.memory_space<vmem>>, vector<1x1x32xf32>
      %106 = vector.shape_cast %105 : vector<1x1x32xf32> to vector<1x32xf32>
      %107 = vector.broadcast %106 : vector<1x32xf32> to vector<16x32xf32>
      %108 = arith.addf %103, %107 : vector<16x32xf32>
      %109 = arith.truncf %108 : vector<16x32xf32> to vector<16x32xbf16>
      %110 = arith.index_cast %arg21 : i32 to index
      %c0_52 = arith.constant 0 : index
      %c0_53 = arith.constant 0 : index
      %111 = vector.load %arg9[%110, %c0_52, %c0_53] : memref<4x128x32xbf16, #tpu.memory_space<vmem>>, vector<1x128x32xbf16>
      %112 = vector.shape_cast %111 : vector<1x128x32xbf16> to vector<128x32xbf16>
      %cst_54 = arith.constant dense<0.000000e+00> : vector<16x32xf32>
      %113 = tpu.matmul %28, %112, %cst_54 {dimension_numbers = #tpu.dot_dimension_numbers<[1], [0], [0], [1], [0, 0, 1, 1], [], []>} : vector<16x128xbf16>, vector<128x32xbf16>, vector<16x32xf32> -> vector<16x32xf32>
      %114 = arith.index_cast %arg21 : i32 to index
      %c0_55 = arith.constant 0 : index
      %c0_56 = arith.constant 0 : index
      %115 = vector.load %arg10[%114, %c0_55, %c0_56] : memref<4x1x32xf32, #tpu.memory_space<vmem>>, vector<1x1x32xf32>
      %116 = vector.shape_cast %115 : vector<1x1x32xf32> to vector<1x32xf32>
      %117 = vector.broadcast %116 : vector<1x32xf32> to vector<16x32xf32>
      %118 = arith.addf %113, %117 : vector<16x32xf32>
      %119 = arith.truncf %118 : vector<16x32xf32> to vector<16x32xbf16>
      "tpu.trace_start"() <{level = 10 : i32, message = "qd,kd->qk"}> : () -> ()
      %cst_57 = arith.constant dense<0.000000e+00> : vector<16x16xf32>
      %120 = tpu.matmul %99, %109, %cst_57 {dimension_numbers = #tpu.dot_dimension_numbers<[1], [1], [0], [0], [0, 0, 1, 0], [], []>} : vector<16x32xbf16>, vector<16x32xbf16>, vector<16x16xf32> -> vector<16x16xf32>
      "tpu.trace_stop"() : () -> ()
      %cst_58 = arith.constant 0.176776692 : f32
      %121 = vector.broadcast %cst_58 : f32 to vector<16x16xf32>
      %122 = arith.mulf %120, %121 : vector<16x16xf32>
      %cst_59 = arith.constant 0.000000e+00 : f32
      %123 = vector.broadcast %cst_59 : f32 to vector<1x16xf32>
      %124 = arith.cmpf ogt, %3, %123 : vector<1x16xf32>
      %cst_60 = arith.constant -1.000000e+09 : f32
      %125 = vector.shape_cast %124 : vector<1x16xi1> to vector<1x16xi1>
      %126 = vector.broadcast %125 : vector<1x16xi1> to vector<16x16xi1>
      %127 = vector.broadcast %cst_60 : f32 to vector<16x16xf32>
      %128 = arith.select %126, %122, %127 : vector<16x16xi1>, vector<16x16xf32>
      %cst_61 = arith.constant dense<0xFF800000> : vector<16xf32>
      %129 = vector.multi_reduction <maximumf>, %128, %cst_61 [1] : vector<16x16xf32> to vector<16xf32>
      %130 = vector.shape_cast %129 : vector<16xf32> to vector<16x1xf32>
      %131 = vector.broadcast %130 : vector<16x1xf32> to vector<16x16xf32>
      %132 = arith.subf %128, %131 : vector<16x16xf32>
      %133 = math.exp %132 : vector<16x16xf32>
      %cst_62 = arith.constant dense<0.000000e+00> : vector<16xf32>
      %134 = vector.multi_reduction <add>, %133, %cst_62 [1] : vector<16x16xf32> to vector<16xf32>
      %135 = vector.shape_cast %134 : vector<16xf32> to vector<16x1xf32>
      %136 = tpu.reciprocal %135 : vector<16x1xf32> -> vector<16x1xf32>
      %137 = vector.broadcast %136 : vector<16x1xf32> to vector<16x16xf32>
      %138 = arith.mulf %133, %137 : vector<16x16xf32>
      %139 = arith.truncf %138 : vector<16x16xf32> to vector<16x16xbf16>
      %c0_63 = arith.constant 0 : index
      %140 = arith.index_cast %arg21 : i32 to index
      %c0_64 = arith.constant 0 : index
      %c0_65 = arith.constant 0 : index
      %141 = vector.load %arg20[%c0_63, %140, %c0_64, %c0_65] : memref<1x4x16x16xbf16, #tpu.memory_space<vmem>>, vector<1x1x16x16xbf16>
      %142 = vector.shape_cast %141 : vector<1x1x16x16xbf16> to vector<16x16xbf16>
      %143 = vector.shape_cast %139 : vector<16x16xbf16> to vector<1x1x16x16xbf16>
      tpu.vector_store %arg20[%c0_63, %140, %c0_64, %c0_65], %143 {strides = array<i32>} : memref<1x4x16x16xbf16, #tpu.memory_space<vmem>>, vector<1x1x16x16xbf16>,
      %144 = tpu.reciprocal %135 {approx = true} : vector<16x1xf32> -> vector<16x1xf32>
      %145 = vector.broadcast %144 : vector<16x1xf32> to vector<16x16xf32>
      %146 = arith.mulf %133, %145 : vector<16x16xf32>
      %147 = arith.truncf %146 : vector<16x16xf32> to vector<16x16xbf16>
      %cst_66 = arith.constant dense<0.000000e+00> : vector<16x32xf32>
      %148 = tpu.matmul %147, %119, %cst_66 {dimension_numbers = #tpu.dot_dimension_numbers<[1], [0], [0], [1], [0, 0, 1, 1], [], []>} : vector<16x16xbf16>, vector<16x32xbf16>, vector<16x32xf32> -> vector<16x32xf32>
      %149 = arith.truncf %148 : vector<16x32xf32> to vector<16x32xbf16>
      %150 = arith.index_cast %arg21 : i32 to index
      %c0_67 = arith.constant 0 : index
      %c0_68 = arith.constant 0 : index
      %151 = vector.load %arg11[%150, %c0_67, %c0_68] : memref<4x32x128xbf16, #tpu.memory_space<vmem>>, vector<1x32x128xbf16>
      %152 = vector.shape_cast %151 : vector<1x32x128xbf16> to vector<32x128xbf16>
      %cst_69 = arith.constant dense<0.000000e+00> : vector<16x128xf32>
      %153 = tpu.matmul %149, %152, %cst_69 {dimension_numbers = #tpu.dot_dimension_numbers<[1], [0], [0], [1], [0, 0, 1, 1], [], []>} : vector<16x32xbf16>, vector<32x128xbf16>, vector<16x128xf32> -> vector<16x128xf32>
      %154 = arith.addf %arg22, %153 : vector<16x128xf32>
      scf.yield %154 : vector<16x128xf32>
    }
    %c4_i32_14 = arith.constant 4 : i32
    %32 = arith.addf %1, %31 : vector<16x128xf32>
    %c0_15 = arith.constant 0 : index
    %c0_16 = arith.constant 0 : index
    %33 = vector.load %arg12[%c0_15, %c0_16] : memref<1x128xf32, #tpu.memory_space<vmem>>, vector<1x128xf32>
    %34 = vector.broadcast %33 : vector<1x128xf32> to vector<16x128xf32>
    %35 = arith.addf %32, %34 : vector<16x128xf32>
    %c0_17 = arith.constant 0 : index
    %c0_18 = arith.constant 0 : index
    %36 = vector.load %arg13[%c0_17, %c0_18] : memref<1x128xf32, #tpu.memory_space<vmem>>, vector<1x128xf32>
    %c0_19 = arith.constant 0 : index
    %c0_20 = arith.constant 0 : index
    %37 = vector.load %arg14[%c0_19, %c0_20] : memref<1x128xf32, #tpu.memory_space<vmem>>, vector<1x128xf32>
    %cst_21 = arith.constant dense<0.000000e+00> : vector<16xf32>
    %38 = vector.multi_reduction <add>, %35, %cst_21 [1] : vector<16x128xf32> to vector<16xf32>
    %39 = vector.shape_cast %38 : vector<16xf32> to vector<16x1xf32>
    %cst_22 = arith.constant 1.280000e+02 : f32
    %40 = vector.broadcast %cst_22 : f32 to vector<16x1xf32>
    %41 = arith.divf %39, %40 : vector<16x1xf32>
    %42 = vector.broadcast %41 : vector<16x1xf32> to vector<16x128xf32>
    %43 = arith.subf %35, %42 : vector<16x128xf32>
    %44 = arith.mulf %43, %43 : vector<16x128xf32>
    %cst_23 = arith.constant dense<0.000000e+00> : vector<16xf32>
    %45 = vector.multi_reduction <add>, %44, %cst_23 [1] : vector<16x128xf32> to vector<16xf32>
    %46 = vector.shape_cast %45 : vector<16xf32> to vector<16x1xf32>
    %cst_24 = arith.constant 1.280000e+02 : f32
    %47 = vector.broadcast %cst_24 : f32 to vector<16x1xf32>
    %48 = arith.divf %46, %47 : vector<16x1xf32>
    %49 = vector.broadcast %41 : vector<16x1xf32> to vector<16x128xf32>
    %50 = arith.subf %35, %49 : vector<16x128xf32>
    %cst_25 = arith.constant 9.99999974E-6 : f32
    %51 = vector.broadcast %cst_25 : f32 to vector<16x1xf32>
    %52 = arith.addf %48, %51 : vector<16x1xf32>
    %53 = math.rsqrt %52 : vector<16x1xf32>
    %54 = vector.broadcast %53 : vector<16x1xf32> to vector<16x128xf32>
    %55 = arith.mulf %50, %54 : vector<16x128xf32>
    %56 = vector.broadcast %36 : vector<1x128xf32> to vector<16x128xf32>
    %57 = arith.mulf %55, %56 : vector<16x128xf32>
    %58 = vector.broadcast %37 : vector<1x128xf32> to vector<16x128xf32>
    %59 = arith.addf %57, %58 : vector<16x128xf32>
    %60 = arith.truncf %59 : vector<16x128xf32> to vector<16x128xbf16>
    %cst_26 = arith.constant 0.000000e+00 : bf16
    %61 = vector.broadcast %cst_26 : bf16 to vector<1x128xbf16>
    %62 = tpu.concatenate %61, %60, %61 in 0 : vector<1x128xbf16>, vector<16x128xbf16>, vector<1x128xbf16> -> vector<18x128xbf16>
    %63 = vector.extract_strided_slice %62 {offsets = [0, 0], sizes = [16, 128], strides = [1, 1]} : vector<18x128xbf16> to vector<16x128xbf16>
    %64 = vector.extract_strided_slice %62 {offsets = [1, 0], sizes = [16, 128], strides = [1, 1]} : vector<18x128xbf16> to vector<16x128xbf16>
    %65 = vector.extract_strided_slice %62 {offsets = [2, 0], sizes = [16, 128], strides = [1, 1]} : vector<18x128xbf16> to vector<16x128xbf16>
    %66 = tpu.concatenate %63, %64, %65 in 1 : vector<16x128xbf16>, vector<16x128xbf16>, vector<16x128xbf16> -> vector<16x384xbf16>
    %c0_27 = arith.constant 0 : index
    %c0_28 = arith.constant 0 : index
    %67 = vector.load %arg15[%c0_27, %c0_28] : memref<384x512xbf16, #tpu.memory_space<vmem>>, vector<384x512xbf16>
    %cst_29 = arith.constant dense<0.000000e+00> : vector<16x512xf32>
    %68 = tpu.matmul %66, %67, %cst_29 {dimension_numbers = #tpu.dot_dimension_numbers<[1], [0], [0], [1], [0, 0, 1, 1], [], []>} : vector<16x384xbf16>, vector<384x512xbf16>, vector<16x512xf32> -> vector<16x512xf32>
    %c0_30 = arith.constant 0 : index
    %c0_31 = arith.constant 0 : index
    %69 = vector.load %arg16[%c0_30, %c0_31] : memref<1x512xf32, #tpu.memory_space<vmem>>, vector<1x512xf32>
    %70 = vector.broadcast %69 : vector<1x512xf32> to vector<16x512xf32>
    %71 = arith.addf %68, %70 : vector<16x512xf32>
    %cst_32 = arith.constant 0.000000e+00 : f32
    %72 = vector.broadcast %cst_32 : f32 to vector<16x512xf32>
    %73 = arith.maximumf %71, %72 : vector<16x512xf32>
    %74 = arith.truncf %73 : vector<16x512xf32> to vector<16x512xbf16>
    %cst_33 = arith.constant 0.000000e+00 : bf16
    %75 = vector.broadcast %cst_33 : bf16 to vector<1x512xbf16>
    %76 = tpu.concatenate %75, %74, %75 in 0 : vector<1x512xbf16>, vector<16x512xbf16>, vector<1x512xbf16> -> vector<18x512xbf16>
    %77 = vector.extract_strided_slice %76 {offsets = [0, 0], sizes = [16, 512], strides = [1, 1]} : vector<18x512xbf16> to vector<16x512xbf16>
    %78 = vector.extract_strided_slice %76 {offsets = [1, 0], sizes = [16, 512], strides = [1, 1]} : vector<18x512xbf16> to vector<16x512xbf16>
    %79 = vector.extract_strided_slice %76 {offsets = [2, 0], sizes = [16, 512], strides = [1, 1]} : vector<18x512xbf16> to vector<16x512xbf16>
    %80 = tpu.concatenate %77, %78, %79 in 1 : vector<16x512xbf16>, vector<16x512xbf16>, vector<16x512xbf16> -> vector<16x1536xbf16>
    %c0_34 = arith.constant 0 : index
    %c0_35 = arith.constant 0 : index
    %81 = vector.load %arg17[%c0_34, %c0_35] : memref<1536x128xbf16, #tpu.memory_space<vmem>>, vector<1536x128xbf16>
    %cst_36 = arith.constant dense<0.000000e+00> : vector<16x128xf32>
    %82 = tpu.matmul %80, %81, %cst_36 {dimension_numbers = #tpu.dot_dimension_numbers<[1], [0], [0], [1], [0, 0, 1, 1], [], []>} : vector<16x1536xbf16>, vector<1536x128xbf16>, vector<16x128xf32> -> vector<16x128xf32>
    %c0_37 = arith.constant 0 : index
    %c0_38 = arith.constant 0 : index
    %83 = vector.load %arg18[%c0_37, %c0_38] : memref<1x128xf32, #tpu.memory_space<vmem>>, vector<1x128xf32>
    %84 = vector.broadcast %83 : vector<1x128xf32> to vector<16x128xf32>
    %85 = arith.addf %82, %84 : vector<16x128xf32>
    %86 = arith.addf %35, %85 : vector<16x128xf32>
    %c0_39 = arith.constant 0 : index
    %c0_40 = arith.constant 0 : index
    %c0_41 = arith.constant 0 : index
    %87 = vector.load %arg19[%c0_39, %c0_40, %c0_41] : memref<1x16x128xf32, #tpu.memory_space<vmem>>, vector<1x16x128xf32>
    %88 = vector.shape_cast %87 : vector<1x16x128xf32> to vector<16x128xf32>
    %89 = vector.shape_cast %86 : vector<16x128xf32> to vector<1x16x128xf32>
    tpu.vector_store %arg19[%c0_39, %c0_40, %c0_41], %89 {strides = array<i32>} : memref<1x16x128xf32, #tpu.memory_space<vmem>>, vector<1x16x128xf32>,
    return
  }
  func.func @transform_0(%arg0: i32) -> (i32, i32, i32) {
    %c0_i32 = arith.constant 0 : i32
    %c0_i32_0 = arith.constant 0 : i32
    %c0_i32_1 = arith.constant 0 : i32
    return %arg0, %c0_i32, %c0_i32_0 : i32, i32, i32
  }
  func.func @transform_1(%arg0: i32) -> (i32, i32, i32) {
    %c0_i32 = arith.constant 0 : i32
    %c0_i32_0 = arith.constant 0 : i32
    %c0_i32_1 = arith.constant 0 : i32
    return %arg0, %c0_i32, %c0_i32_0 : i32, i32, i32
  }
  func.func @transform_2(%arg0: i32) -> (i32, i32) {
    %c0_i32 = arith.constant 0 : i32
    %c0_i32_0 = arith.constant 0 : i32
    %c0_i32_1 = arith.constant 0 : i32
    return %c0_i32, %c0_i32_0 : i32, i32
  }
  func.func @transform_3(%arg0: i32) -> (i32, i32) {
    %c0_i32 = arith.constant 0 : i32
    %c0_i32_0 = arith.constant 0 : i32
    %c0_i32_1 = arith.constant 0 : i32
    return %c0_i32, %c0_i32_0 : i32, i32
  }
  func.func @transform_4(%arg0: i32) -> (i32, i32, i32) {
    %c0_i32 = arith.constant 0 : i32
    %c0_i32_0 = arith.constant 0 : i32
    %c0_i32_1 = arith.constant 0 : i32
    %c0_i32_2 = arith.constant 0 : i32
    return %c0_i32, %c0_i32_0, %c0_i32_1 : i32, i32, i32
  }
  func.func @transform_5(%arg0: i32) -> (i32, i32, i32) {
    %c0_i32 = arith.constant 0 : i32
    %c0_i32_0 = arith.constant 0 : i32
    %c0_i32_1 = arith.constant 0 : i32
    %c0_i32_2 = arith.constant 0 : i32
    return %c0_i32, %c0_i32_0, %c0_i32_1 : i32, i32, i32
  }
  func.func @transform_6(%arg0: i32) -> (i32, i32, i32) {
    %c0_i32 = arith.constant 0 : i32
    %c0_i32_0 = arith.constant 0 : i32
    %c0_i32_1 = arith.constant 0 : i32
    %c0_i32_2 = arith.constant 0 : i32
    return %c0_i32, %c0_i32_0, %c0_i32_1 : i32, i32, i32
  }
  func.func @transform_7(%arg0: i32) -> (i32, i32, i32) {
    %c0_i32 = arith.constant 0 : i32
    %c0_i32_0 = arith.constant 0 : i32
    %c0_i32_1 = arith.constant 0 : i32
    %c0_i32_2 = arith.constant 0 : i32
    return %c0_i32, %c0_i32_0, %c0_i32_1 : i32, i32, i32
  }
  func.func @transform_8(%arg0: i32) -> (i32, i32, i32) {
    %c0_i32 = arith.constant 0 : i32
    %c0_i32_0 = arith.constant 0 : i32
    %c0_i32_1 = arith.constant 0 : i32
    %c0_i32_2 = arith.constant 0 : i32
    return %c0_i32, %c0_i32_0, %c0_i32_1 : i32, i32, i32
  }
  func.func @transform_9(%arg0: i32) -> (i32, i32, i32) {
    %c0_i32 = arith.constant 0 : i32
    %c0_i32_0 = arith.constant 0 : i32
    %c0_i32_1 = arith.constant 0 : i32
    %c0_i32_2 = arith.constant 0 : i32
    return %c0_i32, %c0_i32_0, %c0_i32_1 : i32, i32, i32
  }
  func.func @transform_10(%arg0: i32) -> (i32, i32, i32) {
    %c0_i32 = arith.constant 0 : i32
    %c0_i32_0 = arith.constant 0 : i32
    %c0_i32_1 = arith.constant 0 : i32
    %c0_i32_2 = arith.constant 0 : i32
    return %c0_i32, %c0_i32_0, %c0_i32_1 : i32, i32, i32
  }
  func.func @transform_11(%arg0: i32) -> (i32, i32) {
    %c0_i32 = arith.constant 0 : i32
    %c0_i32_0 = arith.constant 0 : i32
    %c0_i32_1 = arith.constant 0 : i32
    return %c0_i32, %c0_i32_0 : i32, i32
  }
  func.func @transform_12(%arg0: i32) -> (i32, i32) {
    %c0_i32 = arith.constant 0 : i32
    %c0_i32_0 = arith.constant 0 : i32
    %c0_i32_1 = arith.constant 0 : i32
    return %c0_i32, %c0_i32_0 : i32, i32
  }
  func.func @transform_13(%arg0: i32) -> (i32, i32) {
    %c0_i32 = arith.constant 0 : i32
    %c0_i32_0 = arith.constant 0 : i32
    %c0_i32_1 = arith.constant 0 : i32
    return %c0_i32, %c0_i32_0 : i32, i32
  }
  func.func @transform_14(%arg0: i32) -> (i32, i32) {
    %c0_i32 = arith.constant 0 : i32
    %c0_i32_0 = arith.constant 0 : i32
    %c0_i32_1 = arith.constant 0 : i32
    return %c0_i32, %c0_i32_0 : i32, i32
  }
  func.func @transform_15(%arg0: i32) -> (i32, i32) {
    %c0_i32 = arith.constant 0 : i32
    %c0_i32_0 = arith.constant 0 : i32
    %c0_i32_1 = arith.constant 0 : i32
    return %c0_i32, %c0_i32_0 : i32, i32
  }
  func.func @transform_16(%arg0: i32) -> (i32, i32) {
    %c0_i32 = arith.constant 0 : i32
    %c0_i32_0 = arith.constant 0 : i32
    %c0_i32_1 = arith.constant 0 : i32
    return %c0_i32, %c0_i32_0 : i32, i32
  }
  func.func @transform_17(%arg0: i32) -> (i32, i32) {
    %c0_i32 = arith.constant 0 : i32
    %c0_i32_0 = arith.constant 0 : i32
    %c0_i32_1 = arith.constant 0 : i32
    return %c0_i32, %c0_i32_0 : i32, i32
  }
  func.func @transform_18(%arg0: i32) -> (i32, i32, i32) {
    %c0_i32 = arith.constant 0 : i32
    %c0_i32_0 = arith.constant 0 : i32
    %c0_i32_1 = arith.constant 0 : i32
    return %arg0, %c0_i32, %c0_i32_0 : i32, i32, i32
  }
  func.func @transform_19(%arg0: i32) -> (i32, i32, i32, i32) {
    %c0_i32 = arith.constant 0 : i32
    %c0_i32_0 = arith.constant 0 : i32
    %c0_i32_1 = arith.constant 0 : i32
    %c0_i32_2 = arith.constant 0 : i32
    return %arg0, %c0_i32, %c0_i32_0, %c0_i32_1 : i32, i32, i32, i32
  }
}

module attributes {stable_mosaic.version = 11 : i64} {
  func.func @kernel(%arg0: i32, %arg1: memref<1x16x128xf32, #tpu.memory_space<vmem>>, %arg2: memref<1x1x16xf32, #tpu.memory_space<vmem>>, %arg3: memref<1x128xf32, #tpu.memory_space<vmem>>, %arg4: memref<1x128xf32, #tpu.memory_space<vmem>>, %arg5: memref<4x128x32xbf16, #tpu.memory_space<vmem>>, %arg6: memref<4x1x32xf32, #tpu.memory_space<vmem>>, %arg7: memref<4x128x32xbf16, #tpu.memory_space<vmem>>, %arg8: memref<4x1x32xf32, #tpu.memory_space<vmem>>, %arg9: memref<4x128x32xbf16, #tpu.memory_space<vmem>>, %arg10: memref<4x1x32xf32, #tpu.memory_space<vmem>>, %arg11: memref<4x32x128xbf16, #tpu.memory_space<vmem>>, %arg12: memref<1x128xf32, #tpu.memory_space<vmem>>, %arg13: memref<1x128xf32, #tpu.memory_space<vmem>>, %arg14: memref<1x128xf32, #tpu.memory_space<vmem>>, %arg15: memref<384x512xbf16, #tpu.memory_space<vmem>>, %arg16: memref<1x512xf32, #tpu.memory_space<vmem>>, %arg17: memref<1536x128xbf16, #tpu.memory_space<vmem>>, %arg18: memref<1x128xf32, #tpu.memory_space<vmem>>, %arg19: memref<1x16x128xf32, #tpu.memory_space<vmem>>, %arg20: memref<1x4x16x16xbf16, #tpu.memory_space<vmem>>) attributes {dimension_semantics = [#tpu.dimension_semantics<parallel>], iteration_bounds = array<i64: 2>, scalar_prefetch = 0 : i64, scratch_operands = 0 : i64, tpu.core_type = #tpu.core_type<tc>, window_params = [{transform_indices = @transform_0, window_bounds = array<i64: 1, 16, 128>}, {transform_indices = @transform_1, window_bounds = array<i64: 1, 1, 16>}, {pipeline_mode = #tpu.pipeline_mode<synchronous>, transform_indices = @transform_2, window_bounds = array<i64: 1, 128>}, {pipeline_mode = #tpu.pipeline_mode<synchronous>, transform_indices = @transform_3, window_bounds = array<i64: 1, 128>}, {pipeline_mode = #tpu.pipeline_mode<synchronous>, transform_indices = @transform_4, window_bounds = array<i64: 4, 128, 32>}, {pipeline_mode = #tpu.pipeline_mode<synchronous>, transform_indices = @transform_5, window_bounds = array<i64: 4, 1, 32>}, {pipeline_mode = #tpu.pipeline_mode<synchronous>, transform_indices = @transform_6, window_bounds = array<i64: 4, 128, 32>}, {pipeline_mode = #tpu.pipeline_mode<synchronous>, transform_indices = @transform_7, window_bounds = array<i64: 4, 1, 32>}, {pipeline_mode = #tpu.pipeline_mode<synchronous>, transform_indices = @transform_8, window_bounds = array<i64: 4, 128, 32>}, {pipeline_mode = #tpu.pipeline_mode<synchronous>, transform_indices = @transform_9, window_bounds = array<i64: 4, 1, 32>}, {pipeline_mode = #tpu.pipeline_mode<synchronous>, transform_indices = @transform_10, window_bounds = array<i64: 4, 32, 128>}, {pipeline_mode = #tpu.pipeline_mode<synchronous>, transform_indices = @transform_11, window_bounds = array<i64: 1, 128>}, {pipeline_mode = #tpu.pipeline_mode<synchronous>, transform_indices = @transform_12, window_bounds = array<i64: 1, 128>}, {pipeline_mode = #tpu.pipeline_mode<synchronous>, transform_indices = @transform_13, window_bounds = array<i64: 1, 128>}, {pipeline_mode = #tpu.pipeline_mode<synchronous>, transform_indices = @transform_14, window_bounds = array<i64: 384, 512>}, {pipeline_mode = #tpu.pipeline_mode<synchronous>, transform_indices = @transform_15, window_bounds = array<i64: 1, 512>}, {pipeline_mode = #tpu.pipeline_mode<synchronous>, transform_indices = @transform_16, window_bounds = array<i64: 1536, 128>}, {pipeline_mode = #tpu.pipeline_mode<synchronous>, transform_indices = @transform_17, window_bounds = array<i64: 1, 128>}, {transform_indices = @transform_18, window_bounds = array<i64: 1, 16, 128>}, {transform_indices = @transform_19, window_bounds = array<i64: 1, 4, 16, 16>}]} {
    %c0 = arith.constant 0 : index
    %c0_0 = arith.constant 0 : index
    %c0_1 = arith.constant 0 : index
    %0 = vector.load %arg1[%c0, %c0_0, %c0_1] : memref<1x16x128xf32, #tpu.memory_space<vmem>>, vector<1x16x128xf32>
    %1 = vector.shape_cast %0 : vector<1x16x128xf32> to vector<16x128xf32>
    %c0_2 = arith.constant 0 : index
    %c0_3 = arith.constant 0 : index
    %c0_4 = arith.constant 0 : index
    %2 = vector.load %arg2[%c0_2, %c0_3, %c0_4] : memref<1x1x16xf32, #tpu.memory_space<vmem>>, vector<1x1x16xf32>
    %3 = vector.shape_cast %2 : vector<1x1x16xf32> to vector<1x16xf32>
    %c0_5 = arith.constant 0 : index
    %c0_6 = arith.constant 0 : index
    %4 = vector.load %arg3[%c0_5, %c0_6] : memref<1x128xf32, #tpu.memory_space<vmem>>, vector<1x128xf32>
    %c0_7 = arith.constant 0 : index
    %c0_8 = arith.constant 0 : index
    %5 = vector.load %arg4[%c0_7, %c0_8] : memref<1x128xf32, #tpu.memory_space<vmem>>, vector<1x128xf32>
    %cst = arith.constant dense<0.000000e+00> : vector<16xf32>
    %6 = vector.multi_reduction <add>, %1, %cst [1] : vector<16x128xf32> to vector<16xf32>
    %7 = vector.shape_cast %6 : vector<16xf32> to vector<16x1xf32>
    %cst_9 = arith.constant 1.280000e+02 : f32
    %8 = vector.broadcast %cst_9 : f32 to vector<16x1xf32>
    %9 = arith.divf %7, %8 : vector<16x1xf32>
    %10 = vector.broadcast %9 : vector<16x1xf32> to vector<16x128xf32>
    %11 = arith.subf %1, %10 : vector<16x128xf32>
    %12 = arith.mulf %11, %11 : vector<16x128xf32>
    %cst_10 = arith.constant dense<0.000000e+00> : vector<16xf32>
    %13 = vector.multi_reduction <add>, %12, %cst_10 [1] : vector<16x128xf32> to vector<16xf32>
    %14 = vector.shape_cast %13 : vector<16xf32> to vector<16x1xf32>
    %cst_11 = arith.constant 1.280000e+02 : f32
    %15 = vector.broadcast %cst_11 : f32 to vector<16x1xf32>
    %16 = arith.divf %14, %15 : vector<16x1xf32>
    %17 = vector.broadcast %9 : vector<16x1xf32> to vector<16x128xf32>
    %18 = arith.subf %1, %17 : vector<16x128xf32>
    %cst_12 = arith.constant 9.99999974E-6 : f32
    %19 = vector.broadcast %cst_12 : f32 to vector<16x1xf32>
    %20 = arith.addf %16, %19 : vector<16x1xf32>
    %21 = math.rsqrt %20 : vector<16x1xf32>
    %22 = vector.broadcast %21 : vector<16x1xf32> to vector<16x128xf32>
    %23 = arith.mulf %18, %22 : vector<16x128xf32>
    %24 = vector.broadcast %4 : vector<1x128xf32> to vector<16x128xf32>
    %25 = arith.mulf %23, %24 : vector<16x128xf32>
    %26 = vector.broadcast %5 : vector<1x128xf32> to vector<16x128xf32>
    %27 = arith.addf %25, %26 : vector<16x128xf32>
    %28 = arith.truncf %27 : vector<16x128xf32> to vector<16x128xbf16>
    %cst_13 = arith.constant 0.000000e+00 : f32
    %29 = vector.broadcast %cst_13 : f32 to vector<16x128xf32>
    %c0_i32 = arith.constant 0 : i32
    %c4_i32 = arith.constant 4 : i32
    %30 = arith.addi %c0_i32, %c4_i32 : i32
    %c1_i32 = arith.constant 1 : i32
    %31 = scf.for %arg21 = %c0_i32 to %30 step %c1_i32 iter_args(%arg22 = %29) -> (vector<16x128xf32>)  : i32 {
      %90 = arith.index_cast %arg21 : i32 to index
      %c0_42 = arith.constant 0 : index
      %c0_43 = arith.constant 0 : index
      %91 = vector.load %arg5[%90, %c0_42, %c0_43] : memref<4x128x32xbf16, #tpu.memory_space<vmem>>, vector<1x128x32xbf16>
      %92 = vector.shape_cast %91 : vector<1x128x32xbf16> to vector<128x32xbf16>
      %cst_44 = arith.constant dense<0.000000e+00> : vector<16x32xf32>
      %93 = tpu.matmul %28, %92, %cst_44 {dimension_numbers = #tpu.dot_dimension_numbers<[1], [0], [0], [1], [0, 0, 1, 1], [], []>} : vector<16x128xbf16>, vector<128x32xbf16>, vector<16x32xf32> -> vector<16x32xf32>
      %94 = arith.index_cast %arg21 : i32 to index
      %c0_45 = arith.constant 0 : index
      %c0_46 = arith.constant 0 : index
      %95 = vector.load %arg6[%94, %c0_45, %c0_46] : memref<4x1x32xf32, #tpu.memory_space<vmem>>, vector<1x1x32xf32>
      %96 = vector.shape_cast %95 : vector<1x1x32xf32> to vector<1x32xf32>
      %97 = vector.broadcast %96 : vector<1x32xf32> to vector<16x32xf32>
      %98 = arith.addf %93, %97 : vector<16x32xf32>
      %99 = arith.truncf %98 : vector<16x32xf32> to vector<16x32xbf16>
      %100 = arith.index_cast %arg21 : i32 to index
      %c0_47 = arith.constant 0 : index
      %c0_48 = arith.constant 0 : index
      %101 = vector.load %arg7[%100, %c0_47, %c0_48] : memref<4x128x32xbf16, #tpu.memory_space<vmem>>, vector<1x128x32xbf16>
      %102 = vector.shape_cast %101 : vector<1x128x32xbf16> to vector<128x32xbf16>
      %cst_49 = arith.constant dense<0.000000e+00> : vector<16x32xf32>
      %103 = tpu.matmul %28, %102, %cst_49 {dimension_numbers = #tpu.dot_dimension_numbers<[1], [0], [0], [1], [0, 0, 1, 1], [], []>} : vector<16x128xbf16>, vector<128x32xbf16>, vector<16x32xf32> -> vector<16x32xf32>
      %104 = arith.index_cast %arg21 : i32 to index
      %c0_50 = arith.constant 0 : index
      %c0_51 = arith.constant 0 : index
      %105 = vector.load %arg8[%104, %c0_50, %c0_51] : memref<4x1x32xf32, #tpu.memory_space<vmem>>, vector<1x1x32xf32>
      %106 = vector.shape_cast %105 : vector<1x1x32xf32> to vector<1x32xf32>
      %107 = vector.broadcast %106 : vector<1x32xf32> to vector<16x32xf32>
      %108 = arith.addf %103, %107 : vector<16x32xf32>
      %109 = arith.truncf %108 : vector<16x32xf32> to vector<16x32xbf16>
      %110 = arith.index_cast %arg21 : i32 to index
      %c0_52 = arith.constant 0 : index
      %c0_53 = arith.constant 0 : index
      %111 = vector.load %arg9[%110, %c0_52, %c0_53] : memref<4x128x32xbf16, #tpu.memory_space<vmem>>, vector<1x128x32xbf16>
      %112 = vector.shape_cast %111 : vector<1x128x32xbf16> to vector<128x32xbf16>
      %cst_54 = arith.constant dense<0.000000e+00> : vector<16x32xf32>
      %113 = tpu.matmul %28, %112, %cst_54 {dimension_numbers = #tpu.dot_dimension_numbers<[1], [0], [0], [1], [0, 0, 1, 1], [], []>} : vector<16x128xbf16>, vector<128x32xbf16>, vector<16x32xf32> -> vector<16x32xf32>
      %114 = arith.index_cast %arg21 : i32 to index
      %c0_55 = arith.constant 0 : index
      %c0_56 = arith.constant 0 : index
      %115 = vector.load %arg10[%114, %c0_55, %c0_56] : memref<4x1x32xf32, #tpu.memory_space<vmem>>, vector<1x1x32xf32>
      %116 = vector.shape_cast %115 : vector<1x1x32xf32> to vector<1x32xf32>
      %117 = vector.broadcast %116 : vector<1x32xf32> to vector<16x32xf32>
      %118 = arith.addf %113, %117 : vector<16x32xf32>
      %119 = arith.truncf %118 : vector<16x32xf32> to vector<16x32xbf16>
      "tpu.trace_start"() <{level = 10 : i32, message = "qd,kd->qk"}> : () -> ()
      %cst_57 = arith.constant dense<0.000000e+00> : vector<16x16xf32>
      %120 = tpu.matmul %99, %109, %cst_57 {dimension_numbers = #tpu.dot_dimension_numbers<[1], [1], [0], [0], [0, 0, 1, 0], [], []>} : vector<16x32xbf16>, vector<16x32xbf16>, vector<16x16xf32> -> vector<16x16xf32>
      "tpu.trace_stop"() : () -> ()
      %cst_58 = arith.constant 0.176776692 : f32
      %121 = vector.broadcast %cst_58 : f32 to vector<16x16xf32>
      %122 = arith.mulf %120, %121 : vector<16x16xf32>
      %cst_59 = arith.constant 0.000000e+00 : f32
      %123 = vector.broadcast %cst_59 : f32 to vector<1x16xf32>
      %124 = arith.cmpf ogt, %3, %123 : vector<1x16xf32>
      %cst_60 = arith.constant -1.000000e+09 : f32
      %125 = vector.shape_cast %124 : vector<1x16xi1> to vector<1x16xi1>
      %126 = vector.broadcast %125 : vector<1x16xi1> to vector<16x16xi1>
      %127 = vector.broadcast %cst_60 : f32 to vector<16x16xf32>
      %128 = arith.select %126, %122, %127 : vector<16x16xi1>, vector<16x16xf32>
      %cst_61 = arith.constant dense<0xFF800000> : vector<16xf32>
      %129 = vector.multi_reduction <maximumf>, %128, %cst_61 [1] : vector<16x16xf32> to vector<16xf32>
      %130 = vector.shape_cast %129 : vector<16xf32> to vector<16x1xf32>
      %131 = vector.broadcast %130 : vector<16x1xf32> to vector<16x16xf32>
      %132 = arith.subf %128, %131 : vector<16x16xf32>
      %133 = math.exp %132 : vector<16x16xf32>
      %cst_62 = arith.constant dense<0.000000e+00> : vector<16xf32>
      %134 = vector.multi_reduction <add>, %133, %cst_62 [1] : vector<16x16xf32> to vector<16xf32>
      %135 = vector.shape_cast %134 : vector<16xf32> to vector<16x1xf32>
      %136 = tpu.reciprocal %135 : vector<16x1xf32> -> vector<16x1xf32>
      %137 = vector.broadcast %136 : vector<16x1xf32> to vector<16x16xf32>
      %138 = arith.mulf %133, %137 : vector<16x16xf32>
      %139 = arith.truncf %138 : vector<16x16xf32> to vector<16x16xbf16>
      %c0_63 = arith.constant 0 : index
      %140 = arith.index_cast %arg21 : i32 to index
      %c0_64 = arith.constant 0 : index
      %c0_65 = arith.constant 0 : index
      %141 = vector.load %arg20[%c0_63, %140, %c0_64, %c0_65] : memref<1x4x16x16xbf16, #tpu.memory_space<vmem>>, vector<1x1x16x16xbf16>
      %142 = vector.shape_cast %141 : vector<1x1x16x16xbf16> to vector<16x16xbf16>
      %143 = vector.shape_cast %139 : vector<16x16xbf16> to vector<1x1x16x16xbf16>
      tpu.vector_store %arg20[%c0_63, %140, %c0_64, %c0_65], %143 {strides = array<i32>} : memref<1x4x16x16xbf16, #tpu.memory_space<vmem>>, vector<1x1x16x16xbf16>,
      %144 = tpu.reciprocal %135 {approx = true} : vector<16x1xf32> -> vector<16x1xf32>
      %145 = vector.broadcast %144 : vector<16x1xf32> to vector<16x16xf32>
      %146 = arith.mulf %133, %145 : vector<16x16xf32>
      %147 = arith.truncf %146 : vector<16x16xf32> to vector<16x16xbf16>
      %cst_66 = arith.constant dense<0.000000e+00> : vector<16x32xf32>
      %148 = tpu.matmul %147, %119, %cst_66 {dimension_numbers = #tpu.dot_dimension_numbers<[1], [0], [0], [1], [0, 0, 1, 1], [], []>} : vector<16x16xbf16>, vector<16x32xbf16>, vector<16x32xf32> -> vector<16x32xf32>
      %149 = arith.truncf %148 : vector<16x32xf32> to vector<16x32xbf16>
      %150 = arith.index_cast %arg21 : i32 to index
      %c0_67 = arith.constant 0 : index
      %c0_68 = arith.constant 0 : index
      %151 = vector.load %arg11[%150, %c0_67, %c0_68] : memref<4x32x128xbf16, #tpu.memory_space<vmem>>, vector<1x32x128xbf16>
      %152 = vector.shape_cast %151 : vector<1x32x128xbf16> to vector<32x128xbf16>
      %cst_69 = arith.constant dense<0.000000e+00> : vector<16x128xf32>
      %153 = tpu.matmul %149, %152, %cst_69 {dimension_numbers = #tpu.dot_dimension_numbers<[1], [0], [0], [1], [0, 0, 1, 1], [], []>} : vector<16x32xbf16>, vector<32x128xbf16>, vector<16x128xf32> -> vector<16x128xf32>
      %154 = arith.addf %arg22, %153 : vector<16x128xf32>
      scf.yield %154 : vector<16x128xf32>
    }
    %c4_i32_14 = arith.constant 4 : i32
    %32 = arith.addf %1, %31 : vector<16x128xf32>
    %c0_15 = arith.constant 0 : index
    %c0_16 = arith.constant 0 : index
    %33 = vector.load %arg12[%c0_15, %c0_16] : memref<1x128xf32, #tpu.memory_space<vmem>>, vector<1x128xf32>
    %34 = vector.broadcast %33 : vector<1x128xf32> to vector<16x128xf32>
    %35 = arith.addf %32, %34 : vector<16x128xf32>
    %c0_17 = arith.constant 0 : index
    %c0_18 = arith.constant 0 : index
    %36 = vector.load %arg13[%c0_17, %c0_18] : memref<1x128xf32, #tpu.memory_space<vmem>>, vector<1x128xf32>
    %c0_19 = arith.constant 0 : index
    %c0_20 = arith.constant 0 : index
    %37 = vector.load %arg14[%c0_19, %c0_20] : memref<1x128xf32, #tpu.memory_space<vmem>>, vector<1x128xf32>
    %cst_21 = arith.constant dense<0.000000e+00> : vector<16xf32>
    %38 = vector.multi_reduction <add>, %35, %cst_21 [1] : vector<16x128xf32> to vector<16xf32>
    %39 = vector.shape_cast %38 : vector<16xf32> to vector<16x1xf32>
    %cst_22 = arith.constant 1.280000e+02 : f32
    %40 = vector.broadcast %cst_22 : f32 to vector<16x1xf32>
    %41 = arith.divf %39, %40 : vector<16x1xf32>
    %42 = vector.broadcast %41 : vector<16x1xf32> to vector<16x128xf32>
    %43 = arith.subf %35, %42 : vector<16x128xf32>
    %44 = arith.mulf %43, %43 : vector<16x128xf32>
    %cst_23 = arith.constant dense<0.000000e+00> : vector<16xf32>
    %45 = vector.multi_reduction <add>, %44, %cst_23 [1] : vector<16x128xf32> to vector<16xf32>
    %46 = vector.shape_cast %45 : vector<16xf32> to vector<16x1xf32>
    %cst_24 = arith.constant 1.280000e+02 : f32
    %47 = vector.broadcast %cst_24 : f32 to vector<16x1xf32>
    %48 = arith.divf %46, %47 : vector<16x1xf32>
    %49 = vector.broadcast %41 : vector<16x1xf32> to vector<16x128xf32>
    %50 = arith.subf %35, %49 : vector<16x128xf32>
    %cst_25 = arith.constant 9.99999974E-6 : f32
    %51 = vector.broadcast %cst_25 : f32 to vector<16x1xf32>
    %52 = arith.addf %48, %51 : vector<16x1xf32>
    %53 = math.rsqrt %52 : vector<16x1xf32>
    %54 = vector.broadcast %53 : vector<16x1xf32> to vector<16x128xf32>
    %55 = arith.mulf %50, %54 : vector<16x128xf32>
    %56 = vector.broadcast %36 : vector<1x128xf32> to vector<16x128xf32>
    %57 = arith.mulf %55, %56 : vector<16x128xf32>
    %58 = vector.broadcast %37 : vector<1x128xf32> to vector<16x128xf32>
    %59 = arith.addf %57, %58 : vector<16x128xf32>
    %60 = arith.truncf %59 : vector<16x128xf32> to vector<16x128xbf16>
    %cst_26 = arith.constant 0.000000e+00 : bf16
    %61 = vector.broadcast %cst_26 : bf16 to vector<1x128xbf16>
    %62 = tpu.concatenate %61, %60, %61 in 0 : vector<1x128xbf16>, vector<16x128xbf16>, vector<1x128xbf16> -> vector<18x128xbf16>
    %63 = vector.extract_strided_slice %62 {offsets = [0, 0], sizes = [16, 128], strides = [1, 1]} : vector<18x128xbf16> to vector<16x128xbf16>
    %64 = vector.extract_strided_slice %62 {offsets = [1, 0], sizes = [16, 128], strides = [1, 1]} : vector<18x128xbf16> to vector<16x128xbf16>
    %65 = vector.extract_strided_slice %62 {offsets = [2, 0], sizes = [16, 128], strides = [1, 1]} : vector<18x128xbf16> to vector<16x128xbf16>
    %66 = tpu.concatenate %63, %64, %65 in 1 : vector<16x128xbf16>, vector<16x128xbf16>, vector<16x128xbf16> -> vector<16x384xbf16>
    %c0_27 = arith.constant 0 : index
    %c0_28 = arith.constant 0 : index
    %67 = vector.load %arg15[%c0_27, %c0_28] : memref<384x512xbf16, #tpu.memory_space<vmem>>, vector<384x512xbf16>
    %cst_29 = arith.constant dense<0.000000e+00> : vector<16x512xf32>
    %68 = tpu.matmul %66, %67, %cst_29 {dimension_numbers = #tpu.dot_dimension_numbers<[1], [0], [0], [1], [0, 0, 1, 1], [], []>} : vector<16x384xbf16>, vector<384x512xbf16>, vector<16x512xf32> -> vector<16x512xf32>
    %c0_30 = arith.constant 0 : index
    %c0_31 = arith.constant 0 : index
    %69 = vector.load %arg16[%c0_30, %c0_31] : memref<1x512xf32, #tpu.memory_space<vmem>>, vector<1x512xf32>
    %70 = vector.broadcast %69 : vector<1x512xf32> to vector<16x512xf32>
    %71 = arith.addf %68, %70 : vector<16x512xf32>
    %cst_32 = arith.constant 0.000000e+00 : f32
    %72 = vector.broadcast %cst_32 : f32 to vector<16x512xf32>
    %73 = arith.maximumf %71, %72 : vector<16x512xf32>
    %74 = arith.truncf %73 : vector<16x512xf32> to vector<16x512xbf16>
    %cst_33 = arith.constant 0.000000e+00 : bf16
    %75 = vector.broadcast %cst_33 : bf16 to vector<1x512xbf16>
    %76 = tpu.concatenate %75, %74, %75 in 0 : vector<1x512xbf16>, vector<16x512xbf16>, vector<1x512xbf16> -> vector<18x512xbf16>
    %77 = vector.extract_strided_slice %76 {offsets = [0, 0], sizes = [16, 512], strides = [1, 1]} : vector<18x512xbf16> to vector<16x512xbf16>
    %78 = vector.extract_strided_slice %76 {offsets = [1, 0], sizes = [16, 512], strides = [1, 1]} : vector<18x512xbf16> to vector<16x512xbf16>
    %79 = vector.extract_strided_slice %76 {offsets = [2, 0], sizes = [16, 512], strides = [1, 1]} : vector<18x512xbf16> to vector<16x512xbf16>
    %80 = tpu.concatenate %77, %78, %79 in 1 : vector<16x512xbf16>, vector<16x512xbf16>, vector<16x512xbf16> -> vector<16x1536xbf16>
    %c0_34 = arith.constant 0 : index
    %c0_35 = arith.constant 0 : index
    %81 = vector.load %arg17[%c0_34, %c0_35] : memref<1536x128xbf16, #tpu.memory_space<vmem>>, vector<1536x128xbf16>
    %cst_36 = arith.constant dense<0.000000e+00> : vector<16x128xf32>
    %82 = tpu.matmul %80, %81, %cst_36 {dimension_numbers = #tpu.dot_dimension_numbers<[1], [0], [0], [1], [0, 0, 1, 1], [], []>} : vector<16x1536xbf16>, vector<1536x128xbf16>, vector<16x128xf32> -> vector<16x128xf32>
    %c0_37 = arith.constant 0 : index
    %c0_38 = arith.constant 0 : index
    %83 = vector.load %arg18[%c0_37, %c0_38] : memref<1x128xf32, #tpu.memory_space<vmem>>, vector<1x128xf32>
    %84 = vector.broadcast %83 : vector<1x128xf32> to vector<16x128xf32>
    %85 = arith.addf %82, %84 : vector<16x128xf32>
    %86 = arith.addf %35, %85 : vector<16x128xf32>
    %c0_39 = arith.constant 0 : index
    %c0_40 = arith.constant 0 : index
    %c0_41 = arith.constant 0 : index
    %87 = vector.load %arg19[%c0_39, %c0_40, %c0_41] : memref<1x16x128xf32, #tpu.memory_space<vmem>>, vector<1x16x128xf32>
    %88 = vector.shape_cast %87 : vector<1x16x128xf32> to vector<16x128xf32>
    %89 = vector.shape_cast %86 : vector<16x128xf32> to vector<1x16x128xf32>
    tpu.vector_store %arg19[%c0_39, %c0_40, %c0_41], %89 {strides = array<i32>} : memref<1x16x128xf32, #tpu.memory_space<vmem>>, vector<1x16x128xf32>,
    return
  }
  func.func @transform_0(%arg0: i32) -> (i32, i32, i32) {
    %c0_i32 = arith.constant 0 : i32
    %c0_i32_0 = arith.constant 0 : i32
    %c0_i32_1 = arith.constant 0 : i32
    return %arg0, %c0_i32, %c0_i32_0 : i32, i32, i32
  }
  func.func @transform_1(%arg0: i32) -> (i32, i32, i32) {
    %c0_i32 = arith.constant 0 : i32
    %c0_i32_0 = arith.constant 0 : i32
    %c0_i32_1 = arith.constant 0 : i32
    return %arg0, %c0_i32, %c0_i32_0 : i32, i32, i32
  }
  func.func @transform_2(%arg0: i32) -> (i32, i32) {
    %c0_i32 = arith.constant 0 : i32
    %c0_i32_0 = arith.constant 0 : i32
    %c0_i32_1 = arith.constant 0 : i32
    return %c0_i32, %c0_i32_0 : i32, i32
  }
  func.func @transform_3(%arg0: i32) -> (i32, i32) {
    %c0_i32 = arith.constant 0 : i32
    %c0_i32_0 = arith.constant 0 : i32
    %c0_i32_1 = arith.constant 0 : i32
    return %c0_i32, %c0_i32_0 : i32, i32
  }
  func.func @transform_4(%arg0: i32) -> (i32, i32, i32) {
    %c0_i32 = arith.constant 0 : i32
    %c0_i32_0 = arith.constant 0 : i32
    %c0_i32_1 = arith.constant 0 : i32
    %c0_i32_2 = arith.constant 0 : i32
    return %c0_i32, %c0_i32_0, %c0_i32_1 : i32, i32, i32
  }
  func.func @transform_5(%arg0: i32) -> (i32, i32, i32) {
    %c0_i32 = arith.constant 0 : i32
    %c0_i32_0 = arith.constant 0 : i32
    %c0_i32_1 = arith.constant 0 : i32
    %c0_i32_2 = arith.constant 0 : i32
    return %c0_i32, %c0_i32_0, %c0_i32_1 : i32, i32, i32
  }
  func.func @transform_6(%arg0: i32) -> (i32, i32, i32) {
    %c0_i32 = arith.constant 0 : i32
    %c0_i32_0 = arith.constant 0 : i32
    %c0_i32_1 = arith.constant 0 : i32
    %c0_i32_2 = arith.constant 0 : i32
    return %c0_i32, %c0_i32_0, %c0_i32_1 : i32, i32, i32
  }
  func.func @transform_7(%arg0: i32) -> (i32, i32, i32) {
    %c0_i32 = arith.constant 0 : i32
    %c0_i32_0 = arith.constant 0 : i32
    %c0_i32_1 = arith.constant 0 : i32
    %c0_i32_2 = arith.constant 0 : i32
    return %c0_i32, %c0_i32_0, %c0_i32_1 : i32, i32, i32
  }
  func.func @transform_8(%arg0: i32) -> (i32, i32, i32) {
    %c0_i32 = arith.constant 0 : i32
    %c0_i32_0 = arith.constant 0 : i32
    %c0_i32_1 = arith.constant 0 : i32
    %c0_i32_2 = arith.constant 0 : i32
    return %c0_i32, %c0_i32_0, %c0_i32_1 : i32, i32, i32
  }
  func.func @transform_9(%arg0: i32) -> (i32, i32, i32) {
    %c0_i32 = arith.constant 0 : i32
    %c0_i32_0 = arith.constant 0 : i32
    %c0_i32_1 = arith.constant 0 : i32
    %c0_i32_2 = arith.constant 0 : i32
    return %c0_i32, %c0_i32_0, %c0_i32_1 : i32, i32, i32
  }
  func.func @transform_10(%arg0: i32) -> (i32, i32, i32) {
    %c0_i32 = arith.constant 0 : i32
    %c0_i32_0 = arith.constant 0 : i32
    %c0_i32_1 = arith.constant 0 : i32
    %c0_i32_2 = arith.constant 0 : i32
    return %c0_i32, %c0_i32_0, %c0_i32_1 : i32, i32, i32
  }
  func.func @transform_11(%arg0: i32) -> (i32, i32) {
    %c0_i32 = arith.constant 0 : i32
    %c0_i32_0 = arith.constant 0 : i32
    %c0_i32_1 = arith.constant 0 : i32
    return %c0_i32, %c0_i32_0 : i32, i32
  }
  func.func @transform_12(%arg0: i32) -> (i32, i32) {
    %c0_i32 = arith.constant 0 : i32
    %c0_i32_0 = arith.constant 0 : i32
    %c0_i32_1 = arith.constant 0 : i32
    return %c0_i32, %c0_i32_0 : i32, i32
  }
  func.func @transform_13(%arg0: i32) -> (i32, i32) {
    %c0_i32 = arith.constant 0 : i32
    %c0_i32_0 = arith.constant 0 : i32
    %c0_i32_1 = arith.constant 0 : i32
    return %c0_i32, %c0_i32_0 : i32, i32
  }
  func.func @transform_14(%arg0: i32) -> (i32, i32) {
    %c0_i32 = arith.constant 0 : i32
    %c0_i32_0 = arith.constant 0 : i32
    %c0_i32_1 = arith.constant 0 : i32
    return %c0_i32, %c0_i32_0 : i32, i32
  }
  func.func @transform_15(%arg0: i32) -> (i32, i32) {
    %c0_i32 = arith.constant 0 : i32
    %c0_i32_0 = arith.constant 0 : i32
    %c0_i32_1 = arith.constant 0 : i32
    return %c0_i32, %c0_i32_0 : i32, i32
  }
  func.func @transform_16(%arg0: i32) -> (i32, i32) {
    %c0_i32 = arith.constant 0 : i32
    %c0_i32_0 = arith.constant 0 : i32
    %c0_i32_1 = arith.constant 0 : i32
    return %c0_i32, %c0_i32_0 : i32, i32
  }
  func.func @transform_17(%arg0: i32) -> (i32, i32) {
    %c0_i32 = arith.constant 0 : i32
    %c0_i32_0 = arith.constant 0 : i32
    %c0_i32_1 = arith.constant 0 : i32
    return %c0_i32, %c0_i32_0 : i32, i32
  }
  func.func @transform_18(%arg0: i32) -> (i32, i32, i32) {
    %c0_i32 = arith.constant 0 : i32
    %c0_i32_0 = arith.constant 0 : i32
    %c0_i32_1 = arith.constant 0 : i32
    return %arg0, %c0_i32, %c0_i32_0 : i32, i32, i32
  }
  func.func @transform_19(%arg0: i32) -> (i32, i32, i32, i32) {
    %c0_i32 = arith.constant 0 : i32
    %c0_i32_0 = arith.constant 0 : i32
    %c0_i32_1 = arith.constant 0 : i32
    %c0_i32_2 = arith.constant 0 : i32
    return %arg0, %c0_i32, %c0_i32_0, %c0_i32_1 : i32, i32, i32, i32
  }
}

</mosaic_0001>

<bundles_post_ra>
// kernel: tpu_custom_call.1
= control target key start
LH: loop header
LB: loop body
LE: loop exit
PB: predicated region body
PF: predicated region fallthrough
CT: control target
= control target key end

     0   :  { %s5323_s0 = inlined_call_operand.vmem [shape: f32[2,16,128], index: 0, kind: input, shape index: {}]   ;;  %s5324_s1 = inlined_call_operand.vmem [shape: f32[2,1,16], index: 1, kind: input, shape index: {}]   ;;  %s5325_s2 = inlined_call_operand.vmem [shape: f32[1,128], index: 2, kind: input, shape index: {}]   ;;  %s5326_s3 = inlined_call_operand.vmem [shape: f32[1,128], index: 3, kind: input, shape index: {}]   ;;  %s5327_s4 = inlined_call_operand.vmem [shape: bf16[4,128,32], index: 4, kind: input, shape index: {}]   ;;  %s5328_s5 = inlined_call_operand.vmem [shape: f32[4,1,32], index: 5, kind: input, shape index: {}]   ;;  %s5329_s6 = inlined_call_operand.vmem [shape: bf16[4,128,32], index: 6, kind: input, shape index: {}]   ;;  %s5330_s7 = inlined_call_operand.vmem [shape: f32[4,1,32], index: 7, kind: input, shape index: {}]   ;;  %s5331_s8 = inlined_call_operand.vmem [shape: bf16[4,128,32], index: 8, kind: input, shape index: {}]   ;;  %s5332_s9 = inlined_call_operand.vmem [shape: f32[4,1,32], index: 9, kind: input, shape index: {}]   ;;  %s5333_s10 = inlined_call_operand.vmem [shape: bf16[4,32,128], index: 10, kind: input, shape index: {}]   ;;  %s5334_s11 = inlined_call_operand.vmem [shape: f32[1,128], index: 11, kind: input, shape index: {}]   ;;  %s5335_s12 = inlined_call_operand.vmem [shape: f32[1,128], index: 12, kind: input, shape index: {}]   ;;  %s5336_s13 = inlined_call_operand.vmem [shape: f32[1,128], index: 13, kind: input, shape index: {}]   ;;  %s5337_s14 = inlined_call_operand.vmem [shape: bf16[384,512], index: 14, kind: input, shape index: {}]   ;;  %s5338_s15 = inlined_call_operand.vmem [shape: f32[1,512], index: 15, kind: input, shape index: {}]   ;;  %s5339_s16 = inlined_call_operand.hbm [shape: bf16[1536,128], index: 16, kind: input, shape index: {}]   ;;  %s5340_s17 = inlined_call_operand.vmem [shape: f32[1,128], index: 17, kind: input, shape index: {}]   ;;  %s5341_s18 = inlined_call_operand.hbm [shape: f32[2,16,128], index: 18, kind: output, shape index: {0}]   ;;  %s5342_s19 = inlined_call_operand.hbm [shape: bf16[2,4,16,16], index: 19, kind: output, shape index: {1}]  }
   0x1   :  { %5349 = sst [smem:[#allocation17_spill]] %s5323_s0 }
   0x2   :  { %5350 = sst [smem:[#allocation18_spill]] %s5324_s1 }
   0x3   :  { %5351 = sst [smem:[#allocation19_spill]] %s5325_s2 }
   0x4   :  { %5352 = sst [smem:[#allocation20_spill]] %s5326_s3 }
   0x5   :  { %5353 = sst [smem:[#allocation21_spill]] %s5327_s4 }
   0x6   :  { %5354 = sst [smem:[#allocation22_spill]] %s5328_s5 }
   0x7   :  { %25 = vsyncpa [#allocation3], 0 }
   0x8   :  { %26 = vsyncpa [#allocation4], 0 }
   0x9   :  { %28 = vsyncpa [#allocation4 + $0x1], 0 }
   0xa   :  { %29 = vsyncpa [#allocation7], 0 }
   0xb   :  { %31 = vsyncpa [#allocation7 + $0x1], 0  ;;  %s4587_s0 = smov 0   ;;  %s4589_s30 = smov 0  }
   0xc   :  { %s4591_s20 = smov 0   ;;  %s4593_s21 = smov 0  }
   0xd LB: > { %5355 = sst [smem:[#allocation11_spill]] %s4448_s0  ;;  %s4608_s1 = sadd.s32 4294967295, %s4460_s21   ;;  %s4460_s21 = sphi %s4593_s21, %s5378_s21   ;;  %s4456_s20 = sphi %s4591_s20, %s5380_s20   ;;  %s4452_s30 = sphi %s4589_s30, %s5382_s30   ;;  %s4448_s0 = sphi %s4587_s0, %s5381_s0  }
   0xe   : > { %5356 = sst [smem:[#allocation12_spill]] %s4456_s20  ;;  %s3443_s22 = sadd.s32 4294967294, %s4460_s21  }
   0xf   : > { %5357 = sst [smem:[#allocation13_spill]] %s4460_s21  ;;  %s4612_s2 = sadd.s32 1, %s4460_s21  }
  0x10   : > { %5358 = sst [smem:[#allocation14_spill]] %s4612_s2  ;;  %s432_s23 = sadd.s32 1, %s4456_s20 }
  0x11   : > { %s429_s24 = ssub.s32 %s4460_s21, %s4612_s2  ;;  %p442_p0 = scmp.ne.s32.totalorder %s4456_s20, %s4452_s30 }
  0x12   : > { %p430_p1 = scmp.eq.s32.totalorder %s429_s24, 0  ;;  %p443_p2 = scmp.eq.s32.totalorder %s4608_s1, 1 }
  0x13   : > { %p448_p3 = scmp.ne.s32.totalorder %s4452_s30, %s4448_s0  ;;  %p449_p4 = scmp.eq.s32.totalorder %s3443_s22, 1 }
  0x14   : > { %s4623_s25 = scalar_select %p430_p1, %s4456_s20, %s432_s23  }
  0x15   : > { %p4625_p5 = por %p443_p2, %p442_p0  ;;  %p4629_p6 = por %p449_p4, %p448_p3 }
  0x16   : > { %5359 = sst [smem:[#allocation15_spill]] %s4623_s25  ;;  %p3444_p7 = scmp.ge.s32.totalorder %s4460_s21, 1 }
  0x17   : > { %s5361_s26 = scalar_select %p4629_p6, 1, 0 }
  0x18   : > { %p482_p8 = scmp.lt.s32.totalorder %s4460_s21, 3  ;;  %p3976_p9 = scmp.eq.s32.totalorder %s4608_s1, 0 }
  0x19   : > { %5362 = sst [smem:[#allocation16_spill]] %s5361_s26  ;;  %s4474_s28 = smov [#allocation2]  }
  0x1a   : > { %p4636_p10 = pnand %p3444_p7, %p482_p8  ;;  %s536_s29 = sshll.u32 %s4474_s28, 4  ;;  %s537_s29 = int_to_ptr.vmem [resolvable:$true] %s536_s29 }
  0x1b   : > { %s4339_s22 = scalar_lea.vmem %s537_s29, 12288  ;;  %p4347_p3 = scmp.lt.s32.totalorder %s537_s29, %s537_s29 }
  0x1c   : > { %p3965_p11 = pneg %p4636_p10  ;;  %p4340_p0 = scmp.ne.s32.totalorder %s537_s29, %s4339_s22 }
  0x1d   : > { %p4348_p4 = scmp.lt.s32.totalorder %s4339_s22, %s4339_s22 }
  0x1e   : > { %p3966_p12 = pnand %p3976_p9, %p3965_p11 }
  0x1f   : > { %p4349_p6 = por %p4348_p4, %p4347_p3 }
  0x20   : > { %p4330_p13 = pneg %p3966_p12 }
  0x22   : > { %p4342_p1 = pnand %p4340_p0, %p4330_p13 }
  0x24   : > { %p4343_p2 = pneg %p4342_p1 }
  0x26   : > { %p4350_p7 = pnand %p4349_p6, %p4343_p2 }
  0x28   : > { %4353 = shalt.err (!%p4350_p7)
}
  0x29   : > { %s4475_s23 = smov 64   ;;  %s4476_s24 = smov 4  }
  0x2a   : > { %3968 = dma.hbm_to_vmem [thread:$0]  (!%p3966_p12), %s5339_s16, 12288, %s537_s29, [#allocation3], %s4475_s23, %s4475_s23, %s4476_s24  }
  0x2b   : > { %569 = sbr.rel (%p4636_p10) target bundleno = 2408 (0x968), region = 92 }
  0x30   : > { %4435 = dma.done.wait (%p3976_p9), [#allocation3], 12288  }
  0x31   : > { %4437 = vsyncadd (%p3976_p9), [#allocation3], 4294955008  ;;  %p633_p8 = scmp.lt.s32.totalorder %s4608_s1, 1  ;;  %s5364_s0 = sld [smem:[#allocation18_spill]]  ;;  %v4688_v28 = vmov 0.0   ;;  %v4690_v29 = vmov 0.0  }
  0x32   : > { %s5365_s29 = sld [smem:[#allocation17_spill]] }
  0x33   : > { %s634_s28 = scalar_select %p633_p8, %s4608_s1, 1 }
  0x34   : > { %s5366_s24 = sld [smem:[#allocation19_spill]] }
  0x35   : > { %s3701_s22 = sshll.u32 %s634_s28, 4  ;;  %s5367_s20 = sld [smem:[#allocation20_spill]] }
  0x37   : > { %s640_s21 = scalar_lea.vmem %s5364_s0, %s634_s28  ;;  %s4672_s0 = sand.u32 1, %s4452_s30  }
  0x38   : > { %s637_s27 = scalar_lea.vmem %s5365_s29, %s3701_s22  ;;  %v4663_v1 = vld [vmem:[%s640_s21] sm:$0x1]  ;;  %s3449_s21 = sshll.u32 %s4672_s0, 4 }
  0x39   : > { %v4661_v0 = vld [vmem:[%s637_s27] sm:$0xff]  ;;  %v4666_v2 = vld [vmem:[%s637_s27 + $0x8] sm:$0xff]  ;;  %s3450_s2 = sshll.u32 %s4672_s0, 5  ;;  %s4684_s25 = scalar_lea.vmem [#allocation5], %s3449_s21 }
  0x3a   : > { %647 = vadd.xlane.f32.xlu0 %v4661_v0  ;;  %v3453_v19 = vld [vmem:[%s5366_s24] ss:$0 sm:$0xff]  ;;  %s4686_s29 = scalar_lea.vmem [#allocation6], %s3450_s2  ;;  %s4692_s27 = smov 0  }
  0x3b   : > { %v3454_v23 = vld [vmem:[%s5367_s20] ss:$0 sm:$0xff] }
  0x3e   : > { %649 = vadd.xlane.f32.xlu0 %v4666_v2 }
  0xc3   : > { %v648_v3 = vpop.xlane.xlu0 %647 }
  0xc4   : > { %v652_v4 = vmul.f32 0.0078125, %v648_v3 }
  0xc6   : > { %v654_v5 = vsub.f32 %v4661_v0, %v652_v4 }
  0xc7   : > { %v650_v6 = vpop.xlane.xlu0 %649 }
  0xc8   : > { %v653_v7 = vmul.f32 0.0078125, %v650_v6  ;;  %v656_v8 = vmul.f32 %v654_v5, %v654_v5 }
  0xca   : > { %v655_v9 = vsub.f32 %v4666_v2, %v653_v7  ;;  %658 = vadd.xlane.f32.xlu1 %v656_v8 }
  0xcc   : > { %v657_v10 = vmul.f32 %v655_v9, %v655_v9 }
  0xce   : > { %660 = vadd.xlane.f32.xlu1 %v657_v10 }
 0x153   : > { %v659_v11 = vpop.xlane.xlu1 %658 }
 0x154   : > { %v662_v12 = vmul.f32 0.0078125, %v659_v11 }
 0x156   : > { %v664_v13 = vadd.f32 1e-05, %v662_v12 }
 0x157   : > { %v661_v14 = vpop.xlane.xlu1 %660 }
 0x158   : > { %4046 = vrsqrt.f32 %v664_v13  ;;  %v663_v15 = vmul.f32 0.0078125, %v661_v14 }
 0x15a   : > { %v665_v16 = vadd.f32 1e-05, %v663_v15 }
 0x15c   : > { %4048 = vrsqrt.f32 %v665_v16 }
 0x165   : > { %v4047_v17 = vpop.eup %4046 }
 0x166   : > { %v668_v18 = vmul.f32 %v4047_v17, %v654_v5 }
 0x168   : > { %v676_v21 = vmul.f32 %v3453_v19, %v668_v18 }
 0x169   : > { %v4049_v20 = vpop.eup %4048 }
 0x16a   : > { %v669_v22 = vmul.f32 %v4049_v20, %v655_v9  ;;  %v684_v25 = vadd.f32 %v3454_v23, %v676_v21 }
 0x16c   : > { %v677_v24 = vmul.f32 %v3453_v19, %v669_v22 }
 0x16e   : > { %v685_v26 = vadd.f32 %v3454_v23, %v677_v24 }
 0x170   : > { %v4682_v27 = vpack.c.bf16 %v685_v26, %v684_v25 }
 0x171 LB: >> { %v4477_v30 = vmov 0.0   ;;  %s3702_s21 = sshll.u32 %s4472_s27, 6  ;;  %vm4478_vm0 = vmmov 0   ;;  %s5368_s4 = sld [smem:[#allocation21_spill]]  ;;  %vm1044_vm1 = vcmask 261120   ;;  %v1096_v11 = vlaneseq  ;;  %s4472_s27 = sphi %s4692_s27, %s692_s27   ;;  %v4468_v29 = vphi %v4690_v29, %v5371_v29   ;;  %v4464_v28 = vphi %v4688_v28, %v5370_v28  }
 0x172   : >> { %3897 = vmatprep.subr.bf16.mxu1 %v4477_v30  ;;  %3877 = vmatprep.subr.bf16.mxu0 %v4477_v30  ;;  %s4713_s23 = scalar_lea.vmem %s5329_s6, %s3702_s21  ;;  %s4738_s26 = scalar_lea.vmem %s5331_s8, %s3702_s21  ;;  %vm1094_vm2 = vcmp.gt.f32.partialorder %v4663_v1, 0.0  ;;  %v4479_v14 = vmov 0   ;;  %vm1103_vm4 = vcmask 130048   ;;  %vm1137_vm5 = vcmask 125952  }
 0x173   : >> { %3913 = vmatprep.mubr.msk.bf16.mxu1 %vm4478_vm0, %v4477_v30  ;;  %3893 = vmatprep.mubr.msk.bf16.mxu0 %vm4478_vm0, %v4477_v30  ;;  %v4050_v31 = vld [vmem:[%s4713_s23 + $0x38] sm:$0xff]   ;;  %v4052_v33 = vld [vmem:[%s4713_s23 + $0x30] sm:$0xff]   ;;  %v4054_v35 = vld [vmem:[%s4713_s23 + $0x28] sm:$0xff]   ;;  %s830_s24 = scalar_lea.vmem %s5330_s7, %s4472_s27  ;;  %s5369_s5 = sld [smem:[#allocation22_spill]]  ;;  %v4792_v12 = vshrl.u32 %v1096_v11, 7  ;;  %v1095_v15 = vsel %vm1094_vm2, 1, %v4479_v14 }
 0x174   : >> { %3898 = vmatpush3.bf16.msra.mxu1 %v4050_v31  ;;  %v4056_v37 = vld [vmem:[%s4713_s23 + $0x20] sm:$0xff]   ;;  %v4058_v39 = vld [vmem:[%s4713_s23 + $0x18] sm:$0xff]   ;;  %v4060_v41 = vld [vmem:[%s4713_s23 + $0x10] sm:$0xff]   ;;  %s3708_s28 = sshll.u32 %s4472_s27, 4 }
 0x175   : >> { %3899 = vmatprep.subr.bf16.mxu1 %v4477_v30  ;;  %v4062_v43 = vld [vmem:[%s4713_s23 + $0x8] sm:$0xff]   ;;  %v4064_v45 = vld [vmem:[%s4713_s23] sm:$0xff]   ;;  %v4066_v3 = vld [vmem:[%s4738_s26 + $0x38] sm:$0xff]   ;;  %v1098_v13 = vsub.s32 0, %v4792_v12  ;;  %s3707_s23 = sshll.u32 %s4472_s27, 3  ;;  %s1192_s2 = scalar_lea.vmem %s5333_s10, %s3708_s28 }
 0x176   : >> { %v3467_v49 = vld [vmem:[%s830_s24] ss:$0 sm:$0xff]  ;;  %v4067_v4 = vld [vmem:[%s4738_s26 + $0x30] sm:$0xff]   ;;  %v4068_v5 = vld [vmem:[%s4738_s26 + $0x28] sm:$0xff]   ;;  %s1136_s24 = scalar_lea.vmem %s4686_s29, %s3707_s23 [#allocation6] }
 0x177   : >> { %s4719_s22 = scalar_lea.vmem %s5368_s4, %s3702_s21  ;;  %v4069_v6 = vld [vmem:[%s4738_s26 + $0x20] sm:$0xff]   ;;  %v4070_v7 = vld [vmem:[%s4738_s26 + $0x18] sm:$0xff]   ;;  %v4071_v8 = vld [vmem:[%s4738_s26 + $0x10] sm:$0xff]   ;;  %v1099_v16 = vrot.slane %v1095_v15, %v1098_v13  ;;  %s946_s21 = scalar_lea.vmem %s5332_s9, %s4472_s27 }
 0x178   : >> { %v4051_v32 = vld [vmem:[%s4719_s22 + $0x38] sm:$0xff]   ;;  %v4053_v34 = vld [vmem:[%s4719_s22 + $0x30] sm:$0xff]   ;;  %3900 = vmatpush3.bf16.msra.mxu1 %v4052_v33  ;;  %v4055_v36 = vld [vmem:[%s4719_s22 + $0x28] sm:$0xff]  }
 0x179   : >> { %3878 = vmatpush3.bf16.msra.mxu0 %v4051_v32  ;;  %3901 = vmatprep.subr.bf16.mxu1 %v4477_v30  ;;  %v4057_v38 = vld [vmem:[%s4719_s22 + $0x20] sm:$0xff]   ;;  %v4059_v40 = vld [vmem:[%s4719_s22 + $0x18] sm:$0xff]   ;;  %v4061_v42 = vld [vmem:[%s4719_s22 + $0x10] sm:$0xff]   ;;  %s714_s20 = scalar_lea.vmem %s5369_s5, %s4472_s27  ;;  %vm1100_vm3 = vcmp.eq.s32.totalorder %v1099_v16, 1  ;;  %s692_s27 = sadd.s32 1, %s4472_s27  }
 0x17a   : >> { %3879 = vmatprep.subr.bf16.mxu0 %v4477_v30  ;;  %v4063_v44 = vld [vmem:[%s4719_s22 + $0x8] sm:$0xff]   ;;  %v4065_v46 = vld [vmem:[%s4719_s22] sm:$0xff]   ;;  %p689_p6 = scmp.ge.s32.totalorder %s692_s27, 4  }
 0x17b   : >> { %v3457_v59 = vld [vmem:[%s714_s20] ss:$0 sm:$0xff]  ;;  %v4072_v9 = vld [vmem:[%s4738_s26 + $0x8] sm:$0xff]   ;;  %v4084_v15 = vld [vmem:[%s5337_s14 + $0xe4] ss:$16 sps:$4 sm:$0xff] (%p689_p6)   ;;  %vm1316_vm6 = vcmask (%p689_p6), 1040384  }
 0x17c   : >> { %3902 = vmatpush3.bf16.msra.mxu1 %v4054_v35  ;;  %v4073_v10 = vld [vmem:[%s4738_s26] sm:$0xff]   ;;  %vm1317_vm7 = vsmask.f32 (%p689_p6), 256  ;;  %vm1337_vm9 = vcmask (%p689_p6), 1046528   ;;  %vm1321_vm10 = vsmask.f32 (%p689_p6), 7424 }
 0x17d   : >> { %3880 = vmatpush3.bf16.msra.mxu0 %v4053_v34  ;;  %3903 = vmatprep.subr.bf16.mxu1 %v4477_v30  ;;  %v4087_v1 = vld [vmem:[%s5337_s14 + $0xc4] ss:$16 sps:$4 sm:$0xff] (%p689_p6)   ;;  %vm5007_vm8 = vmand (%p689_p6), %vm1316_vm6, %vm1317_vm7  ;;  %s3304_s26 = sshll.u32 (%p689_p6), %s4686_s29, 4  ;;  %s3275_s23 = scalar_lea.sflag (%p689_p6), [#allocation7], %s4672_s0  ;;  %s5242_s26 = int_to_ptr.vmem [resolvable:$true] %s3304_s26 }
 0x17e   : >> { %3881 = vmatprep.subr.bf16.mxu0 %v4477_v30  ;;  %v4093_v16 = vld [vmem:[%s5337_s14 + $0x84] ss:$16 sps:$4 sm:$0xff] (%p689_p6)   ;;  %s4481_s27 = smov (%p689_p6), [#allocation6]  }
 0x17f   : > { %s4358_s28 = sshll.u32 (%p689_p6), %s4481_s27, 4  ;;  %s4359_s28 = int_to_ptr.vmem [resolvable:$false] %s4358_s28 }
 0x180   : >> { %3904 = vmatpush3.bf16.msra.mxu1 %v4056_v37  ;;  %s4360_s29 = scalar_lea.vmem (%p689_p6), %s4359_s28, 1024  ;;  %p4361_p12 = scmp.lt.s32.totalorder (%p689_p6), %s5242_s26, %s4359_s28 }
 0x181   : >> { %3882 = vmatpush3.bf16.msra.mxu0 %v4055_v36  ;;  %3905 = vmatprep.subr.bf16.mxu1 %v4477_v30 }
 0x182   : >> { %3883 = vmatprep.subr.bf16.mxu0 %v4477_v30 }
 0x184   : >> { %3906 = vmatpush3.bf16.msra.mxu1 %v4058_v39 }
 0x185   : >> { %3884 = vmatpush3.bf16.msra.mxu0 %v4057_v38  ;;  %3907 = vmatprep.subr.bf16.mxu1 %v4477_v30 }
 0x186   : >> { %3885 = vmatprep.subr.bf16.mxu0 %v4477_v30 }
 0x188   : >> { %3908 = vmatpush3.bf16.msra.mxu1 %v4060_v41 }
 0x189   : >> { %3886 = vmatpush3.bf16.msra.mxu0 %v4059_v40  ;;  %3909 = vmatprep.subr.bf16.mxu1 %v4477_v30 }
 0x18a   : >> { %3887 = vmatprep.subr.bf16.mxu0 %v4477_v30 }
 0x18c   : >> { %3910 = vmatpush3.bf16.msra.mxu1 %v4062_v43  ;;  %v3477_v43 = vld [vmem:[%s946_s21] ss:$0 sm:$0xff] }
 0x18d   : >> { %3888 = vmatpush3.bf16.msra.mxu0 %v4061_v42  ;;  %3911 = vmatprep.subr.bf16.mxu1 %v4477_v30 }
 0x18e   : >> { %3889 = vmatprep.subr.bf16.mxu0 %v4477_v30 }
 0x190   : >> { %3912 = vmatpush3.bf16.msra.mxu1 %v4064_v45 }
 0x191   : >> { %3890 = vmatpush3.bf16.msra.mxu0 %v4063_v44  ;;  %3937 = vmatprep.subr.bf16.mxu1 %v4477_v30 }
 0x192   : >> { %3891 = vmatprep.subr.bf16.mxu0 %v4477_v30 }
 0x193   : >> { %3914 = vmatmul.mubr.bf16.vlgmr.msra.gmra.mxu1 %v4682_v27 }
 0x194   : >> { %3939 = vmatprep.mubr.msk.bf16.mxu1 %vm4478_vm0, %v4477_v30 }
 0x195   : >> { %3892 = vmatpush3.bf16.msra.mxu0 %v4065_v46 }
 0x196   : >> { %3917 = vmatprep.subr.bf16.mxu0 %v4477_v30 }
 0x198   : >> { %3894 = vmatmul.mubr.bf16.vlgmr.msra.gmra.mxu0 %v4682_v27 }
 0x199   : >> { %3933 = vmatprep.mubr.msk.bf16.mxu0 %vm4478_vm0, %v4477_v30  ;;  %3918 = vmatpush3.bf16.msra.mxu0 %v4066_v3 }
 0x19a   : >> { %3919 = vmatprep.subr.bf16.mxu0 %v4477_v30 }
 0x19d   : >> { %3920 = vmatpush3.bf16.msra.mxu0 %v4067_v4 }
 0x19e   : >> { %3921 = vmatprep.subr.bf16.mxu0 %v4477_v30 }
 0x1a1   : >> { %3922 = vmatpush3.bf16.msra.mxu0 %v4068_v5 }
 0x1a2   : >> { %3923 = vmatprep.subr.bf16.mxu0 %v4477_v30 }
 0x1a5   : >> { %3924 = vmatpush3.bf16.msra.mxu0 %v4069_v6 }
 0x1a6   : >> { %3925 = vmatprep.subr.bf16.mxu0 %v4477_v30 }
 0x1a9   : >> { %3926 = vmatpush3.bf16.msra.mxu0 %v4070_v7 }
 0x1aa   : >> { %3927 = vmatprep.subr.bf16.mxu0 %v4477_v30 }
 0x1ad   : >> { %3928 = vmatpush3.bf16.msra.mxu0 %v4071_v8 }
 0x1ae   : >> { %3929 = vmatprep.subr.bf16.mxu0 %v4477_v30 }
 0x1b1   : >> { %3930 = vmatpush3.bf16.msra.mxu0 %v4072_v9 }
 0x1b2   : >> { %3931 = vmatprep.subr.bf16.mxu0 %v4477_v30 }
 0x1b5   : >> { %3932 = vmatpush3.bf16.msra.mxu0 %v4073_v10 }
 0x1b6   : > { %1940 = vmatprep.subr.bf16.mxu0 (%p689_p6), %v4084_v15 }
 0x1b8   : >> { %3934 = vmatmul.mubr.bf16.vlgmr.msra.gmra.mxu0 %v4682_v27  ;;  %v4090_v27 = vld [vmem:[%s5337_s14 + $0xa4] ss:$16 sps:$4 sm:$0xff] (%p689_p6)  }
 0x253   : >> { %v920_v47 = vpop.f32.mrf.mxu1 }
 0x254   : >> { %v921_v53 = vadd.f32 %v3467_v49, %v920_v47 }
 0x255   : >> { %v3915_v50 = vpop.f32.mrf.mxu1 }
 0x257   : >> { %v923_v52 = vpop.f32.mrf.mxu1 }
 0x258   : >> { %v804_v48 = vpop.f32.mrf.mxu0  ;;  %v924_v54 = vadd.f32 %v3467_v49, %v923_v52 }
 0x259   : >> { %v3916_v56 = vpop.f32.mrf.mxu1  ;;  %v805_v61 = vadd.f32 %v3457_v59, %v804_v48 }
 0x25a   : >> { %v3895_v51 = vpop.f32.mrf.mxu0  ;;  %v927_v57 = vpack.c.bf16 %v924_v54, %v921_v53 }
 0x25c   : >> { %v807_v55 = vpop.f32.mrf.mxu0  ;;  %v1049_v60 = vsel %vm1044_vm1, %v927_v57, 0 }
 0x25d   : >> { %3938 = vmatpush3.bf16.xpose.msra.mxu1 %v1049_v60  ;;  %v808_v62 = vadd.f32 %v3457_v59, %v807_v55  ;;  %v4075_v59 = vld [vmem:[%s1192_s2] sm:$0xff]  }
 0x25e   : >> { %v3896_v58 = vpop.f32.mrf.mxu0  ;;  %3943 = vmatprep.subr.bf16.mxu1 %v4477_v30 }
 0x25f   : >> { %v811_v63 = vpack.c.bf16 %v808_v62, %v805_v61  ;;  %v4074_v58 = vld [vmem:[%s1192_s2 + $0x8] sm:$0xff]   ;;  %s3710_s2 = sshll.u32 (%p689_p6), %s4608_s1, 9 }
 0x260   : > { %s5240_s21 = scalar_lea.hbm (%p689_p6), %s5342_s19, %s3710_s2 }
 0x264   : >> { %3940 = vmatmul.mubr.msk.bf16.vlgmr.msra.gmra.mxu1 %vm1044_vm1, %v811_v63 }
 0x265   : >> { %3945 = vmatprep.mubr.msk.bf16.mxu1 %vm4478_vm0, %v4477_v30 }
 0x278   : >> { %v1036_v41 = vpop.f32.mrf.mxu0 }
 0x279   : >> { %v1037_v45 = vadd.f32 %v3477_v43, %v1036_v41  ;;  %v4113_v41 = vld [vmem:[%s5337_s14 + $0x1e4] ss:$16 sps:$4 sm:$0xff] (%p689_p6)  }
 0x27a   : >> { %v3935_v42 = vpop.f32.mrf.mxu0 }
 0x27b   : > { %v4115_v42 = vld [vmem:[%s5337_s14 + $0x2c0] ss:$16 sps:$4 sm:$0xff] (%p689_p6)  }
 0x27c   : >> { %v1039_v44 = vpop.f32.mrf.mxu0 }
 0x27d   : >> { %v1040_v47 = vadd.f32 %v3477_v43, %v1039_v44  ;;  %v4116_v43 = vld [vmem:[%s5337_s14 + $0x1e0] ss:$16 sps:$4 sm:$0xff] (%p689_p6)   ;;  %v4117_v44 = vld [vmem:[%s5337_s14 + $0x2a4] ss:$16 sps:$4 sm:$0xff] (%p689_p6)  }
 0x27e   : >> { %v3936_v46 = vpop.f32.mrf.mxu0 }
 0x27f   : >> { %v1043_v48 = vpack.c.bf16 %v1040_v47, %v1037_v45  ;;  %v4119_v45 = vld [vmem:[%s5337_s14 + $0x1c4] ss:$16 sps:$4 sm:$0xff] (%p689_p6)   ;;  %v4121_v46 = vld [vmem:[%s5337_s14 + $0x2a0] ss:$16 sps:$4 sm:$0xff] (%p689_p6)  }
 0x280   : > { %v4122_v47 = vld [vmem:[%s5337_s14 + $0x1c0] ss:$16 sps:$4 sm:$0xff] (%p689_p6)  }
 0x281   : >> { %3944 = vmatpush3.bf16.msra.mxu1 %v1043_v48  ;;  %v4123_v48 = vld [vmem:[%s5337_s14 + $0x284] ss:$16 sps:$4 sm:$0xff] (%p689_p6)  }
 0x282   : >> { %3949 = vmatprep.subr.bf16.mxu1 %v4477_v30 }
 0x324   : >> { %v1085_v17 = vpop.f32.mrf.mxu1 }
 0x325   : >> { %v1092_v18 = vmul.f32 0.17677669, %v1085_v17  ;;  %v4095_v17 = vld [vmem:[%s5337_s14 + $0x80] ss:$16 sps:$4 sm:$0xff] (%p689_p6)  }
 0x326   : >> { %v3941_v19 = vpop.f32.mrf.mxu1 }
 0x327   : >> { %v1101_v20 = vsel %vm1100_vm3, %v1092_v18, -1e+09  ;;  %v4096_v18 = vld [vmem:[%s5337_s14 + $0x64] ss:$16 sps:$4 sm:$0xff] (%p689_p6)   ;;  %v4098_v19 = vld [vmem:[%s5337_s14 + $0x60] ss:$16 sps:$4 sm:$0xff] (%p689_p6)  }
 0x328   : >> { %v1088_v21 = vpop.f32.mrf.mxu1  ;;  %v1104_v22 = vsel %vm1103_vm4, %v1101_v20, -inf }
 0x329   : >> { %v1093_v23 = vmul.f32 0.17677669, %v1088_v21  ;;  %1105 = vmax.xlane.f32.xlu0 %v1104_v22 }
 0x32a   : >> { %v3942_v24 = vpop.f32.mrf.mxu1 }
 0x32b   : >> { %v1102_v25 = vsel %vm1100_vm3, %v1093_v23, -1e+09 }
 0x32c   : >> { %v1107_v26 = vsel %vm1103_vm4, %v1102_v25, -inf }
 0x32d   : >> { %1108 = vmax.xlane.f32.xlu0 %v1107_v26 }
 0x3b2   : >> { %v1106_v31 = vpop.xlane.xlu0 %1105 }
 0x3b3   : >> { %v1110_v32 = vsub.f32 %v1101_v20, %v1106_v31 }
 0x3b5   : >> { %v1112_v33 = vmul.f32 1.442695, %v1110_v32  ;;  %v4099_v32 = vld [vmem:[%s5337_s14 + $0x44] ss:$16 sps:$4 sm:$0xff] (%p689_p6)  }
 0x3b6   : >> { %v1109_v34 = vpop.xlane.xlu0 %1108 }
 0x3b7   : >> { %4076 = vpow2.f32 %v1112_v33  ;;  %v1111_v35 = vsub.f32 %v1102_v25, %v1109_v34  ;;  %v4101_v33 = vld [vmem:[%s5337_s14 + $0x40] ss:$16 sps:$4 sm:$0xff] (%p689_p6)   ;;  %v4102_v34 = vld [vmem:[%s5337_s14 + $0x24] ss:$16 sps:$4 sm:$0xff] (%p689_p6)  }
 0x3b9   : >> { %v1114_v36 = vmul.f32 1.442695, %v1111_v35  ;;  %v4104_v35 = vld [vmem:[%s5337_s14 + $0x20] ss:$16 sps:$4 sm:$0xff] (%p689_p6)  }
 0x3bb   : >> { %4078 = vpow2.f32 %v1114_v36  ;;  %v4105_v36 = vld [vmem:[%s5337_s14 + $0x2e4] ss:$16 sps:$4 sm:$0xff] (%p689_p6)  }
 0x3c4   : >> { %v4077_v37 = vpop.eup %4076 }
 0x3c5   : >> { %v1116_v38 = vsel %vm1103_vm4, %v4077_v37, 0.0 }
 0x3c6   : >> { %1117 = vadd.xlane.f32.xlu1 %v1116_v38  ;;  %v4109_v38 = vld [vmem:[%s5337_s14 + $0x2e0] ss:$16 sps:$4 sm:$0xff] (%p689_p6)  }
 0x3c8   : >> { %v4079_v39 = vpop.eup %4078 }
 0x3c9   : >> { %v1119_v40 = vsel %vm1103_vm4, %v4079_v39, 0.0 }
 0x3ca   : >> { %1120 = vadd.xlane.f32.xlu1 %v1119_v40  ;;  %v4111_v40 = vld [vmem:[%s5337_s14 + $0x2c4] ss:$16 sps:$4 sm:$0xff] (%p689_p6)  }
 0x44f   : >> { %v1118_v49 = vpop.xlane.xlu1 %1117 }
 0x450   : >> { %4080 = vrcp.f32 %v1118_v49  ;;  %v4125_v49 = vld [vmem:[%s5337_s14 + $0x1a4] ss:$16 sps:$4 sm:$0xff] (%p689_p6)  }
 0x453   : >> { %v1121_v50 = vpop.xlane.xlu1 %1120 }
 0x454   : >> { %4082 = vrcp.f32 %v1121_v50  ;;  %v4127_v50 = vld [vmem:[%s5337_s14 + $0x280] ss:$16 sps:$4 sm:$0xff] (%p689_p6)  }
 0x45d   : >> { %v4081_v51 = vpop.eup %4080 }
 0x45e   : >> { %v1124_v52 = vmul.f32 %v4081_v51, %v4077_v37  ;;  %v4107_v37 = vld [vmem:[%s5337_s14 + $0x4] ss:$16 sps:$4 sm:$0xff] (%p689_p6)   ;;  %v4128_v51 = vld [vmem:[%s5337_s14 + $0x1a0] ss:$16 sps:$4 sm:$0xff] (%p689_p6)  }
 0x460   : >> { %v3705_v53 = vpack.c.bf16 %v1124_v52, %v1124_v52 }
 0x461   : >> { %v4083_v54 = vpop.eup %4082 }
 0x462   : >> { %v1125_v55 = vmul.f32 %v4083_v54, %v4079_v39  ;;  %1138 = vst.msk [vmem:[%s1136_s24] sm:$0xf] %vm1137_vm5, %v3705_v53  ;;  %v4110_v39 = vld [vmem:[%s5337_s14] ss:$16 sps:$4 sm:$0xff] (%p689_p6)   ;;  %v4131_v53 = vld [vmem:[%s5337_s14 + $0x184] ss:$16 sps:$4 sm:$0xff] (%p689_p6)  }
 0x463   : > { %v4133_v54 = vld [vmem:[%s5337_s14 + $0x260] ss:$16 sps:$4 sm:$0xff] (%p689_p6)  }
 0x464   : >> { %v3706_v56 = vpack.c.bf16 %v1125_v55, %v1125_v55  ;;  %v1144_v57 = vpack.c.bf16 %v1125_v55, %v1124_v52  ;;  %v4129_v52 = vld [vmem:[%s5337_s14 + $0x264] ss:$16 sps:$4 sm:$0xff] (%p689_p6)   ;;  %v4134_v55 = vld [vmem:[%s5337_s14 + $0x180] ss:$16 sps:$4 sm:$0xff] (%p689_p6)  }
 0x466   : >> { %1139 = vst.msk [vmem:[%s1136_s24 + $0x4] sm:$0xf] %vm1137_vm5, %v3706_v56  ;;  %3946 = vmatmul.mubr.msk.bf16.vlgmr.msra.gmra.mxu1 %vm1103_vm4, %v1144_v57  ;;  %v4135_v56 = vld [vmem:[%s5337_s14 + $0x244] ss:$16 sps:$4 sm:$0xff] (%p689_p6)   ;;  %s4354_s24 = scalar_lea.vmem (%p689_p6), %s5242_s26, 512 }
 0x467   : >> { %3953 = vmatprep.mubr.msk.bf16.mxu1 %vm4478_vm0, %v4477_v30  ;;  %3950 = vmatpush3.bf16.msra.mxu1 %v4074_v58  ;;  %v4137_v57 = vld [vmem:[%s5337_s14 + $0x164] ss:$16 sps:$4 sm:$0xff] (%p689_p6)   ;;  %v4139_v58 = vld [vmem:[%s5337_s14 + $0x240] ss:$16 sps:$4 sm:$0xff] (%p689_p6)   ;;  %p4355_p9 = scmp.ne.s32.totalorder (%p689_p6), %s5242_s26, %s4354_s24  ;;  %p4362_p13 = scmp.lt.s32.totalorder (%p689_p6), %s4360_s29, %s4354_s24 }
 0x468   : >> { %3951 = vmatprep.subr.bf16.mxu1 %v4477_v30 }
 0x469   : > { %p4356_p10 = pnand (%p689_p6), %p4355_p9, %p4625_p5  ;;  %p4363_p0 = por (%p689_p6), %p4362_p13, %p4361_p12 }
 0x46b   : >> { %3952 = vmatpush3.bf16.msra.mxu1 %v4075_v59  ;;  %v4140_v59 = vld [vmem:[%s5337_s14 + $0x160] ss:$16 sps:$4 sm:$0xff] (%p689_p6)   ;;  %p4357_p11 = pneg (%p689_p6), %p4356_p10 }
 0x46c   : > { %1983 = vmatprep.subr.bf16.mxu1 (%p689_p6), %v4105_v36 }
 0x46d   : > { %p4364_p1 = pnand (%p689_p6), %p4363_p0, %p4357_p11 }
 0x526   : >> { %v1182_v60 = vpop.f32.mrf.mxu1 }
 0x528   : >> { %v3947_v61 = vpop.f32.mrf.mxu1 }
 0x529   : > { %v4143_v61 = vld [vmem:[%s5337_s14 + $0x144] ss:$16 sps:$4 sm:$0xff] (%p689_p6)  }
 0x52a   : >> { %v1185_v62 = vpop.f32.mrf.mxu1 }
 0x52b   : >> { %v1189_v63 = vpack.c.bf16 %v1185_v62, %v1182_v60  ;;  %v4141_v60 = vld [vmem:[%s5337_s14 + $0x224] ss:$16 sps:$4 sm:$0xff] (%p689_p6)   ;;  %v4145_v62 = vld [vmem:[%s5337_s14 + $0x220] ss:$16 sps:$4 sm:$0xff] (%p689_p6)  }
 0x52c   : >> { %v3948_v3 = vpop.f32.mrf.mxu1 }
 0x52d   : >> { %3954 = vmatmul.mubr.msk.bf16.vlgmr.msra.gmra.mxu1 %vm1044_vm1, %v1189_v63  ;;  %v4480_v63 = vmov (%p689_p6), 0   ;;  %v4146_v3 = vld [vmem:[%s5337_s14 + $0x140] ss:$16 sps:$4 sm:$0xff] (%p689_p6)  }
 0x52e   : > { %1984 = vmatpush1.bf16.msra.mxu1 (%p689_p6), %v4109_v38  ;;  %2015 = vmatprep.mubr.bf16.mxu1 (%p689_p6), %v4480_v63 }
 0x52f   : > { %1985 = vmatprep.subr.bf16.mxu1 (%p689_p6), %v4111_v40 }
 0x532   : > { %1986 = vmatpush1.bf16.msra.mxu1 (%p689_p6), %v4115_v42  ;;  %v4161_v42 = vld [vmem:[%s5337_s14 + $0xcc] ss:$16 sps:$4 sm:$0xff] (%p689_p6)  }
 0x533   : > { %1987 = vmatprep.subr.bf16.mxu1 (%p689_p6), %v4117_v44 }
 0x536   : > { %1988 = vmatpush1.bf16.msra.mxu1 (%p689_p6), %v4121_v46  ;;  %v4159_v46 = vld [vmem:[%s5337_s14 + $0xc8] ss:$16 sps:$4 sm:$0xff] (%p689_p6)  }
 0x537   : > { %1989 = vmatprep.subr.bf16.mxu1 (%p689_p6), %v4123_v48 }
 0x53a   : > { %1990 = vmatpush1.bf16.msra.mxu1 (%p689_p6), %v4127_v50  ;;  %v4167_v50 = vld [vmem:[%s5337_s14 + $0xac] ss:$16 sps:$4 sm:$0xff] (%p689_p6)  }
 0x53b   : > { %1991 = vmatprep.subr.bf16.mxu1 (%p689_p6), %v4129_v52  ;;  %v4170_v52 = vld [vmem:[%s5337_s14 + $0x2cc] ss:$16 sps:$4 sm:$0xff] (%p689_p6)  }
 0x53e   : > { %1992 = vmatpush1.bf16.msra.mxu1 (%p689_p6), %v4133_v54  ;;  %v4168_v54 = vld [vmem:[%s5337_s14 + $0x2c8] ss:$16 sps:$4 sm:$0xff] (%p689_p6)  }
 0x53f   : > { %1993 = vmatprep.subr.bf16.mxu1 (%p689_p6), %v4135_v56  ;;  %v4176_v56 = vld [vmem:[%s5337_s14 + $0x2ac] ss:$16 sps:$4 sm:$0xff] (%p689_p6)  }
 0x542   : > { %1994 = vmatpush1.bf16.msra.mxu1 (%p689_p6), %v4139_v58  ;;  %v4174_v58 = vld [vmem:[%s5337_s14 + $0x2a8] ss:$16 sps:$4 sm:$0xff] (%p689_p6)  }
 0x543   : > { %1995 = vmatprep.subr.bf16.mxu1 (%p689_p6), %v4141_v60  ;;  %v4182_v60 = vld [vmem:[%s5337_s14 + $0x28c] ss:$16 sps:$4 sm:$0xff] (%p689_p6)  }
 0x546   : > { %1996 = vmatpush1.bf16.msra.mxu1 (%p689_p6), %v4145_v62  ;;  %v4180_v62 = vld [vmem:[%s5337_s14 + $0x288] ss:$16 sps:$4 sm:$0xff] (%p689_p6)  }
 0x5ed   : >> { %v1246_v4 = vpop.f32.mrf.mxu1 }
 0x5ee   : >> { %v1253_v5 = vadd.f32 %v4468_v29, %v1246_v4   ;;  %v4147_v4 = vld [vmem:[%s5337_s14 + $0x204] ss:$16 sps:$4 sm:$0xff] (%p689_p6)  }
 0x5ef   : >> { %v3955_v6 = vpop.f32.mrf.mxu1  ;;  %1997 = vmatprep.subr.bf16.mxu1 (%p689_p6), %v4147_v4  ;;  %v4183_v4 = vld [vmem:[%s5337_s14 + $0x48] ss:$16 sps:$4 sm:$0xff] (%p689_p6)  }
 0x5f0   : >> { %v5371_v29 = vmov %v1253_v5  ;;  %691 = sbr.rel (!%p689_p6) target bundleno = 369 (0x171), region = 167  ;;  %v1255_v30 = vadd.f32 (%p689_p6), %v1253_v5, %v4661_v0  ;;  %v4086_v0 = vld [vmem:[%s5337_s14 + $0xe0] ss:$16 sps:$4 sm:$0xff] (%p689_p6)   ;;  %v4149_v5 = vld [vmem:[%s5337_s14 + $0x124] ss:$16 sps:$4 sm:$0xff] (%p689_p6)  }
 0x5f1   : >> { %v1249_v7 = vpop.f32.mrf.mxu1  ;;  %v3497_v29 = vld [vmem:[%s5334_s11] ss:$0 sm:$0xff] (%p689_p6)  ;;  %1941 = vmatpush1.bf16.msra.mxu0 (%p689_p6), %v4086_v0 }
 0x5f2   : >> { %v1254_v8 = vadd.f32 %v4464_v28, %v1249_v7   ;;  %v4832_v11 = vadd.f32 (%p689_p6), %v3497_v29, %v1255_v30  ;;  %1942 = vmatprep.subr.bf16.mxu0 (%p689_p6), %v4087_v1  ;;  %v4151_v6 = vld [vmem:[%s5337_s14 + $0x200] ss:$16 sps:$4 sm:$0xff] (%p689_p6)  }
 0x5f3   : >> { %v3956_v9 = vpop.f32.mrf.mxu1  ;;  %v4152_v7 = vld [vmem:[%s5337_s14 + $0x120] ss:$16 sps:$4 sm:$0xff] (%p689_p6)   ;;  %1998 = vmatpush1.bf16.msra.mxu1 (%p689_p6), %v4151_v6  ;;  %v4191_v6 = vld [vmem:[%s5337_s14 + $0x2c] ss:$16 sps:$4 sm:$0xff] (%p689_p6)  }
 0x5f4   : >> { %v5370_v28 = vmov %v1254_v8  ;;  %v1256_v10 = vadd.f32 (%p689_p6), %v1254_v8, %v4666_v2  ;;  %1268 = vadd.xlane.f32.xlu0 (%p689_p6), %v4832_v11  ;;  %v4089_v2 = vld [vmem:[%s5337_s14 + $0xc0] ss:$16 sps:$4 sm:$0xff] (%p689_p6)   ;;  %v4155_v8 = vld [vmem:[%s5337_s14 + $0xec] ss:$16 sps:$4 sm:$0xff] (%p689_p6)   ;;  %v4156_v9 = vld [vmem:[%s5337_s14 + $0x104] ss:$16 sps:$4 sm:$0xff] (%p689_p6)  }
 0x5f5   : > { %v4092_v28 = vld [vmem:[%s5337_s14 + $0xa0] ss:$16 sps:$4 sm:$0xff]   ;;  %1943 = vmatpush1.bf16.msra.mxu0 %v4089_v2  ;;  %2026 = vmatprep.subr.bf16.mxu1 %v4155_v8  ;;  %v4189_v8 = vld [vmem:[%s5337_s14 + $0x28] ss:$16 sps:$4 sm:$0xff]  }
 0x5f6   : > { %v4835_v14 = vadd.f32 %v3497_v29, %v1256_v10  ;;  %1944 = vmatprep.subr.bf16.mxu0 %v4090_v27  ;;  %v4158_v30 = vld [vmem:[%s5337_s14 + $0x100] ss:$16 sps:$4 sm:$0xff]   ;;  %v4164_v29 = vld [vmem:[%s5337_s14 + $0x2ec] ss:$16 sps:$4 sm:$0xff]  }
 0x5f8   : > { %1270 = vadd.xlane.f32.xlu0 %v4835_v14 }
 0x5f9   : > { %1945 = vmatpush1.bf16.msra.mxu0 %v4092_v28 }
 0x5fa   : > { %1946 = vmatprep.subr.bf16.mxu0 %v4093_v16 }
 0x5fd   : > { %1947 = vmatpush1.bf16.msra.mxu0 %v4095_v17  ;;  %v3498_v17 = vld [vmem:[%s5335_s12] ss:$0 sm:$0xff] }
 0x5fe   : > { %1948 = vmatprep.subr.bf16.mxu0 %v4096_v18 }
 0x601   : > { %1949 = vmatpush1.bf16.msra.mxu0 %v4098_v19 }
 0x602   : > { %1950 = vmatprep.subr.bf16.mxu0 %v4099_v32 }
 0x605   : > { %1951 = vmatpush1.bf16.msra.mxu0 %v4101_v33 }
 0x606   : > { %1952 = vmatprep.subr.bf16.mxu0 %v4102_v34 }
 0x609   : > { %1953 = vmatpush1.bf16.msra.mxu0 %v4104_v35 }
 0x60a   : > { %1954 = vmatprep.subr.bf16.mxu0 %v4107_v37  ;;  %v4153_v37 = vld [vmem:[%s5337_s14 + $0xe8] ss:$16 sps:$4 sm:$0xff]  }
 0x60d   : > { %1955 = vmatpush1.bf16.msra.mxu0 %v4110_v39 }
 0x60e   : > { %1956 = vmatprep.subr.bf16.mxu0 %v4113_v41 }
 0x611   : > { %1957 = vmatpush2.bf16.msra.mxu0 %v4116_v43 }
 0x612   : > { %1958 = vmatprep.subr.bf16.mxu0 %v4119_v45 }
 0x615   : > { %1959 = vmatpush2.bf16.msra.mxu0 %v4122_v47 }
 0x616   : > { %1960 = vmatprep.subr.bf16.mxu0 %v4125_v49  ;;  %v4162_v49 = vld [vmem:[%s5337_s14 + $0x2e8] ss:$16 sps:$4 sm:$0xff]  }
 0x619   : > { %1961 = vmatpush2.bf16.msra.mxu0 %v4128_v51 }
 0x61a   : > { %1962 = vmatprep.subr.bf16.mxu0 %v4131_v53  ;;  %v4165_v53 = vld [vmem:[%s5337_s14 + $0xa8] ss:$16 sps:$4 sm:$0xff]  }
 0x61d   : > { %1963 = vmatpush2.bf16.msra.mxu0 %v4134_v55  ;;  %v4173_v55 = vld [vmem:[%s5337_s14 + $0x8c] ss:$16 sps:$4 sm:$0xff]  }
 0x61e   : > { %1964 = vmatprep.subr.bf16.mxu0 %v4137_v57  ;;  %v4171_v57 = vld [vmem:[%s5337_s14 + $0x88] ss:$16 sps:$4 sm:$0xff]  }
 0x621   : > { %1965 = vmatpush2.bf16.msra.mxu0 %v4140_v59  ;;  %v4179_v59 = vld [vmem:[%s5337_s14 + $0x6c] ss:$16 sps:$4 sm:$0xff]  }
 0x622   : > { %1966 = vmatprep.subr.bf16.mxu0 %v4143_v61  ;;  %v4177_v61 = vld [vmem:[%s5337_s14 + $0x68] ss:$16 sps:$4 sm:$0xff]  }
 0x625   : > { %1967 = vmatpush2.bf16.msra.mxu0 %v4146_v3  ;;  %v4188_v3 = vld [vmem:[%s5337_s14 + $0x26c] ss:$16 sps:$4 sm:$0xff]  }
 0x626   : > { %1968 = vmatprep.subr.bf16.mxu0 %v4149_v5  ;;  %v4186_v5 = vld [vmem:[%s5337_s14 + $0x268] ss:$16 sps:$4 sm:$0xff]  }
 0x629   : > { %1969 = vmatpush2.bf16.msra.mxu0 %v4152_v7  ;;  %v4194_v7 = vld [vmem:[%s5337_s14 + $0x24c] ss:$16 sps:$4 sm:$0xff]  }
 0x62a   : > { %1970 = vmatprep.subr.bf16.mxu0 %v4156_v9  ;;  %v4192_v9 = vld [vmem:[%s5337_s14 + $0x248] ss:$16 sps:$4 sm:$0xff]  }
 0x62d   : > { %1971 = vmatpush2.bf16.msra.mxu0 %v4158_v30  ;;  %v4197_v30 = vld [vmem:[%s5337_s14 + $0xc] ss:$16 sps:$4 sm:$0xff]  }
 0x62e   : > { %2069 = vmatprep.subr.bf16.mxu0 %v4164_v29  ;;  %v4200_v29 = vld [vmem:[%s5337_s14 + $0x22c] ss:$16 sps:$4 sm:$0xff]  }
 0x67d   : > { %v1269_v20 = vpop.xlane.xlu0 %1268 }
 0x67e   : > { %v1272_v21 = vmul.f32 0.0078125, %v1269_v20 }
 0x680   : > { %v4869_v22 = vsub.f32 %v4832_v11, %v1272_v21  ;;  %v3499_v21 = vld [vmem:[%s5336_s13] ss:$0 sm:$0xff] }
 0x681   : > { %v1271_v23 = vpop.xlane.xlu0 %1270 }
 0x682   : > { %v1273_v24 = vmul.f32 0.0078125, %v1271_v23  ;;  %v1276_v25 = vmul.f32 %v4869_v22, %v4869_v22 }
 0x684   : > { %v4874_v26 = vsub.f32 %v4835_v14, %v1273_v24  ;;  %1278 = vadd.xlane.f32.xlu1 %v1276_v25 }
 0x686   : > { %v1277_v31 = vmul.f32 %v4874_v26, %v4874_v26 }
 0x688   : > { %1280 = vadd.xlane.f32.xlu1 %v1277_v31 }
 0x70d   : > { %v1279_v10 = vpop.xlane.xlu1 %1278 }
 0x70e   : > { %v1282_v15 = vmul.f32 0.0078125, %v1279_v10  ;;  %v4195_v10 = vld [vmem:[%s5337_s14 + $0x8] ss:$16 sps:$4 sm:$0xff]  }
 0x710   : > { %v1284_v0 = vadd.f32 1e-05, %v1282_v15  ;;  %v4198_v15 = vld [vmem:[%s5337_s14 + $0x228] ss:$16 sps:$4 sm:$0xff]  }
 0x711   : > { %v1281_v1 = vpop.xlane.xlu1 %1280 }
 0x712   : > { %4324 = vrsqrt.f32 %v1284_v0  ;;  %v1283_v2 = vmul.f32 0.0078125, %v1281_v1  ;;  %v4203_v0 = vld [vmem:[%s5337_s14 + $0x1ec] ss:$16 sps:$4 sm:$0xff]  }
 0x713   : > { %v4206_v1 = vld [vmem:[%s5337_s14 + $0x20c] ss:$16 sps:$4 sm:$0xff]  }
 0x714   : > { %v1285_v27 = vadd.f32 1e-05, %v1283_v2  ;;  %v4201_v2 = vld [vmem:[%s5337_s14 + $0x1e8] ss:$16 sps:$4 sm:$0xff]  }
 0x716   : > { %4326 = vrsqrt.f32 %v1285_v27  ;;  %v4204_v27 = vld [vmem:[%s5337_s14 + $0x208] ss:$16 sps:$4 sm:$0xff]  }
 0x71f   : > { %v4325_v28 = vpop.eup %4324 }
 0x720   : > { %v1288_v16 = vmul.f32 %v4325_v28, %v4869_v22  ;;  %v4209_v28 = vld [vmem:[%s5337_s14 + $0x1cc] ss:$16 sps:$4 sm:$0xff]  }
 0x722   : > { %v1296_v20 = vmul.f32 %v3498_v17, %v1288_v16  ;;  %v4228_v16 = vld [vmem:[#allocation2 + $0x78] sm:$0xff]  }
 0x723   : > { %v4327_v18 = vpop.eup %4326 }
 0x724   : > { %v1289_v19 = vmul.f32 %v4327_v18, %v4874_v26  ;;  %v1304_v24 = vadd.f32 %v3499_v21, %v1296_v20  ;;  %v4212_v18 = vld [vmem:[%s5337_s14 + $0x1ac] ss:$16 sps:$4 sm:$0xff]   ;;  %v4230_v20 = vld [vmem:[#allocation2 + $0x70] sm:$0xff]  }
 0x726   : > { %v1297_v23 = vmul.f32 %v3498_v17, %v1289_v19  ;;  %v4207_v17 = vld [vmem:[%s5337_s14 + $0x1c8] ss:$16 sps:$4 sm:$0xff]  }
 0x727   : > { %v4229_v19 = vld [vmem:[#allocation2 + $0x38] sm:$0xff]  }
 0x728   : > { %v1305_v25 = vadd.f32 %v3499_v21, %v1297_v23  ;;  %v4210_v21 = vld [vmem:[%s5337_s14 + $0x1a8] ss:$16 sps:$4 sm:$0xff]   ;;  %v4215_v23 = vld [vmem:[%s5337_s14 + $0x18c] ss:$16 sps:$4 sm:$0xff]  }
 0x72a   : > { %v1306_v31 = vpack.c.bf16 %v1305_v25, %v1304_v24  ;;  %v4213_v24 = vld [vmem:[%s5337_s14 + $0x188] ss:$16 sps:$4 sm:$0xff]   ;;  %v4218_v25 = vld [vmem:[%s5337_s14 + $0x16c] ss:$16 sps:$4 sm:$0xff]  }
 0x72c   : > { %v1308_v32 = vshrl.u32 %v1306_v31, 16  ;;  %v1311_v34 = vshll.u32 %v1306_v31, 16  ;;  %v4216_v31 = vld [vmem:[%s5337_s14 + $0x168] ss:$16 sps:$4 sm:$0xff]  }
 0x72e   : > { %v1310_v33 = vrot.slane %v1308_v32, 7  ;;  %v4221_v32 = vld [vmem:[%s5337_s14 + $0x14c] ss:$16 sps:$4 sm:$0xff]  }
 0x730   : > { %v1313_v35 = vor.u32 %v1311_v34, %v1310_v33  ;;  %v1320_v26 = vsel %vm5007_vm8, %v1310_v33, 0  ;;  %v4219_v33 = vld [vmem:[%s5337_s14 + $0x148] ss:$16 sps:$4 sm:$0xff]   ;;  %v4224_v34 = vld [vmem:[%s5337_s14 + $0x12c] ss:$16 sps:$4 sm:$0xff]  }
 0x731   : > { %v1339_v39 = vrot.slane %v1320_v26, 1  ;;  %v1330_v41 = vshll.u32 %v1320_v26, 16  ;;  %v4227_v26 = vld [vmem:[%s5337_s14 + $0x10c] ss:$16 sps:$4 sm:$0xff]  }
 0x732   : > { %v5015_v36 = vsel %vm5007_vm8, 0, %v1313_v35  ;;  %v4222_v35 = vld [vmem:[%s5337_s14 + $0x128] ss:$16 sps:$4 sm:$0xff]  }
 0x733   : > { %v1338_v38 = vrot.slane %v5015_v36, 1  ;;  %v1325_v40 = vshll.u32 %v5015_v36, 16  ;;  %v1323_v44 = vshrl.u32 %v5015_v36, 16  ;;  %v1332_v48 = vrot.slane %v1330_v41, 1  ;;  %v4234_v41 = vld [vmem:[#allocation2 + $0x60] sm:$0xff]  }
 0x735   : > { %v5026_v43 = vsel %vm1337_vm9, %v1338_v38, %v1339_v39  ;;  %v1327_v45 = vrot.slane %v1325_v40, 1  ;;  %v4231_v38 = vld [vmem:[#allocation2 + $0x30] sm:$0xff]   ;;  %v4232_v39 = vld [vmem:[#allocation2 + $0x68] sm:$0xff]  }
 0x736   : > { %2016 = vmatmul.mubr.bf16.vlgmr.msra.gmra.mxu1 %v5026_v43  ;;  %v4233_v40 = vld [vmem:[#allocation2 + $0x28] sm:$0xff]  }
 0x737   : > { %2027 = vmatpush1.bf16.msra.mxu1 %v4153_v37  ;;  %v1328_v47 = vor.u32 %v1327_v45, %v1323_v44  ;;  %v4225_v37 = vld [vmem:[%s5337_s14 + $0x108] ss:$16 sps:$4 sm:$0xff]   ;;  %v4238_v45 = vld [vmem:[#allocation2 + $0x50] sm:$0xff]  }
 0x738   : > { %2028 = vmatprep.subr.bf16.mxu1 %v4161_v42  ;;  %v4235_v42 = vld [vmem:[#allocation2 + $0x20] sm:$0xff]   ;;  %v4237_v44 = vld [vmem:[#allocation2 + $0x18] sm:$0xff]  }
 0x739   : > { %v1333_v51 = vsel %vm1321_vm10, %v1328_v47, %v1332_v48  ;;  %v4240_v47 = vld [vmem:[#allocation2 + $0x48] sm:$0xff]  }
 0x73a   : > { %1972 = vmatprep.mubr.bf16.mxu0 %v1333_v51  ;;  %2058 = vmatprep.mubr.bf16.mxu1 %v1333_v51  ;;  %v4241_v48 = vld [vmem:[#allocation2 + $0x8] sm:$0xff]   ;;  %v4258_v51 = vld [vmem:[#allocation2 + $0xf8] sm:$0xff]  }
 0x73b   : > { %2029 = vmatpush1.bf16.msra.mxu1 %v4159_v46  ;;  %1973 = vmatmul.mubr.bf16.vlgmr.msra.gmra.mxu0 %v5015_v36  ;;  %v4239_v46 = vld [vmem:[#allocation2 + $0x10] sm:$0xff]  }
 0x73c   : > { %2070 = vmatpush1.bf16.msra.mxu0 %v4162_v49  ;;  %2030 = vmatprep.subr.bf16.mxu1 %v4167_v50  ;;  %v4243_v49 = vld [vmem:[#allocation2] sm:$0xff]   ;;  %v4244_v50 = vld [vmem:[#allocation2 + $0x178] sm:$0xff]  }
 0x73d   : > { %2071 = vmatprep.subr.bf16.mxu0 %v4170_v52  ;;  %2101 = vmatprep.mubr.bf16.mxu0 %v4480_v63  ;;  %v4185_v63 = vld [vmem:[%s5337_s14 + $0x4c] ss:$16 sps:$4 sm:$0xff]  }
 0x73e   : > { %v4259_v52 = vld [vmem:[#allocation2 + $0xb8] sm:$0xff]  }
 0x73f   : > { %2031 = vmatpush1.bf16.msra.mxu1 %v4165_v53  ;;  %v4262_v53 = vld [vmem:[#allocation2 + $0xf0] sm:$0xff]  }
 0x740   : > { %2072 = vmatpush1.bf16.msra.mxu0 %v4168_v54  ;;  %2032 = vmatprep.subr.bf16.mxu1 %v4173_v55  ;;  %v4263_v54 = vld [vmem:[#allocation2 + $0xb0] sm:$0xff]   ;;  %v4266_v55 = vld [vmem:[#allocation2 + $0xe8] sm:$0xff]  }
 0x741   : > { %2073 = vmatprep.subr.bf16.mxu0 %v4176_v56  ;;  %v4267_v56 = vld [vmem:[#allocation2 + $0xa8] sm:$0xff]  }
 0x743   : > { %2033 = vmatpush1.bf16.msra.mxu1 %v4171_v57  ;;  %v4270_v57 = vld [vmem:[#allocation2 + $0xe0] sm:$0xff]  }
 0x744   : > { %2074 = vmatpush1.bf16.msra.mxu0 %v4174_v58  ;;  %2034 = vmatprep.subr.bf16.mxu1 %v4179_v59  ;;  %v4271_v58 = vld [vmem:[#allocation2 + $0xa0] sm:$0xff]   ;;  %v4274_v59 = vld [vmem:[#allocation2 + $0xd8] sm:$0xff]  }
 0x745   : > { %2075 = vmatprep.subr.bf16.mxu0 %v4182_v60  ;;  %v4275_v60 = vld [vmem:[#allocation2 + $0x98] sm:$0xff]  }
 0x747   : > { %2035 = vmatpush1.bf16.msra.mxu1 %v4177_v61  ;;  %v4278_v61 = vld [vmem:[#allocation2 + $0xd0] sm:$0xff]  }
 0x748   : > { %2076 = vmatpush1.bf16.msra.mxu0 %v4180_v62  ;;  %2036 = vmatprep.subr.bf16.mxu1 %v4185_v63  ;;  %v4279_v62 = vld [vmem:[#allocation2 + $0x90] sm:$0xff]   ;;  %v4282_v63 = vld [vmem:[#allocation2 + $0xc8] sm:$0xff]  }
 0x749   : > { %2077 = vmatprep.subr.bf16.mxu0 %v4188_v3  ;;  %v4283_v3 = vld [vmem:[#allocation2 + $0x88] sm:$0xff]  }
 0x74b   : > { %2037 = vmatpush1.bf16.msra.mxu1 %v4183_v4  ;;  %v4286_v4 = vld [vmem:[#allocation2 + $0xc0] sm:$0xff]  }
 0x74c   : > { %2078 = vmatpush1.bf16.msra.mxu0 %v4186_v5  ;;  %2038 = vmatprep.subr.bf16.mxu1 %v4191_v6  ;;  %v4287_v5 = vld [vmem:[#allocation2 + $0x80] sm:$0xff]   ;;  %v4290_v6 = vld [vmem:[#allocation2 + $0x1f8] sm:$0xff]  }
 0x74d   : > { %2079 = vmatprep.subr.bf16.mxu0 %v4194_v7  ;;  %v5170_v7 = vld [vmem:[%s5338_s15] sm:$0xf] }
 0x74f   : > { %2039 = vmatpush1.bf16.msra.mxu1 %v4189_v8  ;;  %v1446_v8 = vsub.s32 1, %v4792_v12 }
 0x750   : > { %2080 = vmatpush1.bf16.msra.mxu0 %v4192_v9  ;;  %2040 = vmatprep.subr.bf16.mxu1 %v4197_v30  ;;  %v1443_v30 = vrot.slane %v5170_v7, %v1098_v13 }
 0x751   : > { %2081 = vmatprep.subr.bf16.mxu0 %v4200_v29  ;;  %v1447_v29 = vrot.slane %v5170_v7, %v1446_v8 }
 0x753   : > { %2041 = vmatpush1.bf16.msra.mxu1 %v4195_v10 }
 0x754   : > { %2082 = vmatpush1.bf16.msra.mxu0 %v4198_v15  ;;  %2042 = vmatprep.subr.bf16.mxu1 %v4203_v0 }
 0x755   : > { %2083 = vmatprep.subr.bf16.mxu0 %v4206_v1 }
 0x757   : > { %2043 = vmatpush2.bf16.msra.mxu1 %v4201_v2 }
 0x758   : > { %2084 = vmatpush1.bf16.msra.mxu0 %v4204_v27  ;;  %2044 = vmatprep.subr.bf16.mxu1 %v4209_v28 }
 0x759   : > { %3745 = vmatprep.subr.bf16.mxu0 %v4228_v16 }
 0x75b   : > { %2045 = vmatpush2.bf16.msra.mxu1 %v4207_v17  ;;  %2102 = vmatmul.mubr.bf16.vlgmr.msra.gmra.mxu0 %v5026_v43  ;;  %v4236_v43 = vld [vmem:[#allocation2 + $0x58] sm:$0xff]  }
 0x75c   : > { %2046 = vmatprep.subr.bf16.mxu1 %v4212_v18  ;;  %3746 = vmatpush3.bf16.msra.mxu0 %v4229_v19 }
 0x75d   : > { %3747 = vmatprep.subr.bf16.mxu0 %v4230_v20 }
 0x75f   : > { %2047 = vmatpush2.bf16.msra.mxu1 %v4210_v21 }
 0x760   : > { %2048 = vmatprep.subr.bf16.mxu1 %v4215_v23  ;;  %3748 = vmatpush3.bf16.msra.mxu0 %v4231_v38 }
 0x761   : > { %3749 = vmatprep.subr.bf16.mxu0 %v4232_v39 }
 0x763   : > { %2049 = vmatpush2.bf16.msra.mxu1 %v4213_v24 }
 0x764   : > { %2050 = vmatprep.subr.bf16.mxu1 %v4218_v25  ;;  %3750 = vmatpush3.bf16.msra.mxu0 %v4233_v40 }
 0x765   : > { %3751 = vmatprep.subr.bf16.mxu0 %v4234_v41 }
 0x767   : > { %2051 = vmatpush2.bf16.msra.mxu1 %v4216_v31 }
 0x768   : > { %2052 = vmatprep.subr.bf16.mxu1 %v4221_v32  ;;  %3752 = vmatpush3.bf16.msra.mxu0 %v4235_v42 }
 0x769   : > { %3753 = vmatprep.subr.bf16.mxu0 %v4236_v43 }
 0x76b   : > { %2053 = vmatpush2.bf16.msra.mxu1 %v4219_v33 }
 0x76c   : > { %2054 = vmatprep.subr.bf16.mxu1 %v4224_v34  ;;  %3754 = vmatpush3.bf16.msra.mxu0 %v4237_v44  ;;  %v4245_v44 = vld [vmem:[#allocation2 + $0x138] sm:$0xff]  }
 0x76d   : > { %3755 = vmatprep.subr.bf16.mxu0 %v4238_v45 }
 0x76f   : > { %2055 = vmatpush2.bf16.msra.mxu1 %v4222_v35 }
 0x770   : > { %2056 = vmatprep.subr.bf16.mxu1 %v4227_v26  ;;  %3756 = vmatpush3.bf16.msra.mxu0 %v4239_v46  ;;  %v4246_v46 = vld [vmem:[#allocation2 + $0x170] sm:$0xff]  }
 0x771   : > { %3757 = vmatprep.subr.bf16.mxu0 %v4240_v47 }
 0x773   : > { %2057 = vmatpush2.bf16.msra.mxu1 %v4225_v37 }
 0x774   : > { %3758 = vmatpush3.bf16.msra.mxu0 %v4241_v48  ;;  %3767 = vmatprep.subr.bf16.mxu1 %v4258_v51  ;;  %v4247_v51 = vld [vmem:[#allocation2 + $0x130] sm:$0xff]  }
 0x776   : > { %2059 = vmatmul.mubr.bf16.vlgmr.msra.gmra.mxu1 %v5015_v36  ;;  %v4242_v36 = vld [vmem:[#allocation2 + $0x40] sm:$0xff]  }
 0x777   : > { %3759 = vmatprep.subr.bf16.mxu0 %v4242_v36  ;;  %3768 = vmatpush3.bf16.msra.mxu1 %v4259_v52  ;;  %v4248_v52 = vld [vmem:[#allocation2 + $0x168] sm:$0xff]  }
 0x778   : > { %3760 = vmatpush3.bf16.msra.mxu0 %v4243_v49  ;;  %3769 = vmatprep.subr.bf16.mxu1 %v4262_v53 }
 0x779   : > { %3789 = vmatprep.subr.bf16.mxu0 %v4244_v50 }
 0x77b   : > { %3770 = vmatpush3.bf16.msra.mxu1 %v4263_v54 }
 0x77c   : > { %3771 = vmatprep.subr.bf16.mxu1 %v4266_v55 }
 0x77f   : > { %3772 = vmatpush3.bf16.msra.mxu1 %v4267_v56  ;;  %v4249_v56 = vld [vmem:[#allocation2 + $0x128] sm:$0xff]  }
 0x780   : > { %3773 = vmatprep.subr.bf16.mxu1 %v4270_v57  ;;  %v4250_v57 = vld [vmem:[#allocation2 + $0x160] sm:$0xff]  }
 0x783   : > { %3774 = vmatpush3.bf16.msra.mxu1 %v4271_v58  ;;  %v4251_v58 = vld [vmem:[#allocation2 + $0x120] sm:$0xff]  }
 0x784   : > { %3775 = vmatprep.subr.bf16.mxu1 %v4274_v59  ;;  %v4252_v59 = vld [vmem:[#allocation2 + $0x158] sm:$0xff]  }
 0x787   : > { %3776 = vmatpush3.bf16.msra.mxu1 %v4275_v60  ;;  %v4253_v60 = vld [vmem:[#allocation2 + $0x118] sm:$0xff]  }
 0x788   : > { %3777 = vmatprep.subr.bf16.mxu1 %v4278_v61  ;;  %v4254_v61 = vld [vmem:[#allocation2 + $0x150] sm:$0xff]  }
 0x78b   : > { %3778 = vmatpush3.bf16.msra.mxu1 %v4279_v62  ;;  %v4255_v62 = vld [vmem:[#allocation2 + $0x110] sm:$0xff]  }
 0x78c   : > { %3779 = vmatprep.subr.bf16.mxu1 %v4282_v63  ;;  %v4256_v63 = vld [vmem:[#allocation2 + $0x148] sm:$0xff]  }
 0x78f   : > { %3780 = vmatpush3.bf16.msra.mxu1 %v4283_v3 }
 0x790   : > { %3781 = vmatprep.subr.bf16.mxu1 %v4286_v4  ;;  %v4257_v4 = vld [vmem:[#allocation2 + $0x108] sm:$0xff]  }
 0x793   : > { %3782 = vmatpush3.bf16.msra.mxu1 %v4287_v5  ;;  %v4260_v5 = vld [vmem:[#allocation2 + $0x140] sm:$0xff]  }
 0x794   : > { %3811 = vmatprep.subr.bf16.mxu1 %v4290_v6 }
 0x7f6   : > { %v2017_v9 = vpop.f32.mrf.mxu1 }
 0x7f8   : > { %v2019_v10 = vpop.f32.mrf.mxu1 }
 0x7fa   : > { %v2021_v27 = vpop.f32.mrf.mxu1 }
 0x7fb   : > { %v1974_v15 = vpop.f32.mrf.mxu0 }
 0x7fc   : > { %v1975_v0 = vadd.f32 %v1974_v15, %v1443_v30  ;;  %v2023_v23 = vpop.f32.mrf.mxu1 }
 0x7fd   : > { %v1976_v1 = vpop.f32.mrf.mxu0 }
 0x7fe   : > { %v1977_v2 = vadd.f32 %v1976_v1, %v1447_v29  ;;  %v2018_v16 = vadd.f32 %v2017_v9, %v1975_v0 }
 0x7ff   : > { %v1978_v28 = vpop.f32.mrf.mxu0 }
 0x800   : > { %v1979_v17 = vadd.f32 %v1978_v28, %v1443_v30  ;;  %v2020_v19 = vadd.f32 %v2019_v10, %v1977_v2  ;;  %v2112_v24 = vmax.f32 %v2018_v16, 0.0  ;;  %v4261_v30 = vld [vmem:[#allocation2 + $0x100] sm:$0xff]   ;;  %v4264_v10 = vld [vmem:[#allocation2 + $0x278] sm:$0xff]   ;;  %v4268_v16 = vld [vmem:[#allocation2 + $0x270] sm:$0xff]  }
 0x801   : > { %v1980_v18 = vpop.f32.mrf.mxu0  ;;  %v4265_v2 = vld [vmem:[#allocation2 + $0x238] sm:$0xff]  }
 0x802   : > { %v2022_v20 = vadd.f32 %v2021_v27, %v1979_v17  ;;  %v1981_v21 = vadd.f32 %v1980_v18, %v1447_v29  ;;  %v2113_v13 = vmax.f32 %v2020_v19, 0.0  ;;  %v1450_v27 = vsub.s32 2, %v4792_v12 }
 0x803   : > { %v1454_v18 = vsub.s32 3, %v4792_v12  ;;  %v4276_v12 = vld [vmem:[#allocation2 + $0x260] sm:$0xff]  }
 0x804   : > { %v2116_v25 = vmax.f32 %v2022_v20, 0.0  ;;  %v2024_v31 = vadd.f32 %v2023_v23, %v1981_v21  ;;  %v1451_v21 = vrot.slane %v5170_v7, %v1450_v27  ;;  %v4269_v23 = vld [vmem:[#allocation2 + $0x230] sm:$0xff]  }
 0x806   : > { %v2120_v32 = vpack.c.bf16 %v2116_v25, %v2112_v24  ;;  %v2117_v33 = vmax.f32 %v2024_v31, 0.0  ;;  %v4272_v24 = vld [vmem:[#allocation2 + $0x268] sm:$0xff]   ;;  %v1455_v25 = vrot.slane %v5170_v7, %v1454_v18 }
 0x807   : > { %v4296_v18 = vld [vmem:[#allocation2 + $0x1e8] sm:$0xff]  }
 0x808   : > { %v2125_v34 = vshrl.u32 %v2120_v32, 16  ;;  %v2121_v35 = vpack.c.bf16 %v2117_v33, %v2113_v13  ;;  %v2128_v38 = vshll.u32 %v2120_v32, 16  ;;  %v4273_v33 = vld [vmem:[#allocation2 + $0x228] sm:$0xff]  }
 0x80a   : > { %v2132_v26 = vshrl.u32 %v2121_v35, 16  ;;  %v2127_v37 = vrot.slane %v2125_v34, 7  ;;  %v2135_v39 = vshll.u32 %v2121_v35, 16 }
 0x80c   : > { %v2134_v40 = vrot.slane %v2132_v26, 7  ;;  %v2130_v41 = vor.u32 %v2128_v38, %v2127_v37  ;;  %v5193_v6 = vsel %vm5007_vm8, %v2127_v37, 0 }
 0x80d   : > { %v2176_v29 = vshll.u32 %v5193_v6, 16 }
 0x80e   : > { %v2137_v42 = vor.u32 %v2135_v39, %v2134_v40  ;;  %v5179_v43 = vsel %vm5007_vm8, %v2134_v40, 0  ;;  %v5185_v48 = vsel %vm5007_vm8, 0, %v2130_v41  ;;  %v4277_v40 = vld [vmem:[#allocation2 + $0x220] sm:$0xff]  }
 0x80f   : > { %v2188_v36 = vshll.u32 %v5179_v43, 16  ;;  %v2171_v3 = vshll.u32 %v5185_v48, 16  ;;  %v2169_v9 = vshrl.u32 %v5185_v48, 16  ;;  %v2178_v1 = vrot.slane %v2176_v29, 1  ;;  %v4293_v29 = vld [vmem:[#allocation2 + $0x200] sm:$0xff]  }
 0x810   : > { %v2161_v45 = vsel %vm5007_vm8, 0, %v2137_v42  ;;  %v2232_v28 = vrot.slane %v5179_v43, 1  ;;  %v4280_v42 = vld [vmem:[#allocation2 + $0x258] sm:$0xff]  }
 0x811   : > { %v2183_v47 = vshll.u32 %v2161_v45, 16  ;;  %3051 = vmatprep.mubr.bf16.mxu0 %v2161_v45  ;;  %v2181_v49 = vshrl.u32 %v2161_v45, 16  ;;  %v2190_v54 = vrot.slane %v2188_v36, 1  ;;  %v2173_v8 = vrot.slane %v2171_v3, 1 }
 0x812   : > { %3052 = vmatmul.mubr.bf16.vlgmr.msra.gmra.mxu0 %v5185_v48  ;;  %v2231_v0 = vrot.slane %v2161_v45, 1 }
 0x813   : > { %v2185_v50 = vrot.slane %v2183_v47, 1  ;;  %3790 = vmatpush3.bf16.msra.mxu0 %v4245_v44  ;;  %v2174_v15 = vor.u32 %v2173_v8, %v2169_v9  ;;  %v4291_v9 = vld [vmem:[#allocation2 + $0x1b8] sm:$0xff]  }
 0x814   : > { %3791 = vmatprep.subr.bf16.mxu0 %v4246_v46  ;;  %v2233_v20 = vsel %vm1337_vm9, %v2231_v0, %v2232_v28 }
 0x815   : > { %v2186_v53 = vor.u32 %v2185_v50, %v2181_v49  ;;  %v2179_v17 = vsel %vm1321_vm10, %v2174_v15, %v2178_v1  ;;  %v4281_v49 = vld [vmem:[#allocation2 + $0x218] sm:$0xff]   ;;  %v4284_v50 = vld [vmem:[#allocation2 + $0x250] sm:$0xff]  }
 0x817   : > { %3792 = vmatpush3.bf16.msra.mxu0 %v4247_v51  ;;  %v2191_v55 = vsel %vm1321_vm10, %v2186_v53, %v2190_v54 }
 0x818   : > { %3133 = vmatprep.mubr.bf16.mxu0 %v2191_v55  ;;  %3793 = vmatprep.subr.bf16.mxu0 %v4248_v52 }
 0x81b   : > { %3794 = vmatpush3.bf16.msra.mxu0 %v4249_v56  ;;  %v2103_v19 = vpop.f32.mrf.mxu0  ;;  %v4285_v56 = vld [vmem:[#allocation2 + $0x210] sm:$0xff]  }
 0x81c   : > { %3795 = vmatprep.subr.bf16.mxu0 %v4250_v57  ;;  %v4288_v57 = vld [vmem:[#allocation2 + $0x248] sm:$0xff]  }
 0x81d   : > { %v2105_v31 = vpop.f32.mrf.mxu0 }
 0x81f   : > { %3796 = vmatpush3.bf16.msra.mxu0 %v4251_v58  ;;  %v2107_v26 = vpop.f32.mrf.mxu0 }
 0x820   : > { %3797 = vmatprep.subr.bf16.mxu0 %v4252_v59 }
 0x821   : > { %v2109_v45 = vpop.f32.mrf.mxu0 }
 0x823   : > { %3798 = vmatpush3.bf16.msra.mxu0 %v4253_v60 }
 0x824   : > { %3799 = vmatprep.subr.bf16.mxu0 %v4254_v61 }
 0x827   : > { %3800 = vmatpush3.bf16.msra.mxu0 %v4255_v62  ;;  %v4289_v62 = vld [vmem:[#allocation2 + $0x208] sm:$0xff]  }
 0x828   : > { %3801 = vmatprep.subr.bf16.mxu0 %v4256_v63 }
 0x82b   : > { %3802 = vmatpush3.bf16.msra.mxu0 %v4257_v4  ;;  %v4292_v4 = vld [vmem:[#allocation2 + $0x240] sm:$0xff]  }
 0x82c   : > { %3803 = vmatprep.subr.bf16.mxu0 %v4260_v5 }
 0x82f   : > { %3804 = vmatpush3.bf16.msra.mxu0 %v4261_v30 }
 0x830   : > { %3833 = vmatprep.subr.bf16.mxu0 %v4264_v10  ;;  %v4294_v10 = vld [vmem:[#allocation2 + $0x1f0] sm:$0xff]  }
 0x832   : > { %3134 = vmatmul.mubr.bf16.vlgmr.msra.gmra.mxu0 %v2179_v17  ;;  %v2229_v17 = vrot.slane %v5193_v6, 1  ;;  %v4302_v6 = vld [vmem:[#allocation2 + $0x1d0] sm:$0xff]  }
 0x833   : > { %3834 = vmatpush3.bf16.msra.mxu0 %v4265_v2  ;;  %3215 = vmatprep.mubr.bf16.mxu0 %v2233_v20  ;;  %v2228_v2 = vrot.slane %v5185_v48, 1 }
 0x834   : > { %3835 = vmatprep.subr.bf16.mxu0 %v4268_v16  ;;  %v4295_v16 = vld [vmem:[#allocation2 + $0x1b0] sm:$0xff]  }
 0x836   : > { %v2060_v13 = vpop.f32.mrf.mxu1 }
 0x837   : > { %v2061_v32 = vadd.f32 %v2060_v13, %v1451_v21  ;;  %3836 = vmatpush3.bf16.msra.mxu0 %v4269_v23  ;;  %v4297_v23 = vld [vmem:[#allocation2 + $0x1a8] sm:$0xff]   ;;  %v4301_v13 = vld [vmem:[#allocation2 + $0x198] sm:$0xff]  }
 0x838   : > { %v2062_v34 = vpop.f32.mrf.mxu1  ;;  %3837 = vmatprep.subr.bf16.mxu0 %v4272_v24  ;;  %v4298_v24 = vld [vmem:[#allocation2 + $0x1e0] sm:$0xff]  }
 0x839   : > { %v2063_v35 = vadd.f32 %v2062_v34, %v1455_v25  ;;  %v2104_v38 = vadd.f32 %v2103_v19, %v2061_v32  ;;  %v4303_v32 = vld [vmem:[#allocation2 + $0x190] sm:$0xff]  }
 0x83a   : > { %v2064_v37 = vpop.f32.mrf.mxu1 }
 0x83b   : > { %v2065_v39 = vadd.f32 %v2064_v37, %v1451_v21  ;;  %3838 = vmatpush3.bf16.msra.mxu0 %v4273_v33  ;;  %v2106_v43 = vadd.f32 %v2105_v31, %v2063_v35  ;;  %v2114_v46 = vmax.f32 %v2104_v38, 0.0  ;;  %v2230_v21 = vsel %vm1337_vm9, %v2228_v2, %v2229_v17  ;;  %v4300_v31 = vld [vmem:[#allocation2 + $0x1d8] sm:$0xff]   ;;  %v4304_v33 = vld [vmem:[#allocation2 + $0x1c8] sm:$0xff]   ;;  %v4306_v35 = vld [vmem:[#allocation2 + $0x1c0] sm:$0xff]  }
 0x83c   : > { %v2066_v41 = vpop.f32.mrf.mxu1  ;;  %3839 = vmatprep.subr.bf16.mxu0 %v4276_v12  ;;  %v4305_v12 = vld [vmem:[#allocation2 + $0x188] sm:$0xff]  }
 0x83d   : > { %v2108_v7 = vadd.f32 %v2107_v26, %v2065_v39  ;;  %v2067_v44 = vadd.f32 %v2066_v41, %v1455_v25  ;;  %v2115_v51 = vmax.f32 %v2106_v43, 0.0  ;;  %v4299_v25 = vld [vmem:[#allocation2 + $0x1a0] sm:$0xff]   ;;  %v4308_v41 = vld [vmem:[#allocation2 + $0x2f8] sm:$0xff]  }
 0x83e   : > { %v4307_v39 = vld [vmem:[#allocation2 + $0x180] sm:$0xff]  }
 0x83f   : > { %v2118_v47 = vmax.f32 %v2108_v7, 0.0  ;;  %v2110_v36 = vadd.f32 %v2109_v45, %v2067_v44  ;;  %3840 = vmatpush3.bf16.msra.mxu0 %v4277_v40  ;;  %v4309_v44 = vld [vmem:[#allocation2 + $0x2b8] sm:$0xff]  }
 0x840   : > { %3841 = vmatprep.subr.bf16.mxu0 %v4280_v42 }
 0x841   : > { %v2122_v52 = vpack.c.bf16 %v2118_v47, %v2114_v46  ;;  %v2119_v53 = vmax.f32 %v2110_v36, 0.0  ;;  %v4310_v46 = vld [vmem:[#allocation2 + $0x2f0] sm:$0xff]  }
 0x842   : > { %v4311_v36 = vld [vmem:[#allocation2 + $0x2b0] sm:$0xff]  }
 0x843   : > { %v2139_v54 = vshrl.u32 %v2122_v52, 16  ;;  %v2123_v55 = vpack.c.bf16 %v2119_v53, %v2115_v51  ;;  %3842 = vmatpush3.bf16.msra.mxu0 %v4281_v49  ;;  %v2142_v60 = vshll.u32 %v2122_v52, 16  ;;  %v4312_v49 = vld [vmem:[#allocation2 + $0x2e8] sm:$0xff]   ;;  %v4314_v51 = vld [vmem:[#allocation2 + $0x2e0] sm:$0xff]   ;;  %v4316_v53 = vld [vmem:[#allocation2 + $0x2d8] sm:$0xff]  }
 0x844   : > { %3843 = vmatprep.subr.bf16.mxu0 %v4284_v50  ;;  %v4313_v50 = vld [vmem:[#allocation2 + $0x2a8] sm:$0xff]   ;;  %v4315_v52 = vld [vmem:[#allocation2 + $0x2a0] sm:$0xff]  }
 0x845   : > { %v2146_v58 = vshrl.u32 %v2123_v55, 16  ;;  %v2141_v59 = vrot.slane %v2139_v54, 7  ;;  %v2149_v61 = vshll.u32 %v2123_v55, 16  ;;  %v4317_v54 = vld [vmem:[#allocation2 + $0x298] sm:$0xff]   ;;  %v4318_v55 = vld [vmem:[#allocation2 + $0x2d0] sm:$0xff]  }
 0x847   : > { %3844 = vmatpush3.bf16.msra.mxu0 %v4285_v56  ;;  %v2148_v63 = vrot.slane %v2146_v58, 7  ;;  %v2144_v3 = vor.u32 %v2142_v60, %v2141_v59  ;;  %v2166_v26 = vsel %vm5007_vm8, %v2141_v59, 0  ;;  %v4319_v56 = vld [vmem:[#allocation2 + $0x290] sm:$0xff]   ;;  %v4321_v58 = vld [vmem:[#allocation2 + $0x288] sm:$0xff]   ;;  %v4322_v59 = vld [vmem:[#allocation2 + $0x2c0] sm:$0xff]  }
 0x848   : > { %3845 = vmatprep.subr.bf16.mxu0 %v4288_v57  ;;  %v2200_v40 = vshll.u32 %v2166_v26, 16  ;;  %v4320_v57 = vld [vmem:[#allocation2 + $0x2c8] sm:$0xff]   ;;  %v4323_v60 = vld [vmem:[#allocation2 + $0x280] sm:$0xff]  }
 0x849   : > { %v2151_v5 = vor.u32 %v2149_v61, %v2148_v63  ;;  %v5206_v8 = vsel %vm5007_vm8, %v2148_v63, 0  ;;  %v5216_v0 = vsel %vm5007_vm8, 0, %v2144_v3 }
 0x84a   : > { %v2212_v1 = vshll.u32 %v5206_v8, 16  ;;  %v2195_v34 = vshll.u32 %v5216_v0, 16  ;;  %v2193_v38 = vshrl.u32 %v5216_v0, 16  ;;  %v2202_v7 = vrot.slane %v2200_v40, 1 }
 0x84b   : > { %3846 = vmatpush3.bf16.msra.mxu0 %v4289_v62  ;;  %v5210_v30 = vsel %vm5007_vm8, 0, %v2151_v5  ;;  %v2238_v45 = vrot.slane %v5206_v8, 1  ;;  %v2234_v61 = vrot.slane %v5216_v0, 1  ;;  %v2235_v62 = vrot.slane %v2166_v26, 1 }
 0x84c   : > { %v2207_v15 = vshll.u32 %v5210_v30, 16  ;;  %3092 = vmatprep.mubr.bf16.mxu1 %v5210_v30  ;;  %3847 = vmatprep.subr.bf16.mxu0 %v4292_v4  ;;  %v2205_v27 = vshrl.u32 %v5210_v30, 16  ;;  %v2214_v20 = vrot.slane %v2212_v1, 1  ;;  %v2197_v37 = vrot.slane %v2195_v34, 1 }
 0x84d   : > { %3093 = vmatmul.mubr.bf16.vlgmr.msra.gmra.mxu1 %v5216_v0  ;;  %v2237_v43 = vrot.slane %v5210_v30, 1  ;;  %v2236_v63 = vsel %vm1337_vm9, %v2234_v61, %v2235_v62 }
 0x84e   : > { %v2209_v28 = vrot.slane %v2207_v15, 1  ;;  %3812 = vmatpush3.bf16.msra.mxu1 %v4291_v9  ;;  %v2198_v42 = vor.u32 %v2197_v37, %v2193_v38 }
 0x84f   : > { %3848 = vmatpush3.bf16.msra.mxu0 %v4293_v29  ;;  %3813 = vmatprep.subr.bf16.mxu1 %v4294_v10  ;;  %v2239_v47 = vsel %vm1337_vm9, %v2237_v43, %v2238_v45 }
 0x850   : > { %v2210_v19 = vor.u32 %v2209_v28, %v2205_v27  ;;  %v2203_v22 = vsel %vm1321_vm10, %v2198_v42, %v2202_v7 }
 0x852   : > { %3814 = vmatpush3.bf16.msra.mxu1 %v4295_v16  ;;  %3216 = vmatmul.mubr.bf16.vlgmr.msra.gmra.mxu0 %v2230_v21  ;;  %v2215_v48 = vsel %vm1321_vm10, %v2210_v19, %v2214_v20 }
 0x853   : > { %3174 = vmatprep.mubr.bf16.mxu1 %v2215_v48  ;;  %3815 = vmatprep.subr.bf16.mxu1 %v4296_v18 }
 0x856   : > { %3816 = vmatpush3.bf16.msra.mxu1 %v4297_v23 }
 0x857   : > { %3817 = vmatprep.subr.bf16.mxu1 %v4298_v24 }
 0x85a   : > { %3818 = vmatpush3.bf16.msra.mxu1 %v4299_v25 }
 0x85b   : > { %3819 = vmatprep.subr.bf16.mxu1 %v4300_v31 }
 0x85e   : > { %3820 = vmatpush3.bf16.msra.mxu1 %v4301_v13 }
 0x85f   : > { %3821 = vmatprep.subr.bf16.mxu1 %v4302_v6 }
 0x862   : > { %3822 = vmatpush3.bf16.msra.mxu1 %v4303_v32 }
 0x863   : > { %3823 = vmatprep.subr.bf16.mxu1 %v4304_v33 }
 0x866   : > { %3824 = vmatpush3.bf16.msra.mxu1 %v4305_v12 }
 0x867   : > { %3825 = vmatprep.subr.bf16.mxu1 %v4306_v35 }
 0x86a   : > { %3826 = vmatpush3.bf16.msra.mxu1 %v4307_v39 }
 0x86b   : > { %3855 = vmatprep.subr.bf16.mxu1 %v4308_v41 }
 0x86d   : > { %3175 = vmatmul.mubr.bf16.vlgmr.msra.gmra.mxu1 %v2203_v22 }
 0x86e   : > { %3856 = vmatpush3.bf16.msra.mxu1 %v4309_v44  ;;  %3256 = vmatprep.mubr.bf16.mxu1 %v2239_v47 }
 0x86f   : > { %3857 = vmatprep.subr.bf16.mxu1 %v4310_v46 }
 0x872   : > { %3858 = vmatpush3.bf16.msra.mxu1 %v4311_v36 }
 0x873   : > { %3859 = vmatprep.subr.bf16.mxu1 %v4312_v49 }
 0x876   : > { %3860 = vmatpush3.bf16.msra.mxu1 %v4313_v50 }
 0x877   : > { %3861 = vmatprep.subr.bf16.mxu1 %v4314_v51 }
 0x87a   : > { %3862 = vmatpush3.bf16.msra.mxu1 %v4315_v52 }
 0x87b   : > { %3863 = vmatprep.subr.bf16.mxu1 %v4316_v53 }
 0x87e   : > { %3864 = vmatpush3.bf16.msra.mxu1 %v4317_v54 }
 0x87f   : > { %3865 = vmatprep.subr.bf16.mxu1 %v4318_v55 }
 0x882   : > { %3866 = vmatpush3.bf16.msra.mxu1 %v4319_v56 }
 0x883   : > { %3867 = vmatprep.subr.bf16.mxu1 %v4320_v57 }
 0x886   : > { %3868 = vmatpush3.bf16.msra.mxu1 %v4321_v58 }
 0x887   : > { %3869 = vmatprep.subr.bf16.mxu1 %v4322_v59 }
 0x88a   : > { %3870 = vmatpush3.bf16.msra.mxu1 %v4323_v60 }
 0x88d   : > { %3257 = vmatmul.mubr.bf16.vlgmr.msra.gmra.mxu1 %v2236_v63 }
 0x88e   : > { %4367 = shalt.err (!%p4364_p1)
}
 0x88f   : > { %s4368_s22 = scalar_lea.hbm %s5240_s21, 512  ;;  %s4372_s5 = scalar_lea.hbm %s5342_s19, 1024 }
 0x890   : > { %p4369_p2 = scmp.ne.s32.totalorder %s5240_s21, %s4368_s22  ;;  %p4373_p7 = scmp.lt.s32.totalorder %s5240_s21, %s5342_s19 }
 0x891   : > { %p4374_p8 = scmp.lt.s32.totalorder %s4372_s5, %s4368_s22 }
 0x892   : > { %p4370_p3 = pnand %p4369_p2, %p4625_p5 }
 0x893   : > { %p4375_p6 = por %p4374_p8, %p4373_p7 }
 0x894   : > { %p4371_p4 = pneg %p4370_p3 }
 0x896   : > { %p4376_p9 = pnand %p4375_p6, %p4371_p4 }
 0x898   : > { %4379 = shalt.err (!%p4376_p9)
}
 0x899   : > { %s4482_s24 = smov 64   ;;  %s4483_s28 = smov 4   ;;  %v3596_v28 = vld [vmem:[%s5340_s17] ss:$0 sm:$0xff] }
 0x89a   : > { %3962 = dma.vmem_to_hbm [thread:$0]  (%p4625_p5), %s5242_s26, 512, %s5240_s21, %s3275_s23, %s4482_s24, %s4482_s24, %s4483_s28  }
 0x89b   : > { %s3709_s26 = sshll.u32 %s4608_s1, 8  ;;  %s3288_s21 = sshll.u32 %s4684_s25, 4  ;;  %s5279_s21 = int_to_ptr.vmem [resolvable:$true] %s3288_s21 }
 0x89c   : > { %s5277_s2 = scalar_lea.hbm %s5341_s18, %s3709_s26  ;;  %s3270_s5 = scalar_lea.sflag [#allocation4], %s4672_s0 }
 0x89d   : > { %s4380_s4 = scalar_lea.vmem %s5279_s21, 256  ;;  %s4484_s1 = smov [#allocation5]  }
 0x89e   : > { %p4381_p10 = scmp.ne.s32.totalorder %s5279_s21, %s4380_s4  ;;  %s4384_s27 = sshll.u32 %s4484_s1, 4  ;;  %s4385_s27 = int_to_ptr.vmem [resolvable:$false] %s4384_s27 }
 0x89f   : > { %s4386_s24 = scalar_lea.vmem %s4385_s27, 512  ;;  %p4387_p13 = scmp.lt.s32.totalorder %s5279_s21, %s4385_s27 }
 0x8a0   : > { %p4382_p11 = pnand %p4381_p10, %p4625_p5  ;;  %p4388_p0 = scmp.lt.s32.totalorder %s4386_s24, %s4380_s4 }
 0x8a2   : > { %p4383_p12 = pneg %p4382_p11  ;;  %p4389_p1 = por %p4388_p0, %p4387_p13 }
 0x8a4   : > { %p4390_p2 = pnand %p4389_p1, %p4383_p12 }
 0x8d2   : > { %v3761_v3 = vpop.f32.mrf.mxu0 }
 0x8d4   : > { %v3762_v4 = vpop.f32.mrf.mxu0 }
 0x8d5   : > { %v3763_v27 = vadd.f32 %v3762_v4, %v3761_v3 }
 0x8d6   : > { %v3764_v5 = vpop.f32.mrf.mxu0 }
 0x8d7   : > { %v3054_v20 = vadd.f32 %v3763_v27, %v3596_v28 }
 0x8d8   : > { %v3765_v9 = vpop.f32.mrf.mxu0 }
 0x8d9   : > { %v3766_v21 = vadd.f32 %v3765_v9, %v3764_v5 }
 0x8db   : > { %v3057_v31 = vadd.f32 %v3766_v21, %v3596_v28 }
 0x8f2   : > { %v3805_v29 = vpop.f32.mrf.mxu0 }
 0x8f4   : > { %v3806_v15 = vpop.f32.mrf.mxu0 }
 0x8f5   : > { %v3807_v13 = vadd.f32 %v3806_v15, %v3805_v29 }
 0x8f6   : > { %v3808_v1 = vpop.f32.mrf.mxu0 }
 0x8f8   : > { %v3809_v16 = vpop.f32.mrf.mxu0 }
 0x8f9   : > { %v3810_v35 = vadd.f32 %v3809_v16, %v3808_v1 }
 0x90d   : > { %v3783_v8 = vpop.f32.mrf.mxu1 }
 0x90f   : > { %v3784_v30 = vpop.f32.mrf.mxu1 }
 0x910   : > { %v3785_v18 = vadd.f32 %v3784_v30, %v3783_v8 }
 0x911   : > { %v3786_v10 = vpop.f32.mrf.mxu1 }
 0x912   : > { %v3849_v19 = vpop.f32.mrf.mxu0  ;;  %v3095_v23 = vadd.f32 %v3785_v18, %v3054_v20 }
 0x913   : > { %v3787_v0 = vpop.f32.mrf.mxu1 }
 0x914   : > { %v3788_v24 = vadd.f32 %v3787_v0, %v3786_v10  ;;  %v3850_v25 = vpop.f32.mrf.mxu0  ;;  %v3136_v34 = vadd.f32 %v3807_v13, %v3095_v23 }
 0x915   : > { %v3851_v39 = vadd.f32 %v3850_v25, %v3849_v19 }
 0x916   : > { %v3098_v33 = vadd.f32 %v3788_v24, %v3057_v31  ;;  %v3852_v12 = vpop.f32.mrf.mxu0 }
 0x918   : > { %v3139_v40 = vadd.f32 %v3810_v35, %v3098_v33  ;;  %v3853_v41 = vpop.f32.mrf.mxu0 }
 0x919   : > { %v3854_v46 = vadd.f32 %v3853_v41, %v3852_v12 }
 0x92d   : > { %v3827_v2 = vpop.f32.mrf.mxu1 }
 0x92f   : > { %v3828_v17 = vpop.f32.mrf.mxu1 }
 0x930   : > { %v3829_v6 = vadd.f32 %v3828_v17, %v3827_v2 }
 0x931   : > { %v3830_v48 = vpop.f32.mrf.mxu1 }
 0x932   : > { %v3177_v26 = vadd.f32 %v3829_v6, %v3136_v34 }
 0x933   : > { %v3831_v32 = vpop.f32.mrf.mxu1 }
 0x934   : > { %v3832_v37 = vadd.f32 %v3831_v32, %v3830_v48  ;;  %v3218_v7 = vadd.f32 %v3851_v39, %v3177_v26 }
 0x936   : > { %v3180_v43 = vadd.f32 %v3832_v37, %v3139_v40 }
 0x938   : > { %v3221_v49 = vadd.f32 %v3854_v46, %v3180_v43 }
 0x94d   : > { %v3871_v38 = vpop.f32.mrf.mxu1 }
 0x94f   : > { %v3872_v42 = vpop.f32.mrf.mxu1 }
 0x950   : > { %v3873_v44 = vadd.f32 %v3872_v42, %v3871_v38 }
 0x951   : > { %v3874_v45 = vpop.f32.mrf.mxu1 }
 0x952   : > { %v3259_v22 = vadd.f32 %v3873_v44, %v3218_v7 }
 0x953   : > { %v3875_v47 = vpop.f32.mrf.mxu1 }
 0x954   : > { %v3265_v36 = vadd.f32 %v3259_v22, %v4832_v11  ;;  %v3876_v50 = vadd.f32 %v3875_v47, %v3874_v45 }
 0x956   : > { %3267 = vst [vmem:[%s4684_s25] sm:$0xff] %v3265_v36  ;;  %v3262_v51 = vadd.f32 %v3876_v50, %v3221_v49 }
 0x958   : > { %v3266_v52 = vadd.f32 %v3262_v51, %v4835_v14 }
 0x95a   : > { %3268 = vst [vmem:[%s4684_s25 + $0x8] sm:$0xff] %v3266_v52 }
 0x95b   : > { %4393 = shalt.err (!%p4390_p2)
}
 0x95c   : > { %s4394_s25 = scalar_lea.hbm %s5277_s2, 256  ;;  %s4398_s22 = scalar_lea.hbm %s5341_s18, 512 }
 0x95d   : > { %p4395_p3 = scmp.ne.s32.totalorder %s5277_s2, %s4394_s25  ;;  %p4399_p8 = scmp.lt.s32.totalorder %s5277_s2, %s5341_s18 }
 0x95e   : > { %p4400_p6 = scmp.lt.s32.totalorder %s4398_s22, %s4394_s25 }
 0x95f   : > { %p4396_p4 = pnand %p4395_p3, %p4625_p5 }
 0x960   : > { %p4401_p9 = por %p4400_p6, %p4399_p8 }
 0x961   : > { %p4397_p7 = pneg %p4396_p4 }
 0x963   : > { %p4402_p10 = pnand %p4401_p9, %p4397_p7 }
 0x965   : > { %4405 = shalt.err (!%p4402_p10)
}
 0x966   : > { %s4485_s20 = smov 128   ;;  %s4486_s4 = smov 8  }
 0x967   : > { %3961 = dma.vmem_to_hbm [thread:$0]  (%p4625_p5), %s5279_s21, 256, %s5277_s2, %s3270_s5, %s4485_s20, %s4485_s20, %s4486_s4  }
 0x968 PF: > { %s5374_s1 = sld [smem:[#allocation13_spill]] }
 0x969   : > { %s5375_s27 = sld [smem:[#allocation11_spill]] }
 0x96a   : > { %s5376_s24 = sld [smem:[#allocation16_spill]] }
 0x96e   : > { %p3978_p11 = scmp.ge.s32.totalorder %s5374_s1, 2 }
 0x96f   : > { %s3319_s28 = sand.u32 1, %s5375_s27  }
 0x970   : > { %p5377_p12 = scmp.ne.s32.totalorder %s5376_s24, 0  ;;  %s3320_s25 = scalar_lea.sflag [#allocation4], %s3319_s28 }
 0x972   : > { %p3970_p13 = pnand %p3978_p11, %p5377_p12 }
 0x974   : > { %p3971_p0 = pneg %p3970_p13 }
 0x976   : > { %4439 = dma.done.wait (%p3971_p0), %s3320_s25, 256  }
 0x977   : > { %4441 = vsyncadd (%p3971_p0), %s3320_s25, 4294967040  ;;  %s3329_s29 = scalar_lea.sflag [#allocation7], %s3319_s28 }
 0x978   : > { %4443 = dma.done.wait (%p3971_p0), %s3329_s29, 512  }
 0x979   : > { %4445 = vsyncadd (%p3971_p0), %s3329_s29, 4294966784  ;;  %s5378_s21 = sld [smem:[#allocation14_spill]]  ;;  %s5381_s0 = smov %s4452_s30 }
 0x97a   : > { %s5379_s3 = sld [smem:[#allocation12_spill]] }
 0x97b   : > { %s5380_s20 = sld [smem:[#allocation15_spill]] }
 0x97f   : > { %p34_p5 = scmp.ge.s32.totalorder %s5378_s21, 4  }
 0x980   : > { %s5382_s30 = smov %s5379_s3 }
 0x981   :  { %36 = sbr.rel (!%p34_p5) target bundleno = 13 (0xd), region = 178 }
 0x986   :  { %3334 = vsyncpa [#allocation3], 1 }
 0x987   :  { %3336 = vsyncpa [#allocation3 + $0x1], 1 }
 0x988   :  { %3337 = vsyncpa [#allocation4], 1 }
 0x989   :  { %3339 = vsyncpa [#allocation4 + $0x1], 1 }
 0x98a   :  { %3340 = vsyncpa [#allocation7], 1 }
 0x98b   :  { %3342 = vsyncpa [#allocation7 + $0x1], 1 }

// kernel: tpu_custom_call.1
= control target key start
LH: loop header
LB: loop body
LE: loop exit
PB: predicated region body
PF: predicated region fallthrough
CT: control target
= control target key end

     0   :  { %s5323_s0 = inlined_call_operand.vmem [shape: f32[2,16,128], index: 0, kind: input, shape index: {}]   ;;  %s5324_s1 = inlined_call_operand.vmem [shape: f32[2,1,16], index: 1, kind: input, shape index: {}]   ;;  %s5325_s2 = inlined_call_operand.vmem [shape: f32[1,128], index: 2, kind: input, shape index: {}]   ;;  %s5326_s3 = inlined_call_operand.vmem [shape: f32[1,128], index: 3, kind: input, shape index: {}]   ;;  %s5327_s4 = inlined_call_operand.vmem [shape: bf16[4,128,32], index: 4, kind: input, shape index: {}]   ;;  %s5328_s5 = inlined_call_operand.vmem [shape: f32[4,1,32], index: 5, kind: input, shape index: {}]   ;;  %s5329_s6 = inlined_call_operand.vmem [shape: bf16[4,128,32], index: 6, kind: input, shape index: {}]   ;;  %s5330_s7 = inlined_call_operand.vmem [shape: f32[4,1,32], index: 7, kind: input, shape index: {}]   ;;  %s5331_s8 = inlined_call_operand.vmem [shape: bf16[4,128,32], index: 8, kind: input, shape index: {}]   ;;  %s5332_s9 = inlined_call_operand.vmem [shape: f32[4,1,32], index: 9, kind: input, shape index: {}]   ;;  %s5333_s10 = inlined_call_operand.vmem [shape: bf16[4,32,128], index: 10, kind: input, shape index: {}]   ;;  %s5334_s11 = inlined_call_operand.vmem [shape: f32[1,128], index: 11, kind: input, shape index: {}]   ;;  %s5335_s12 = inlined_call_operand.vmem [shape: f32[1,128], index: 12, kind: input, shape index: {}]   ;;  %s5336_s13 = inlined_call_operand.vmem [shape: f32[1,128], index: 13, kind: input, shape index: {}]   ;;  %s5337_s14 = inlined_call_operand.vmem [shape: bf16[384,512], index: 14, kind: input, shape index: {}]   ;;  %s5338_s15 = inlined_call_operand.vmem [shape: f32[1,512], index: 15, kind: input, shape index: {}]   ;;  %s5339_s16 = inlined_call_operand.hbm [shape: bf16[1536,128], index: 16, kind: input, shape index: {}]   ;;  %s5340_s17 = inlined_call_operand.vmem [shape: f32[1,128], index: 17, kind: input, shape index: {}]   ;;  %s5341_s18 = inlined_call_operand.hbm [shape: f32[2,16,128], index: 18, kind: output, shape index: {0}]   ;;  %s5342_s19 = inlined_call_operand.hbm [shape: bf16[2,4,16,16], index: 19, kind: output, shape index: {1}]  }
   0x1   :  { %5349 = sst [smem:[#allocation17_spill]] %s5323_s0 }
   0x2   :  { %5350 = sst [smem:[#allocation18_spill]] %s5324_s1 }
   0x3   :  { %5351 = sst [smem:[#allocation19_spill]] %s5325_s2 }
   0x4   :  { %5352 = sst [smem:[#allocation20_spill]] %s5326_s3 }
   0x5   :  { %5353 = sst [smem:[#allocation21_spill]] %s5327_s4 }
   0x6   :  { %5354 = sst [smem:[#allocation22_spill]] %s5328_s5 }
   0x7   :  { %25 = vsyncpa [#allocation3], 0 }
   0x8   :  { %26 = vsyncpa [#allocation4], 0 }
   0x9   :  { %28 = vsyncpa [#allocation4 + $0x1], 0 }
   0xa   :  { %29 = vsyncpa [#allocation7], 0 }
   0xb   :  { %31 = vsyncpa [#allocation7 + $0x1], 0  ;;  %s4587_s0 = smov 0   ;;  %s4589_s30 = smov 0  }
   0xc   :  { %s4591_s20 = smov 0   ;;  %s4593_s21 = smov 0  }
   0xd LB: > { %5355 = sst [smem:[#allocation11_spill]] %s4448_s0  ;;  %s4608_s1 = sadd.s32 4294967295, %s4460_s21   ;;  %s4460_s21 = sphi %s4593_s21, %s5378_s21   ;;  %s4456_s20 = sphi %s4591_s20, %s5380_s20   ;;  %s4452_s30 = sphi %s4589_s30, %s5382_s30   ;;  %s4448_s0 = sphi %s4587_s0, %s5381_s0  }
   0xe   : > { %5356 = sst [smem:[#allocation12_spill]] %s4456_s20  ;;  %s3443_s22 = sadd.s32 4294967294, %s4460_s21  }
   0xf   : > { %5357 = sst [smem:[#allocation13_spill]] %s4460_s21  ;;  %s4612_s2 = sadd.s32 1, %s4460_s21  }
  0x10   : > { %5358 = sst [smem:[#allocation14_spill]] %s4612_s2  ;;  %s432_s23 = sadd.s32 1, %s4456_s20 }
  0x11   : > { %s429_s24 = ssub.s32 %s4460_s21, %s4612_s2  ;;  %p442_p0 = scmp.ne.s32.totalorder %s4456_s20, %s4452_s30 }
  0x12   : > { %p430_p1 = scmp.eq.s32.totalorder %s429_s24, 0  ;;  %p443_p2 = scmp.eq.s32.totalorder %s4608_s1, 1 }
  0x13   : > { %p448_p3 = scmp.ne.s32.totalorder %s4452_s30, %s4448_s0  ;;  %p449_p4 = scmp.eq.s32.totalorder %s3443_s22, 1 }
  0x14   : > { %s4623_s25 = scalar_select %p430_p1, %s4456_s20, %s432_s23  }
  0x15   : > { %p4625_p5 = por %p443_p2, %p442_p0  ;;  %p4629_p6 = por %p449_p4, %p448_p3 }
  0x16   : > { %5359 = sst [smem:[#allocation15_spill]] %s4623_s25  ;;  %p3444_p7 = scmp.ge.s32.totalorder %s4460_s21, 1 }
  0x17   : > { %s5361_s26 = scalar_select %p4629_p6, 1, 0 }
  0x18   : > { %p482_p8 = scmp.lt.s32.totalorder %s4460_s21, 3  ;;  %p3976_p9 = scmp.eq.s32.totalorder %s4608_s1, 0 }
  0x19   : > { %5362 = sst [smem:[#allocation16_spill]] %s5361_s26  ;;  %s4474_s28 = smov [#allocation2]  }
  0x1a   : > { %p4636_p10 = pnand %p3444_p7, %p482_p8  ;;  %s536_s29 = sshll.u32 %s4474_s28, 4  ;;  %s537_s29 = int_to_ptr.vmem [resolvable:$true] %s536_s29 }
  0x1b   : > { %s4339_s22 = scalar_lea.vmem %s537_s29, 12288  ;;  %p4347_p3 = scmp.lt.s32.totalorder %s537_s29, %s537_s29 }
  0x1c   : > { %p3965_p11 = pneg %p4636_p10  ;;  %p4340_p0 = scmp.ne.s32.totalorder %s537_s29, %s4339_s22 }
  0x1d   : > { %p4348_p4 = scmp.lt.s32.totalorder %s4339_s22, %s4339_s22 }
  0x1e   : > { %p3966_p12 = pnand %p3976_p9, %p3965_p11 }
  0x1f   : > { %p4349_p6 = por %p4348_p4, %p4347_p3 }
  0x20   : > { %p4330_p13 = pneg %p3966_p12 }
  0x22   : > { %p4342_p1 = pnand %p4340_p0, %p4330_p13 }
  0x24   : > { %p4343_p2 = pneg %p4342_p1 }
  0x26   : > { %p4350_p7 = pnand %p4349_p6, %p4343_p2 }
  0x28   : > { %4353 = shalt.err (!%p4350_p7)
}
  0x29   : > { %s4475_s23 = smov 64   ;;  %s4476_s24 = smov 4  }
  0x2a   : > { %3968 = dma.hbm_to_vmem [thread:$0]  (!%p3966_p12), %s5339_s16, 12288, %s537_s29, [#allocation3], %s4475_s23, %s4475_s23, %s4476_s24  }
  0x2b   : > { %569 = sbr.rel (%p4636_p10) target bundleno = 2408 (0x968), region = 92 }
  0x30   : > { %4435 = dma.done.wait (%p3976_p9), [#allocation3], 12288  }
  0x31   : > { %4437 = vsyncadd (%p3976_p9), [#allocation3], 4294955008  ;;  %p633_p8 = scmp.lt.s32.totalorder %s4608_s1, 1  ;;  %s5364_s0 = sld [smem:[#allocation18_spill]]  ;;  %v4688_v28 = vmov 0.0   ;;  %v4690_v29 = vmov 0.0  }
  0x32   : > { %s5365_s29 = sld [smem:[#allocation17_spill]] }
  0x33   : > { %s634_s28 = scalar_select %p633_p8, %s4608_s1, 1 }
  0x34   : > { %s5366_s24 = sld [smem:[#allocation19_spill]] }
  0x35   : > { %s3701_s22 = sshll.u32 %s634_s28, 4  ;;  %s5367_s20 = sld [smem:[#allocation20_spill]] }
  0x37   : > { %s640_s21 = scalar_lea.vmem %s5364_s0, %s634_s28  ;;  %s4672_s0 = sand.u32 1, %s4452_s30  }
  0x38   : > { %s637_s27 = scalar_lea.vmem %s5365_s29, %s3701_s22  ;;  %v4663_v1 = vld [vmem:[%s640_s21] sm:$0x1]  ;;  %s3449_s21 = sshll.u32 %s4672_s0, 4 }
  0x39   : > { %v4661_v0 = vld [vmem:[%s637_s27] sm:$0xff]  ;;  %v4666_v2 = vld [vmem:[%s637_s27 + $0x8] sm:$0xff]  ;;  %s3450_s2 = sshll.u32 %s4672_s0, 5  ;;  %s4684_s25 = scalar_lea.vmem [#allocation5], %s3449_s21 }
  0x3a   : > { %647 = vadd.xlane.f32.xlu0 %v4661_v0  ;;  %v3453_v19 = vld [vmem:[%s5366_s24] ss:$0 sm:$0xff]  ;;  %s4686_s29 = scalar_lea.vmem [#allocation6], %s3450_s2  ;;  %s4692_s27 = smov 0  }
  0x3b   : > { %v3454_v23 = vld [vmem:[%s5367_s20] ss:$0 sm:$0xff] }
  0x3e   : > { %649 = vadd.xlane.f32.xlu0 %v4666_v2 }
  0xc3   : > { %v648_v3 = vpop.xlane.xlu0 %647 }
  0xc4   : > { %v652_v4 = vmul.f32 0.0078125, %v648_v3 }
  0xc6   : > { %v654_v5 = vsub.f32 %v4661_v0, %v652_v4 }
  0xc7   : > { %v650_v6 = vpop.xlane.xlu0 %649 }
  0xc8   : > { %v653_v7 = vmul.f32 0.0078125, %v650_v6  ;;  %v656_v8 = vmul.f32 %v654_v5, %v654_v5 }
  0xca   : > { %v655_v9 = vsub.f32 %v4666_v2, %v653_v7  ;;  %658 = vadd.xlane.f32.xlu1 %v656_v8 }
  0xcc   : > { %v657_v10 = vmul.f32 %v655_v9, %v655_v9 }
  0xce   : > { %660 = vadd.xlane.f32.xlu1 %v657_v10 }
 0x153   : > { %v659_v11 = vpop.xlane.xlu1 %658 }
 0x154   : > { %v662_v12 = vmul.f32 0.0078125, %v659_v11 }
 0x156   : > { %v664_v13 = vadd.f32 1e-05, %v662_v12 }
 0x157   : > { %v661_v14 = vpop.xlane.xlu1 %660 }
 0x158   : > { %4046 = vrsqrt.f32 %v664_v13  ;;  %v663_v15 = vmul.f32 0.0078125, %v661_v14 }
 0x15a   : > { %v665_v16 = vadd.f32 1e-05, %v663_v15 }
 0x15c   : > { %4048 = vrsqrt.f32 %v665_v16 }
 0x165   : > { %v4047_v17 = vpop.eup %4046 }
 0x166   : > { %v668_v18 = vmul.f32 %v4047_v17, %v654_v5 }
 0x168   : > { %v676_v21 = vmul.f32 %v3453_v19, %v668_v18 }
 0x169   : > { %v4049_v20 = vpop.eup %4048 }
 0x16a   : > { %v669_v22 = vmul.f32 %v4049_v20, %v655_v9  ;;  %v684_v25 = vadd.f32 %v3454_v23, %v676_v21 }
 0x16c   : > { %v677_v24 = vmul.f32 %v3453_v19, %v669_v22 }
 0x16e   : > { %v685_v26 = vadd.f32 %v3454_v23, %v677_v24 }
 0x170   : > { %v4682_v27 = vpack.c.bf16 %v685_v26, %v684_v25 }
 0x171 LB: >> { %v4477_v30 = vmov 0.0   ;;  %s3702_s21 = sshll.u32 %s4472_s27, 6  ;;  %vm4478_vm0 = vmmov 0   ;;  %s5368_s4 = sld [smem:[#allocation21_spill]]  ;;  %vm1044_vm1 = vcmask 261120   ;;  %v1096_v11 = vlaneseq  ;;  %s4472_s27 = sphi %s4692_s27, %s692_s27   ;;  %v4468_v29 = vphi %v4690_v29, %v5371_v29   ;;  %v4464_v28 = vphi %v4688_v28, %v5370_v28  }
 0x172   : >> { %3897 = vmatprep.subr.bf16.mxu1 %v4477_v30  ;;  %3877 = vmatprep.subr.bf16.mxu0 %v4477_v30  ;;  %s4713_s23 = scalar_lea.vmem %s5329_s6, %s3702_s21  ;;  %s4738_s26 = scalar_lea.vmem %s5331_s8, %s3702_s21  ;;  %vm1094_vm2 = vcmp.gt.f32.partialorder %v4663_v1, 0.0  ;;  %v4479_v14 = vmov 0   ;;  %vm1103_vm4 = vcmask 130048   ;;  %vm1137_vm5 = vcmask 125952  }
 0x173   : >> { %3913 = vmatprep.mubr.msk.bf16.mxu1 %vm4478_vm0, %v4477_v30  ;;  %3893 = vmatprep.mubr.msk.bf16.mxu0 %vm4478_vm0, %v4477_v30  ;;  %v4050_v31 = vld [vmem:[%s4713_s23 + $0x38] sm:$0xff]   ;;  %v4052_v33 = vld [vmem:[%s4713_s23 + $0x30] sm:$0xff]   ;;  %v4054_v35 = vld [vmem:[%s4713_s23 + $0x28] sm:$0xff]   ;;  %s830_s24 = scalar_lea.vmem %s5330_s7, %s4472_s27  ;;  %s5369_s5 = sld [smem:[#allocation22_spill]]  ;;  %v4792_v12 = vshrl.u32 %v1096_v11, 7  ;;  %v1095_v15 = vsel %vm1094_vm2, 1, %v4479_v14 }
 0x174   : >> { %3898 = vmatpush3.bf16.msra.mxu1 %v4050_v31  ;;  %v4056_v37 = vld [vmem:[%s4713_s23 + $0x20] sm:$0xff]   ;;  %v4058_v39 = vld [vmem:[%s4713_s23 + $0x18] sm:$0xff]   ;;  %v4060_v41 = vld [vmem:[%s4713_s23 + $0x10] sm:$0xff]   ;;  %s3708_s28 = sshll.u32 %s4472_s27, 4 }
 0x175   : >> { %3899 = vmatprep.subr.bf16.mxu1 %v4477_v30  ;;  %v4062_v43 = vld [vmem:[%s4713_s23 + $0x8] sm:$0xff]   ;;  %v4064_v45 = vld [vmem:[%s4713_s23] sm:$0xff]   ;;  %v4066_v3 = vld [vmem:[%s4738_s26 + $0x38] sm:$0xff]   ;;  %v1098_v13 = vsub.s32 0, %v4792_v12  ;;  %s3707_s23 = sshll.u32 %s4472_s27, 3  ;;  %s1192_s2 = scalar_lea.vmem %s5333_s10, %s3708_s28 }
 0x176   : >> { %v3467_v49 = vld [vmem:[%s830_s24] ss:$0 sm:$0xff]  ;;  %v4067_v4 = vld [vmem:[%s4738_s26 + $0x30] sm:$0xff]   ;;  %v4068_v5 = vld [vmem:[%s4738_s26 + $0x28] sm:$0xff]   ;;  %s1136_s24 = scalar_lea.vmem %s4686_s29, %s3707_s23 [#allocation6] }
 0x177   : >> { %s4719_s22 = scalar_lea.vmem %s5368_s4, %s3702_s21  ;;  %v4069_v6 = vld [vmem:[%s4738_s26 + $0x20] sm:$0xff]   ;;  %v4070_v7 = vld [vmem:[%s4738_s26 + $0x18] sm:$0xff]   ;;  %v4071_v8 = vld [vmem:[%s4738_s26 + $0x10] sm:$0xff]   ;;  %v1099_v16 = vrot.slane %v1095_v15, %v1098_v13  ;;  %s946_s21 = scalar_lea.vmem %s5332_s9, %s4472_s27 }
 0x178   : >> { %v4051_v32 = vld [vmem:[%s4719_s22 + $0x38] sm:$0xff]   ;;  %v4053_v34 = vld [vmem:[%s4719_s22 + $0x30] sm:$0xff]   ;;  %3900 = vmatpush3.bf16.msra.mxu1 %v4052_v33  ;;  %v4055_v36 = vld [vmem:[%s4719_s22 + $0x28] sm:$0xff]  }
 0x179   : >> { %3878 = vmatpush3.bf16.msra.mxu0 %v4051_v32  ;;  %3901 = vmatprep.subr.bf16.mxu1 %v4477_v30  ;;  %v4057_v38 = vld [vmem:[%s4719_s22 + $0x20] sm:$0xff]   ;;  %v4059_v40 = vld [vmem:[%s4719_s22 + $0x18] sm:$0xff]   ;;  %v4061_v42 = vld [vmem:[%s4719_s22 + $0x10] sm:$0xff]   ;;  %s714_s20 = scalar_lea.vmem %s5369_s5, %s4472_s27  ;;  %vm1100_vm3 = vcmp.eq.s32.totalorder %v1099_v16, 1  ;;  %s692_s27 = sadd.s32 1, %s4472_s27  }
 0x17a   : >> { %3879 = vmatprep.subr.bf16.mxu0 %v4477_v30  ;;  %v4063_v44 = vld [vmem:[%s4719_s22 + $0x8] sm:$0xff]   ;;  %v4065_v46 = vld [vmem:[%s4719_s22] sm:$0xff]   ;;  %p689_p6 = scmp.ge.s32.totalorder %s692_s27, 4  }
 0x17b   : >> { %v3457_v59 = vld [vmem:[%s714_s20] ss:$0 sm:$0xff]  ;;  %v4072_v9 = vld [vmem:[%s4738_s26 + $0x8] sm:$0xff]   ;;  %v4084_v15 = vld [vmem:[%s5337_s14 + $0xe4] ss:$16 sps:$4 sm:$0xff] (%p689_p6)   ;;  %vm1316_vm6 = vcmask (%p689_p6), 1040384  }
 0x17c   : >> { %3902 = vmatpush3.bf16.msra.mxu1 %v4054_v35  ;;  %v4073_v10 = vld [vmem:[%s4738_s26] sm:$0xff]   ;;  %vm1317_vm7 = vsmask.f32 (%p689_p6), 256  ;;  %vm1337_vm9 = vcmask (%p689_p6), 1046528   ;;  %vm1321_vm10 = vsmask.f32 (%p689_p6), 7424 }
 0x17d   : >> { %3880 = vmatpush3.bf16.msra.mxu0 %v4053_v34  ;;  %3903 = vmatprep.subr.bf16.mxu1 %v4477_v30  ;;  %v4087_v1 = vld [vmem:[%s5337_s14 + $0xc4] ss:$16 sps:$4 sm:$0xff] (%p689_p6)   ;;  %vm5007_vm8 = vmand (%p689_p6), %vm1316_vm6, %vm1317_vm7  ;;  %s3304_s26 = sshll.u32 (%p689_p6), %s4686_s29, 4  ;;  %s3275_s23 = scalar_lea.sflag (%p689_p6), [#allocation7], %s4672_s0  ;;  %s5242_s26 = int_to_ptr.vmem [resolvable:$true] %s3304_s26 }
 0x17e   : >> { %3881 = vmatprep.subr.bf16.mxu0 %v4477_v30  ;;  %v4093_v16 = vld [vmem:[%s5337_s14 + $0x84] ss:$16 sps:$4 sm:$0xff] (%p689_p6)   ;;  %s4481_s27 = smov (%p689_p6), [#allocation6]  }
 0x17f   : > { %s4358_s28 = sshll.u32 (%p689_p6), %s4481_s27, 4  ;;  %s4359_s28 = int_to_ptr.vmem [resolvable:$false] %s4358_s28 }
 0x180   : >> { %3904 = vmatpush3.bf16.msra.mxu1 %v4056_v37  ;;  %s4360_s29 = scalar_lea.vmem (%p689_p6), %s4359_s28, 1024  ;;  %p4361_p12 = scmp.lt.s32.totalorder (%p689_p6), %s5242_s26, %s4359_s28 }
 0x181   : >> { %3882 = vmatpush3.bf16.msra.mxu0 %v4055_v36  ;;  %3905 = vmatprep.subr.bf16.mxu1 %v4477_v30 }
 0x182   : >> { %3883 = vmatprep.subr.bf16.mxu0 %v4477_v30 }
 0x184   : >> { %3906 = vmatpush3.bf16.msra.mxu1 %v4058_v39 }
 0x185   : >> { %3884 = vmatpush3.bf16.msra.mxu0 %v4057_v38  ;;  %3907 = vmatprep.subr.bf16.mxu1 %v4477_v30 }
 0x186   : >> { %3885 = vmatprep.subr.bf16.mxu0 %v4477_v30 }
 0x188   : >> { %3908 = vmatpush3.bf16.msra.mxu1 %v4060_v41 }
 0x189   : >> { %3886 = vmatpush3.bf16.msra.mxu0 %v4059_v40  ;;  %3909 = vmatprep.subr.bf16.mxu1 %v4477_v30 }
 0x18a   : >> { %3887 = vmatprep.subr.bf16.mxu0 %v4477_v30 }
 0x18c   : >> { %3910 = vmatpush3.bf16.msra.mxu1 %v4062_v43  ;;  %v3477_v43 = vld [vmem:[%s946_s21] ss:$0 sm:$0xff] }
 0x18d   : >> { %3888 = vmatpush3.bf16.msra.mxu0 %v4061_v42  ;;  %3911 = vmatprep.subr.bf16.mxu1 %v4477_v30 }
 0x18e   : >> { %3889 = vmatprep.subr.bf16.mxu0 %v4477_v30 }
 0x190   : >> { %3912 = vmatpush3.bf16.msra.mxu1 %v4064_v45 }
 0x191   : >> { %3890 = vmatpush3.bf16.msra.mxu0 %v4063_v44  ;;  %3937 = vmatprep.subr.bf16.mxu1 %v4477_v30 }
 0x192   : >> { %3891 = vmatprep.subr.bf16.mxu0 %v4477_v30 }
 0x193   : >> { %3914 = vmatmul.mubr.bf16.vlgmr.msra.gmra.mxu1 %v4682_v27 }
 0x194   : >> { %3939 = vmatprep.mubr.msk.bf16.mxu1 %vm4478_vm0, %v4477_v30 }
 0x195   : >> { %3892 = vmatpush3.bf16.msra.mxu0 %v4065_v46 }
 0x196   : >> { %3917 = vmatprep.subr.bf16.mxu0 %v4477_v30 }
 0x198   : >> { %3894 = vmatmul.mubr.bf16.vlgmr.msra.gmra.mxu0 %v4682_v27 }
 0x199   : >> { %3933 = vmatprep.mubr.msk.bf16.mxu0 %vm4478_vm0, %v4477_v30  ;;  %3918 = vmatpush3.bf16.msra.mxu0 %v4066_v3 }
 0x19a   : >> { %3919 = vmatprep.subr.bf16.mxu0 %v4477_v30 }
 0x19d   : >> { %3920 = vmatpush3.bf16.msra.mxu0 %v4067_v4 }
 0x19e   : >> { %3921 = vmatprep.subr.bf16.mxu0 %v4477_v30 }
 0x1a1   : >> { %3922 = vmatpush3.bf16.msra.mxu0 %v4068_v5 }
 0x1a2   : >> { %3923 = vmatprep.subr.bf16.mxu0 %v4477_v30 }
 0x1a5   : >> { %3924 = vmatpush3.bf16.msra.mxu0 %v4069_v6 }
 0x1a6   : >> { %3925 = vmatprep.subr.bf16.mxu0 %v4477_v30 }
 0x1a9   : >> { %3926 = vmatpush3.bf16.msra.mxu0 %v4070_v7 }
 0x1aa   : >> { %3927 = vmatprep.subr.bf16.mxu0 %v4477_v30 }
 0x1ad   : >> { %3928 = vmatpush3.bf16.msra.mxu0 %v4071_v8 }
 0x1ae   : >> { %3929 = vmatprep.subr.bf16.mxu0 %v4477_v30 }
 0x1b1   : >> { %3930 = vmatpush3.bf16.msra.mxu0 %v4072_v9 }
 0x1b2   : >> { %3931 = vmatprep.subr.bf16.mxu0 %v4477_v30 }
 0x1b5   : >> { %3932 = vmatpush3.bf16.msra.mxu0 %v4073_v10 }
 0x1b6   : > { %1940 = vmatprep.subr.bf16.mxu0 (%p689_p6), %v4084_v15 }
 0x1b8   : >> { %3934 = vmatmul.mubr.bf16.vlgmr.msra.gmra.mxu0 %v4682_v27  ;;  %v4090_v27 = vld [vmem:[%s5337_s14 + $0xa4] ss:$16 sps:$4 sm:$0xff] (%p689_p6)  }
 0x253   : >> { %v920_v47 = vpop.f32.mrf.mxu1 }
 0x254   : >> { %v921_v53 = vadd.f32 %v3467_v49, %v920_v47 }
 0x255   : >> { %v3915_v50 = vpop.f32.mrf.mxu1 }
 0x257   : >> { %v923_v52 = vpop.f32.mrf.mxu1 }
 0x258   : >> { %v804_v48 = vpop.f32.mrf.mxu0  ;;  %v924_v54 = vadd.f32 %v3467_v49, %v923_v52 }
 0x259   : >> { %v3916_v56 = vpop.f32.mrf.mxu1  ;;  %v805_v61 = vadd.f32 %v3457_v59, %v804_v48 }
 0x25a   : >> { %v3895_v51 = vpop.f32.mrf.mxu0  ;;  %v927_v57 = vpack.c.bf16 %v924_v54, %v921_v53 }
 0x25c   : >> { %v807_v55 = vpop.f32.mrf.mxu0  ;;  %v1049_v60 = vsel %vm1044_vm1, %v927_v57, 0 }
 0x25d   : >> { %3938 = vmatpush3.bf16.xpose.msra.mxu1 %v1049_v60  ;;  %v808_v62 = vadd.f32 %v3457_v59, %v807_v55  ;;  %v4075_v59 = vld [vmem:[%s1192_s2] sm:$0xff]  }
 0x25e   : >> { %v3896_v58 = vpop.f32.mrf.mxu0  ;;  %3943 = vmatprep.subr.bf16.mxu1 %v4477_v30 }
 0x25f   : >> { %v811_v63 = vpack.c.bf16 %v808_v62, %v805_v61  ;;  %v4074_v58 = vld [vmem:[%s1192_s2 + $0x8] sm:$0xff]   ;;  %s3710_s2 = sshll.u32 (%p689_p6), %s4608_s1, 9 }
 0x260   : > { %s5240_s21 = scalar_lea.hbm (%p689_p6), %s5342_s19, %s3710_s2 }
 0x264   : >> { %3940 = vmatmul.mubr.msk.bf16.vlgmr.msra.gmra.mxu1 %vm1044_vm1, %v811_v63 }
 0x265   : >> { %3945 = vmatprep.mubr.msk.bf16.mxu1 %vm4478_vm0, %v4477_v30 }
 0x278   : >> { %v1036_v41 = vpop.f32.mrf.mxu0 }
 0x279   : >> { %v1037_v45 = vadd.f32 %v3477_v43, %v1036_v41  ;;  %v4113_v41 = vld [vmem:[%s5337_s14 + $0x1e4] ss:$16 sps:$4 sm:$0xff] (%p689_p6)  }
 0x27a   : >> { %v3935_v42 = vpop.f32.mrf.mxu0 }
 0x27b   : > { %v4115_v42 = vld [vmem:[%s5337_s14 + $0x2c0] ss:$16 sps:$4 sm:$0xff] (%p689_p6)  }
 0x27c   : >> { %v1039_v44 = vpop.f32.mrf.mxu0 }
 0x27d   : >> { %v1040_v47 = vadd.f32 %v3477_v43, %v1039_v44  ;;  %v4116_v43 = vld [vmem:[%s5337_s14 + $0x1e0] ss:$16 sps:$4 sm:$0xff] (%p689_p6)   ;;  %v4117_v44 = vld [vmem:[%s5337_s14 + $0x2a4] ss:$16 sps:$4 sm:$0xff] (%p689_p6)  }
 0x27e   : >> { %v3936_v46 = vpop.f32.mrf.mxu0 }
 0x27f   : >> { %v1043_v48 = vpack.c.bf16 %v1040_v47, %v1037_v45  ;;  %v4119_v45 = vld [vmem:[%s5337_s14 + $0x1c4] ss:$16 sps:$4 sm:$0xff] (%p689_p6)   ;;  %v4121_v46 = vld [vmem:[%s5337_s14 + $0x2a0] ss:$16 sps:$4 sm:$0xff] (%p689_p6)  }
 0x280   : > { %v4122_v47 = vld [vmem:[%s5337_s14 + $0x1c0] ss:$16 sps:$4 sm:$0xff] (%p689_p6)  }
 0x281   : >> { %3944 = vmatpush3.bf16.msra.mxu1 %v1043_v48  ;;  %v4123_v48 = vld [vmem:[%s5337_s14 + $0x284] ss:$16 sps:$4 sm:$0xff] (%p689_p6)  }
 0x282   : >> { %3949 = vmatprep.subr.bf16.mxu1 %v4477_v30 }
 0x324   : >> { %v1085_v17 = vpop.f32.mrf.mxu1 }
 0x325   : >> { %v1092_v18 = vmul.f32 0.17677669, %v1085_v17  ;;  %v4095_v17 = vld [vmem:[%s5337_s14 + $0x80] ss:$16 sps:$4 sm:$0xff] (%p689_p6)  }
 0x326   : >> { %v3941_v19 = vpop.f32.mrf.mxu1 }
 0x327   : >> { %v1101_v20 = vsel %vm1100_vm3, %v1092_v18, -1e+09  ;;  %v4096_v18 = vld [vmem:[%s5337_s14 + $0x64] ss:$16 sps:$4 sm:$0xff] (%p689_p6)   ;;  %v4098_v19 = vld [vmem:[%s5337_s14 + $0x60] ss:$16 sps:$4 sm:$0xff] (%p689_p6)  }
 0x328   : >> { %v1088_v21 = vpop.f32.mrf.mxu1  ;;  %v1104_v22 = vsel %vm1103_vm4, %v1101_v20, -inf }
 0x329   : >> { %v1093_v23 = vmul.f32 0.17677669, %v1088_v21  ;;  %1105 = vmax.xlane.f32.xlu0 %v1104_v22 }
 0x32a   : >> { %v3942_v24 = vpop.f32.mrf.mxu1 }
 0x32b   : >> { %v1102_v25 = vsel %vm1100_vm3, %v1093_v23, -1e+09 }
 0x32c   : >> { %v1107_v26 = vsel %vm1103_vm4, %v1102_v25, -inf }
 0x32d   : >> { %1108 = vmax.xlane.f32.xlu0 %v1107_v26 }
 0x3b2   : >> { %v1106_v31 = vpop.xlane.xlu0 %1105 }
 0x3b3   : >> { %v1110_v32 = vsub.f32 %v1101_v20, %v1106_v31 }
 0x3b5   : >> { %v1112_v33 = vmul.f32 1.442695, %v1110_v32  ;;  %v4099_v32 = vld [vmem:[%s5337_s14 + $0x44] ss:$16 sps:$4 sm:$0xff] (%p689_p6)  }
 0x3b6   : >> { %v1109_v34 = vpop.xlane.xlu0 %1108 }
 0x3b7   : >> { %4076 = vpow2.f32 %v1112_v33  ;;  %v1111_v35 = vsub.f32 %v1102_v25, %v1109_v34  ;;  %v4101_v33 = vld [vmem:[%s5337_s14 + $0x40] ss:$16 sps:$4 sm:$0xff] (%p689_p6)   ;;  %v4102_v34 = vld [vmem:[%s5337_s14 + $0x24] ss:$16 sps:$4 sm:$0xff] (%p689_p6)  }
 0x3b9   : >> { %v1114_v36 = vmul.f32 1.442695, %v1111_v35  ;;  %v4104_v35 = vld [vmem:[%s5337_s14 + $0x20] ss:$16 sps:$4 sm:$0xff] (%p689_p6)  }
 0x3bb   : >> { %4078 = vpow2.f32 %v1114_v36  ;;  %v4105_v36 = vld [vmem:[%s5337_s14 + $0x2e4] ss:$16 sps:$4 sm:$0xff] (%p689_p6)  }
 0x3c4   : >> { %v4077_v37 = vpop.eup %4076 }
 0x3c5   : >> { %v1116_v38 = vsel %vm1103_vm4, %v4077_v37, 0.0 }
 0x3c6   : >> { %1117 = vadd.xlane.f32.xlu1 %v1116_v38  ;;  %v4109_v38 = vld [vmem:[%s5337_s14 + $0x2e0] ss:$16 sps:$4 sm:$0xff] (%p689_p6)  }
 0x3c8   : >> { %v4079_v39 = vpop.eup %4078 }
 0x3c9   : >> { %v1119_v40 = vsel %vm1103_vm4, %v4079_v39, 0.0 }
 0x3ca   : >> { %1120 = vadd.xlane.f32.xlu1 %v1119_v40  ;;  %v4111_v40 = vld [vmem:[%s5337_s14 + $0x2c4] ss:$16 sps:$4 sm:$0xff] (%p689_p6)  }
 0x44f   : >> { %v1118_v49 = vpop.xlane.xlu1 %1117 }
 0x450   : >> { %4080 = vrcp.f32 %v1118_v49  ;;  %v4125_v49 = vld [vmem:[%s5337_s14 + $0x1a4] ss:$16 sps:$4 sm:$0xff] (%p689_p6)  }
 0x453   : >> { %v1121_v50 = vpop.xlane.xlu1 %1120 }
 0x454   : >> { %4082 = vrcp.f32 %v1121_v50  ;;  %v4127_v50 = vld [vmem:[%s5337_s14 + $0x280] ss:$16 sps:$4 sm:$0xff] (%p689_p6)  }
 0x45d   : >> { %v4081_v51 = vpop.eup %4080 }
 0x45e   : >> { %v1124_v52 = vmul.f32 %v4081_v51, %v4077_v37  ;;  %v4107_v37 = vld [vmem:[%s5337_s14 + $0x4] ss:$16 sps:$4 sm:$0xff] (%p689_p6)   ;;  %v4128_v51 = vld [vmem:[%s5337_s14 + $0x1a0] ss:$16 sps:$4 sm:$0xff] (%p689_p6)  }
 0x460   : >> { %v3705_v53 = vpack.c.bf16 %v1124_v52, %v1124_v52 }
 0x461   : >> { %v4083_v54 = vpop.eup %4082 }
 0x462   : >> { %v1125_v55 = vmul.f32 %v4083_v54, %v4079_v39  ;;  %1138 = vst.msk [vmem:[%s1136_s24] sm:$0xf] %vm1137_vm5, %v3705_v53  ;;  %v4110_v39 = vld [vmem:[%s5337_s14] ss:$16 sps:$4 sm:$0xff] (%p689_p6)   ;;  %v4131_v53 = vld [vmem:[%s5337_s14 + $0x184] ss:$16 sps:$4 sm:$0xff] (%p689_p6)  }
 0x463   : > { %v4133_v54 = vld [vmem:[%s5337_s14 + $0x260] ss:$16 sps:$4 sm:$0xff] (%p689_p6)  }
 0x464   : >> { %v3706_v56 = vpack.c.bf16 %v1125_v55, %v1125_v55  ;;  %v1144_v57 = vpack.c.bf16 %v1125_v55, %v1124_v52  ;;  %v4129_v52 = vld [vmem:[%s5337_s14 + $0x264] ss:$16 sps:$4 sm:$0xff] (%p689_p6)   ;;  %v4134_v55 = vld [vmem:[%s5337_s14 + $0x180] ss:$16 sps:$4 sm:$0xff] (%p689_p6)  }
 0x466   : >> { %1139 = vst.msk [vmem:[%s1136_s24 + $0x4] sm:$0xf] %vm1137_vm5, %v3706_v56  ;;  %3946 = vmatmul.mubr.msk.bf16.vlgmr.msra.gmra.mxu1 %vm1103_vm4, %v1144_v57  ;;  %v4135_v56 = vld [vmem:[%s5337_s14 + $0x244] ss:$16 sps:$4 sm:$0xff] (%p689_p6)   ;;  %s4354_s24 = scalar_lea.vmem (%p689_p6), %s5242_s26, 512 }
 0x467   : >> { %3953 = vmatprep.mubr.msk.bf16.mxu1 %vm4478_vm0, %v4477_v30  ;;  %3950 = vmatpush3.bf16.msra.mxu1 %v4074_v58  ;;  %v4137_v57 = vld [vmem:[%s5337_s14 + $0x164] ss:$16 sps:$4 sm:$0xff] (%p689_p6)   ;;  %v4139_v58 = vld [vmem:[%s5337_s14 + $0x240] ss:$16 sps:$4 sm:$0xff] (%p689_p6)   ;;  %p4355_p9 = scmp.ne.s32.totalorder (%p689_p6), %s5242_s26, %s4354_s24  ;;  %p4362_p13 = scmp.lt.s32.totalorder (%p689_p6), %s4360_s29, %s4354_s24 }
 0x468   : >> { %3951 = vmatprep.subr.bf16.mxu1 %v4477_v30 }
 0x469   : > { %p4356_p10 = pnand (%p689_p6), %p4355_p9, %p4625_p5  ;;  %p4363_p0 = por (%p689_p6), %p4362_p13, %p4361_p12 }
 0x46b   : >> { %3952 = vmatpush3.bf16.msra.mxu1 %v4075_v59  ;;  %v4140_v59 = vld [vmem:[%s5337_s14 + $0x160] ss:$16 sps:$4 sm:$0xff] (%p689_p6)   ;;  %p4357_p11 = pneg (%p689_p6), %p4356_p10 }
 0x46c   : > { %1983 = vmatprep.subr.bf16.mxu1 (%p689_p6), %v4105_v36 }
 0x46d   : > { %p4364_p1 = pnand (%p689_p6), %p4363_p0, %p4357_p11 }
 0x526   : >> { %v1182_v60 = vpop.f32.mrf.mxu1 }
 0x528   : >> { %v3947_v61 = vpop.f32.mrf.mxu1 }
 0x529   : > { %v4143_v61 = vld [vmem:[%s5337_s14 + $0x144] ss:$16 sps:$4 sm:$0xff] (%p689_p6)  }
 0x52a   : >> { %v1185_v62 = vpop.f32.mrf.mxu1 }
 0x52b   : >> { %v1189_v63 = vpack.c.bf16 %v1185_v62, %v1182_v60  ;;  %v4141_v60 = vld [vmem:[%s5337_s14 + $0x224] ss:$16 sps:$4 sm:$0xff] (%p689_p6)   ;;  %v4145_v62 = vld [vmem:[%s5337_s14 + $0x220] ss:$16 sps:$4 sm:$0xff] (%p689_p6)  }
 0x52c   : >> { %v3948_v3 = vpop.f32.mrf.mxu1 }
 0x52d   : >> { %3954 = vmatmul.mubr.msk.bf16.vlgmr.msra.gmra.mxu1 %vm1044_vm1, %v1189_v63  ;;  %v4480_v63 = vmov (%p689_p6), 0   ;;  %v4146_v3 = vld [vmem:[%s5337_s14 + $0x140] ss:$16 sps:$4 sm:$0xff] (%p689_p6)  }
 0x52e   : > { %1984 = vmatpush1.bf16.msra.mxu1 (%p689_p6), %v4109_v38  ;;  %2015 = vmatprep.mubr.bf16.mxu1 (%p689_p6), %v4480_v63 }
 0x52f   : > { %1985 = vmatprep.subr.bf16.mxu1 (%p689_p6), %v4111_v40 }
 0x532   : > { %1986 = vmatpush1.bf16.msra.mxu1 (%p689_p6), %v4115_v42  ;;  %v4161_v42 = vld [vmem:[%s5337_s14 + $0xcc] ss:$16 sps:$4 sm:$0xff] (%p689_p6)  }
 0x533   : > { %1987 = vmatprep.subr.bf16.mxu1 (%p689_p6), %v4117_v44 }
 0x536   : > { %1988 = vmatpush1.bf16.msra.mxu1 (%p689_p6), %v4121_v46  ;;  %v4159_v46 = vld [vmem:[%s5337_s14 + $0xc8] ss:$16 sps:$4 sm:$0xff] (%p689_p6)  }
 0x537   : > { %1989 = vmatprep.subr.bf16.mxu1 (%p689_p6), %v4123_v48 }
 0x53a   : > { %1990 = vmatpush1.bf16.msra.mxu1 (%p689_p6), %v4127_v50  ;;  %v4167_v50 = vld [vmem:[%s5337_s14 + $0xac] ss:$16 sps:$4 sm:$0xff] (%p689_p6)  }
 0x53b   : > { %1991 = vmatprep.subr.bf16.mxu1 (%p689_p6), %v4129_v52  ;;  %v4170_v52 = vld [vmem:[%s5337_s14 + $0x2cc] ss:$16 sps:$4 sm:$0xff] (%p689_p6)  }
 0x53e   : > { %1992 = vmatpush1.bf16.msra.mxu1 (%p689_p6), %v4133_v54  ;;  %v4168_v54 = vld [vmem:[%s5337_s14 + $0x2c8] ss:$16 sps:$4 sm:$0xff] (%p689_p6)  }
 0x53f   : > { %1993 = vmatprep.subr.bf16.mxu1 (%p689_p6), %v4135_v56  ;;  %v4176_v56 = vld [vmem:[%s5337_s14 + $0x2ac] ss:$16 sps:$4 sm:$0xff] (%p689_p6)  }
 0x542   : > { %1994 = vmatpush1.bf16.msra.mxu1 (%p689_p6), %v4139_v58  ;;  %v4174_v58 = vld [vmem:[%s5337_s14 + $0x2a8] ss:$16 sps:$4 sm:$0xff] (%p689_p6)  }
 0x543   : > { %1995 = vmatprep.subr.bf16.mxu1 (%p689_p6), %v4141_v60  ;;  %v4182_v60 = vld [vmem:[%s5337_s14 + $0x28c] ss:$16 sps:$4 sm:$0xff] (%p689_p6)  }
 0x546   : > { %1996 = vmatpush1.bf16.msra.mxu1 (%p689_p6), %v4145_v62  ;;  %v4180_v62 = vld [vmem:[%s5337_s14 + $0x288] ss:$16 sps:$4 sm:$0xff] (%p689_p6)  }
 0x5ed   : >> { %v1246_v4 = vpop.f32.mrf.mxu1 }
 0x5ee   : >> { %v1253_v5 = vadd.f32 %v4468_v29, %v1246_v4   ;;  %v4147_v4 = vld [vmem:[%s5337_s14 + $0x204] ss:$16 sps:$4 sm:$0xff] (%p689_p6)  }
 0x5ef   : >> { %v3955_v6 = vpop.f32.mrf.mxu1  ;;  %1997 = vmatprep.subr.bf16.mxu1 (%p689_p6), %v4147_v4  ;;  %v4183_v4 = vld [vmem:[%s5337_s14 + $0x48] ss:$16 sps:$4 sm:$0xff] (%p689_p6)  }
 0x5f0   : >> { %v5371_v29 = vmov %v1253_v5  ;;  %691 = sbr.rel (!%p689_p6) target bundleno = 369 (0x171), region = 167  ;;  %v1255_v30 = vadd.f32 (%p689_p6), %v1253_v5, %v4661_v0  ;;  %v4086_v0 = vld [vmem:[%s5337_s14 + $0xe0] ss:$16 sps:$4 sm:$0xff] (%p689_p6)   ;;  %v4149_v5 = vld [vmem:[%s5337_s14 + $0x124] ss:$16 sps:$4 sm:$0xff] (%p689_p6)  }
 0x5f1   : >> { %v1249_v7 = vpop.f32.mrf.mxu1  ;;  %v3497_v29 = vld [vmem:[%s5334_s11] ss:$0 sm:$0xff] (%p689_p6)  ;;  %1941 = vmatpush1.bf16.msra.mxu0 (%p689_p6), %v4086_v0 }
 0x5f2   : >> { %v1254_v8 = vadd.f32 %v4464_v28, %v1249_v7   ;;  %v4832_v11 = vadd.f32 (%p689_p6), %v3497_v29, %v1255_v30  ;;  %1942 = vmatprep.subr.bf16.mxu0 (%p689_p6), %v4087_v1  ;;  %v4151_v6 = vld [vmem:[%s5337_s14 + $0x200] ss:$16 sps:$4 sm:$0xff] (%p689_p6)  }
 0x5f3   : >> { %v3956_v9 = vpop.f32.mrf.mxu1  ;;  %v4152_v7 = vld [vmem:[%s5337_s14 + $0x120] ss:$16 sps:$4 sm:$0xff] (%p689_p6)   ;;  %1998 = vmatpush1.bf16.msra.mxu1 (%p689_p6), %v4151_v6  ;;  %v4191_v6 = vld [vmem:[%s5337_s14 + $0x2c] ss:$16 sps:$4 sm:$0xff] (%p689_p6)  }
 0x5f4   : >> { %v5370_v28 = vmov %v1254_v8  ;;  %v1256_v10 = vadd.f32 (%p689_p6), %v1254_v8, %v4666_v2  ;;  %1268 = vadd.xlane.f32.xlu0 (%p689_p6), %v4832_v11  ;;  %v4089_v2 = vld [vmem:[%s5337_s14 + $0xc0] ss:$16 sps:$4 sm:$0xff] (%p689_p6)   ;;  %v4155_v8 = vld [vmem:[%s5337_s14 + $0xec] ss:$16 sps:$4 sm:$0xff] (%p689_p6)   ;;  %v4156_v9 = vld [vmem:[%s5337_s14 + $0x104] ss:$16 sps:$4 sm:$0xff] (%p689_p6)  }
 0x5f5   : > { %v4092_v28 = vld [vmem:[%s5337_s14 + $0xa0] ss:$16 sps:$4 sm:$0xff]   ;;  %1943 = vmatpush1.bf16.msra.mxu0 %v4089_v2  ;;  %2026 = vmatprep.subr.bf16.mxu1 %v4155_v8  ;;  %v4189_v8 = vld [vmem:[%s5337_s14 + $0x28] ss:$16 sps:$4 sm:$0xff]  }
 0x5f6   : > { %v4835_v14 = vadd.f32 %v3497_v29, %v1256_v10  ;;  %1944 = vmatprep.subr.bf16.mxu0 %v4090_v27  ;;  %v4158_v30 = vld [vmem:[%s5337_s14 + $0x100] ss:$16 sps:$4 sm:$0xff]   ;;  %v4164_v29 = vld [vmem:[%s5337_s14 + $0x2ec] ss:$16 sps:$4 sm:$0xff]  }
 0x5f8   : > { %1270 = vadd.xlane.f32.xlu0 %v4835_v14 }
 0x5f9   : > { %1945 = vmatpush1.bf16.msra.mxu0 %v4092_v28 }
 0x5fa   : > { %1946 = vmatprep.subr.bf16.mxu0 %v4093_v16 }
 0x5fd   : > { %1947 = vmatpush1.bf16.msra.mxu0 %v4095_v17  ;;  %v3498_v17 = vld [vmem:[%s5335_s12] ss:$0 sm:$0xff] }
 0x5fe   : > { %1948 = vmatprep.subr.bf16.mxu0 %v4096_v18 }
 0x601   : > { %1949 = vmatpush1.bf16.msra.mxu0 %v4098_v19 }
 0x602   : > { %1950 = vmatprep.subr.bf16.mxu0 %v4099_v32 }
 0x605   : > { %1951 = vmatpush1.bf16.msra.mxu0 %v4101_v33 }
 0x606   : > { %1952 = vmatprep.subr.bf16.mxu0 %v4102_v34 }
 0x609   : > { %1953 = vmatpush1.bf16.msra.mxu0 %v4104_v35 }
 0x60a   : > { %1954 = vmatprep.subr.bf16.mxu0 %v4107_v37  ;;  %v4153_v37 = vld [vmem:[%s5337_s14 + $0xe8] ss:$16 sps:$4 sm:$0xff]  }
 0x60d   : > { %1955 = vmatpush1.bf16.msra.mxu0 %v4110_v39 }
 0x60e   : > { %1956 = vmatprep.subr.bf16.mxu0 %v4113_v41 }
 0x611   : > { %1957 = vmatpush2.bf16.msra.mxu0 %v4116_v43 }
 0x612   : > { %1958 = vmatprep.subr.bf16.mxu0 %v4119_v45 }
 0x615   : > { %1959 = vmatpush2.bf16.msra.mxu0 %v4122_v47 }
 0x616   : > { %1960 = vmatprep.subr.bf16.mxu0 %v4125_v49  ;;  %v4162_v49 = vld [vmem:[%s5337_s14 + $0x2e8] ss:$16 sps:$4 sm:$0xff]  }
 0x619   : > { %1961 = vmatpush2.bf16.msra.mxu0 %v4128_v51 }
 0x61a   : > { %1962 = vmatprep.subr.bf16.mxu0 %v4131_v53  ;;  %v4165_v53 = vld [vmem:[%s5337_s14 + $0xa8] ss:$16 sps:$4 sm:$0xff]  }
 0x61d   : > { %1963 = vmatpush2.bf16.msra.mxu0 %v4134_v55  ;;  %v4173_v55 = vld [vmem:[%s5337_s14 + $0x8c] ss:$16 sps:$4 sm:$0xff]  }
 0x61e   : > { %1964 = vmatprep.subr.bf16.mxu0 %v4137_v57  ;;  %v4171_v57 = vld [vmem:[%s5337_s14 + $0x88] ss:$16 sps:$4 sm:$0xff]  }
 0x621   : > { %1965 = vmatpush2.bf16.msra.mxu0 %v4140_v59  ;;  %v4179_v59 = vld [vmem:[%s5337_s14 + $0x6c] ss:$16 sps:$4 sm:$0xff]  }
 0x622   : > { %1966 = vmatprep.subr.bf16.mxu0 %v4143_v61  ;;  %v4177_v61 = vld [vmem:[%s5337_s14 + $0x68] ss:$16 sps:$4 sm:$0xff]  }
 0x625   : > { %1967 = vmatpush2.bf16.msra.mxu0 %v4146_v3  ;;  %v4188_v3 = vld [vmem:[%s5337_s14 + $0x26c] ss:$16 sps:$4 sm:$0xff]  }
 0x626   : > { %1968 = vmatprep.subr.bf16.mxu0 %v4149_v5  ;;  %v4186_v5 = vld [vmem:[%s5337_s14 + $0x268] ss:$16 sps:$4 sm:$0xff]  }
 0x629   : > { %1969 = vmatpush2.bf16.msra.mxu0 %v4152_v7  ;;  %v4194_v7 = vld [vmem:[%s5337_s14 + $0x24c] ss:$16 sps:$4 sm:$0xff]  }
 0x62a   : > { %1970 = vmatprep.subr.bf16.mxu0 %v4156_v9  ;;  %v4192_v9 = vld [vmem:[%s5337_s14 + $0x248] ss:$16 sps:$4 sm:$0xff]  }
 0x62d   : > { %1971 = vmatpush2.bf16.msra.mxu0 %v4158_v30  ;;  %v4197_v30 = vld [vmem:[%s5337_s14 + $0xc] ss:$16 sps:$4 sm:$0xff]  }
 0x62e   : > { %2069 = vmatprep.subr.bf16.mxu0 %v4164_v29  ;;  %v4200_v29 = vld [vmem:[%s5337_s14 + $0x22c] ss:$16 sps:$4 sm:$0xff]  }
 0x67d   : > { %v1269_v20 = vpop.xlane.xlu0 %1268 }
 0x67e   : > { %v1272_v21 = vmul.f32 0.0078125, %v1269_v20 }
 0x680   : > { %v4869_v22 = vsub.f32 %v4832_v11, %v1272_v21  ;;  %v3499_v21 = vld [vmem:[%s5336_s13] ss:$0 sm:$0xff] }
 0x681   : > { %v1271_v23 = vpop.xlane.xlu0 %1270 }
 0x682   : > { %v1273_v24 = vmul.f32 0.0078125, %v1271_v23  ;;  %v1276_v25 = vmul.f32 %v4869_v22, %v4869_v22 }
 0x684   : > { %v4874_v26 = vsub.f32 %v4835_v14, %v1273_v24  ;;  %1278 = vadd.xlane.f32.xlu1 %v1276_v25 }
 0x686   : > { %v1277_v31 = vmul.f32 %v4874_v26, %v4874_v26 }
 0x688   : > { %1280 = vadd.xlane.f32.xlu1 %v1277_v31 }
 0x70d   : > { %v1279_v10 = vpop.xlane.xlu1 %1278 }
 0x70e   : > { %v1282_v15 = vmul.f32 0.0078125, %v1279_v10  ;;  %v4195_v10 = vld [vmem:[%s5337_s14 + $0x8] ss:$16 sps:$4 sm:$0xff]  }
 0x710   : > { %v1284_v0 = vadd.f32 1e-05, %v1282_v15  ;;  %v4198_v15 = vld [vmem:[%s5337_s14 + $0x228] ss:$16 sps:$4 sm:$0xff]  }
 0x711   : > { %v1281_v1 = vpop.xlane.xlu1 %1280 }
 0x712   : > { %4324 = vrsqrt.f32 %v1284_v0  ;;  %v1283_v2 = vmul.f32 0.0078125, %v1281_v1  ;;  %v4203_v0 = vld [vmem:[%s5337_s14 + $0x1ec] ss:$16 sps:$4 sm:$0xff]  }
 0x713   : > { %v4206_v1 = vld [vmem:[%s5337_s14 + $0x20c] ss:$16 sps:$4 sm:$0xff]  }
 0x714   : > { %v1285_v27 = vadd.f32 1e-05, %v1283_v2  ;;  %v4201_v2 = vld [vmem:[%s5337_s14 + $0x1e8] ss:$16 sps:$4 sm:$0xff]  }
 0x716   : > { %4326 = vrsqrt.f32 %v1285_v27  ;;  %v4204_v27 = vld [vmem:[%s5337_s14 + $0x208] ss:$16 sps:$4 sm:$0xff]  }
 0x71f   : > { %v4325_v28 = vpop.eup %4324 }
 0x720   : > { %v1288_v16 = vmul.f32 %v4325_v28, %v4869_v22  ;;  %v4209_v28 = vld [vmem:[%s5337_s14 + $0x1cc] ss:$16 sps:$4 sm:$0xff]  }
 0x722   : > { %v1296_v20 = vmul.f32 %v3498_v17, %v1288_v16  ;;  %v4228_v16 = vld [vmem:[#allocation2 + $0x78] sm:$0xff]  }
 0x723   : > { %v4327_v18 = vpop.eup %4326 }
 0x724   : > { %v1289_v19 = vmul.f32 %v4327_v18, %v4874_v26  ;;  %v1304_v24 = vadd.f32 %v3499_v21, %v1296_v20  ;;  %v4212_v18 = vld [vmem:[%s5337_s14 + $0x1ac] ss:$16 sps:$4 sm:$0xff]   ;;  %v4230_v20 = vld [vmem:[#allocation2 + $0x70] sm:$0xff]  }
 0x726   : > { %v1297_v23 = vmul.f32 %v3498_v17, %v1289_v19  ;;  %v4207_v17 = vld [vmem:[%s5337_s14 + $0x1c8] ss:$16 sps:$4 sm:$0xff]  }
 0x727   : > { %v4229_v19 = vld [vmem:[#allocation2 + $0x38] sm:$0xff]  }
 0x728   : > { %v1305_v25 = vadd.f32 %v3499_v21, %v1297_v23  ;;  %v4210_v21 = vld [vmem:[%s5337_s14 + $0x1a8] ss:$16 sps:$4 sm:$0xff]   ;;  %v4215_v23 = vld [vmem:[%s5337_s14 + $0x18c] ss:$16 sps:$4 sm:$0xff]  }
 0x72a   : > { %v1306_v31 = vpack.c.bf16 %v1305_v25, %v1304_v24  ;;  %v4213_v24 = vld [vmem:[%s5337_s14 + $0x188] ss:$16 sps:$4 sm:$0xff]   ;;  %v4218_v25 = vld [vmem:[%s5337_s14 + $0x16c] ss:$16 sps:$4 sm:$0xff]  }
 0x72c   : > { %v1308_v32 = vshrl.u32 %v1306_v31, 16  ;;  %v1311_v34 = vshll.u32 %v1306_v31, 16  ;;  %v4216_v31 = vld [vmem:[%s5337_s14 + $0x168] ss:$16 sps:$4 sm:$0xff]  }
 0x72e   : > { %v1310_v33 = vrot.slane %v1308_v32, 7  ;;  %v4221_v32 = vld [vmem:[%s5337_s14 + $0x14c] ss:$16 sps:$4 sm:$0xff]  }
 0x730   : > { %v1313_v35 = vor.u32 %v1311_v34, %v1310_v33  ;;  %v1320_v26 = vsel %vm5007_vm8, %v1310_v33, 0  ;;  %v4219_v33 = vld [vmem:[%s5337_s14 + $0x148] ss:$16 sps:$4 sm:$0xff]   ;;  %v4224_v34 = vld [vmem:[%s5337_s14 + $0x12c] ss:$16 sps:$4 sm:$0xff]  }
 0x731   : > { %v1339_v39 = vrot.slane %v1320_v26, 1  ;;  %v1330_v41 = vshll.u32 %v1320_v26, 16  ;;  %v4227_v26 = vld [vmem:[%s5337_s14 + $0x10c] ss:$16 sps:$4 sm:$0xff]  }
 0x732   : > { %v5015_v36 = vsel %vm5007_vm8, 0, %v1313_v35  ;;  %v4222_v35 = vld [vmem:[%s5337_s14 + $0x128] ss:$16 sps:$4 sm:$0xff]  }
 0x733   : > { %v1338_v38 = vrot.slane %v5015_v36, 1  ;;  %v1325_v40 = vshll.u32 %v5015_v36, 16  ;;  %v1323_v44 = vshrl.u32 %v5015_v36, 16  ;;  %v1332_v48 = vrot.slane %v1330_v41, 1  ;;  %v4234_v41 = vld [vmem:[#allocation2 + $0x60] sm:$0xff]  }
 0x735   : > { %v5026_v43 = vsel %vm1337_vm9, %v1338_v38, %v1339_v39  ;;  %v1327_v45 = vrot.slane %v1325_v40, 1  ;;  %v4231_v38 = vld [vmem:[#allocation2 + $0x30] sm:$0xff]   ;;  %v4232_v39 = vld [vmem:[#allocation2 + $0x68] sm:$0xff]  }
 0x736   : > { %2016 = vmatmul.mubr.bf16.vlgmr.msra.gmra.mxu1 %v5026_v43  ;;  %v4233_v40 = vld [vmem:[#allocation2 + $0x28] sm:$0xff]  }
 0x737   : > { %2027 = vmatpush1.bf16.msra.mxu1 %v4153_v37  ;;  %v1328_v47 = vor.u32 %v1327_v45, %v1323_v44  ;;  %v4225_v37 = vld [vmem:[%s5337_s14 + $0x108] ss:$16 sps:$4 sm:$0xff]   ;;  %v4238_v45 = vld [vmem:[#allocation2 + $0x50] sm:$0xff]  }
 0x738   : > { %2028 = vmatprep.subr.bf16.mxu1 %v4161_v42  ;;  %v4235_v42 = vld [vmem:[#allocation2 + $0x20] sm:$0xff]   ;;  %v4237_v44 = vld [vmem:[#allocation2 + $0x18] sm:$0xff]  }
 0x739   : > { %v1333_v51 = vsel %vm1321_vm10, %v1328_v47, %v1332_v48  ;;  %v4240_v47 = vld [vmem:[#allocation2 + $0x48] sm:$0xff]  }
 0x73a   : > { %1972 = vmatprep.mubr.bf16.mxu0 %v1333_v51  ;;  %2058 = vmatprep.mubr.bf16.mxu1 %v1333_v51  ;;  %v4241_v48 = vld [vmem:[#allocation2 + $0x8] sm:$0xff]   ;;  %v4258_v51 = vld [vmem:[#allocation2 + $0xf8] sm:$0xff]  }
 0x73b   : > { %2029 = vmatpush1.bf16.msra.mxu1 %v4159_v46  ;;  %1973 = vmatmul.mubr.bf16.vlgmr.msra.gmra.mxu0 %v5015_v36  ;;  %v4239_v46 = vld [vmem:[#allocation2 + $0x10] sm:$0xff]  }
 0x73c   : > { %2070 = vmatpush1.bf16.msra.mxu0 %v4162_v49  ;;  %2030 = vmatprep.subr.bf16.mxu1 %v4167_v50  ;;  %v4243_v49 = vld [vmem:[#allocation2] sm:$0xff]   ;;  %v4244_v50 = vld [vmem:[#allocation2 + $0x178] sm:$0xff]  }
 0x73d   : > { %2071 = vmatprep.subr.bf16.mxu0 %v4170_v52  ;;  %2101 = vmatprep.mubr.bf16.mxu0 %v4480_v63  ;;  %v4185_v63 = vld [vmem:[%s5337_s14 + $0x4c] ss:$16 sps:$4 sm:$0xff]  }
 0x73e   : > { %v4259_v52 = vld [vmem:[#allocation2 + $0xb8] sm:$0xff]  }
 0x73f   : > { %2031 = vmatpush1.bf16.msra.mxu1 %v4165_v53  ;;  %v4262_v53 = vld [vmem:[#allocation2 + $0xf0] sm:$0xff]  }
 0x740   : > { %2072 = vmatpush1.bf16.msra.mxu0 %v4168_v54  ;;  %2032 = vmatprep.subr.bf16.mxu1 %v4173_v55  ;;  %v4263_v54 = vld [vmem:[#allocation2 + $0xb0] sm:$0xff]   ;;  %v4266_v55 = vld [vmem:[#allocation2 + $0xe8] sm:$0xff]  }
 0x741   : > { %2073 = vmatprep.subr.bf16.mxu0 %v4176_v56  ;;  %v4267_v56 = vld [vmem:[#allocation2 + $0xa8] sm:$0xff]  }
 0x743   : > { %2033 = vmatpush1.bf16.msra.mxu1 %v4171_v57  ;;  %v4270_v57 = vld [vmem:[#allocation2 + $0xe0] sm:$0xff]  }
 0x744   : > { %2074 = vmatpush1.bf16.msra.mxu0 %v4174_v58  ;;  %2034 = vmatprep.subr.bf16.mxu1 %v4179_v59  ;;  %v4271_v58 = vld [vmem:[#allocation2 + $0xa0] sm:$0xff]   ;;  %v4274_v59 = vld [vmem:[#allocation2 + $0xd8] sm:$0xff]  }
 0x745   : > { %2075 = vmatprep.subr.bf16.mxu0 %v4182_v60  ;;  %v4275_v60 = vld [vmem:[#allocation2 + $0x98] sm:$0xff]  }
 0x747   : > { %2035 = vmatpush1.bf16.msra.mxu1 %v4177_v61  ;;  %v4278_v61 = vld [vmem:[#allocation2 + $0xd0] sm:$0xff]  }
 0x748   : > { %2076 = vmatpush1.bf16.msra.mxu0 %v4180_v62  ;;  %2036 = vmatprep.subr.bf16.mxu1 %v4185_v63  ;;  %v4279_v62 = vld [vmem:[#allocation2 + $0x90] sm:$0xff]   ;;  %v4282_v63 = vld [vmem:[#allocation2 + $0xc8] sm:$0xff]  }
 0x749   : > { %2077 = vmatprep.subr.bf16.mxu0 %v4188_v3  ;;  %v4283_v3 = vld [vmem:[#allocation2 + $0x88] sm:$0xff]  }
 0x74b   : > { %2037 = vmatpush1.bf16.msra.mxu1 %v4183_v4  ;;  %v4286_v4 = vld [vmem:[#allocation2 + $0xc0] sm:$0xff]  }
 0x74c   : > { %2078 = vmatpush1.bf16.msra.mxu0 %v4186_v5  ;;  %2038 = vmatprep.subr.bf16.mxu1 %v4191_v6  ;;  %v4287_v5 = vld [vmem:[#allocation2 + $0x80] sm:$0xff]   ;;  %v4290_v6 = vld [vmem:[#allocation2 + $0x1f8] sm:$0xff]  }
 0x74d   : > { %2079 = vmatprep.subr.bf16.mxu0 %v4194_v7  ;;  %v5170_v7 = vld [vmem:[%s5338_s15] sm:$0xf] }
 0x74f   : > { %2039 = vmatpush1.bf16.msra.mxu1 %v4189_v8  ;;  %v1446_v8 = vsub.s32 1, %v4792_v12 }
 0x750   : > { %2080 = vmatpush1.bf16.msra.mxu0 %v4192_v9  ;;  %2040 = vmatprep.subr.bf16.mxu1 %v4197_v30  ;;  %v1443_v30 = vrot.slane %v5170_v7, %v1098_v13 }
 0x751   : > { %2081 = vmatprep.subr.bf16.mxu0 %v4200_v29  ;;  %v1447_v29 = vrot.slane %v5170_v7, %v1446_v8 }
 0x753   : > { %2041 = vmatpush1.bf16.msra.mxu1 %v4195_v10 }
 0x754   : > { %2082 = vmatpush1.bf16.msra.mxu0 %v4198_v15  ;;  %2042 = vmatprep.subr.bf16.mxu1 %v4203_v0 }
 0x755   : > { %2083 = vmatprep.subr.bf16.mxu0 %v4206_v1 }
 0x757   : > { %2043 = vmatpush2.bf16.msra.mxu1 %v4201_v2 }
 0x758   : > { %2084 = vmatpush1.bf16.msra.mxu0 %v4204_v27  ;;  %2044 = vmatprep.subr.bf16.mxu1 %v4209_v28 }
 0x759   : > { %3745 = vmatprep.subr.bf16.mxu0 %v4228_v16 }
 0x75b   : > { %2045 = vmatpush2.bf16.msra.mxu1 %v4207_v17  ;;  %2102 = vmatmul.mubr.bf16.vlgmr.msra.gmra.mxu0 %v5026_v43  ;;  %v4236_v43 = vld [vmem:[#allocation2 + $0x58] sm:$0xff]  }
 0x75c   : > { %2046 = vmatprep.subr.bf16.mxu1 %v4212_v18  ;;  %3746 = vmatpush3.bf16.msra.mxu0 %v4229_v19 }
 0x75d   : > { %3747 = vmatprep.subr.bf16.mxu0 %v4230_v20 }
 0x75f   : > { %2047 = vmatpush2.bf16.msra.mxu1 %v4210_v21 }
 0x760   : > { %2048 = vmatprep.subr.bf16.mxu1 %v4215_v23  ;;  %3748 = vmatpush3.bf16.msra.mxu0 %v4231_v38 }
 0x761   : > { %3749 = vmatprep.subr.bf16.mxu0 %v4232_v39 }
 0x763   : > { %2049 = vmatpush2.bf16.msra.mxu1 %v4213_v24 }
 0x764   : > { %2050 = vmatprep.subr.bf16.mxu1 %v4218_v25  ;;  %3750 = vmatpush3.bf16.msra.mxu0 %v4233_v40 }
 0x765   : > { %3751 = vmatprep.subr.bf16.mxu0 %v4234_v41 }
 0x767   : > { %2051 = vmatpush2.bf16.msra.mxu1 %v4216_v31 }
 0x768   : > { %2052 = vmatprep.subr.bf16.mxu1 %v4221_v32  ;;  %3752 = vmatpush3.bf16.msra.mxu0 %v4235_v42 }
 0x769   : > { %3753 = vmatprep.subr.bf16.mxu0 %v4236_v43 }
 0x76b   : > { %2053 = vmatpush2.bf16.msra.mxu1 %v4219_v33 }
 0x76c   : > { %2054 = vmatprep.subr.bf16.mxu1 %v4224_v34  ;;  %3754 = vmatpush3.bf16.msra.mxu0 %v4237_v44  ;;  %v4245_v44 = vld [vmem:[#allocation2 + $0x138] sm:$0xff]  }
 0x76d   : > { %3755 = vmatprep.subr.bf16.mxu0 %v4238_v45 }
 0x76f   : > { %2055 = vmatpush2.bf16.msra.mxu1 %v4222_v35 }
 0x770   : > { %2056 = vmatprep.subr.bf16.mxu1 %v4227_v26  ;;  %3756 = vmatpush3.bf16.msra.mxu0 %v4239_v46  ;;  %v4246_v46 = vld [vmem:[#allocation2 + $0x170] sm:$0xff]  }
 0x771   : > { %3757 = vmatprep.subr.bf16.mxu0 %v4240_v47 }
 0x773   : > { %2057 = vmatpush2.bf16.msra.mxu1 %v4225_v37 }
 0x774   : > { %3758 = vmatpush3.bf16.msra.mxu0 %v4241_v48  ;;  %3767 = vmatprep.subr.bf16.mxu1 %v4258_v51  ;;  %v4247_v51 = vld [vmem:[#allocation2 + $0x130] sm:$0xff]  }
 0x776   : > { %2059 = vmatmul.mubr.bf16.vlgmr.msra.gmra.mxu1 %v5015_v36  ;;  %v4242_v36 = vld [vmem:[#allocation2 + $0x40] sm:$0xff]  }
 0x777   : > { %3759 = vmatprep.subr.bf16.mxu0 %v4242_v36  ;;  %3768 = vmatpush3.bf16.msra.mxu1 %v4259_v52  ;;  %v4248_v52 = vld [vmem:[#allocation2 + $0x168] sm:$0xff]  }
 0x778   : > { %3760 = vmatpush3.bf16.msra.mxu0 %v4243_v49  ;;  %3769 = vmatprep.subr.bf16.mxu1 %v4262_v53 }
 0x779   : > { %3789 = vmatprep.subr.bf16.mxu0 %v4244_v50 }
 0x77b   : > { %3770 = vmatpush3.bf16.msra.mxu1 %v4263_v54 }
 0x77c   : > { %3771 = vmatprep.subr.bf16.mxu1 %v4266_v55 }
 0x77f   : > { %3772 = vmatpush3.bf16.msra.mxu1 %v4267_v56  ;;  %v4249_v56 = vld [vmem:[#allocation2 + $0x128] sm:$0xff]  }
 0x780   : > { %3773 = vmatprep.subr.bf16.mxu1 %v4270_v57  ;;  %v4250_v57 = vld [vmem:[#allocation2 + $0x160] sm:$0xff]  }
 0x783   : > { %3774 = vmatpush3.bf16.msra.mxu1 %v4271_v58  ;;  %v4251_v58 = vld [vmem:[#allocation2 + $0x120] sm:$0xff]  }
 0x784   : > { %3775 = vmatprep.subr.bf16.mxu1 %v4274_v59  ;;  %v4252_v59 = vld [vmem:[#allocation2 + $0x158] sm:$0xff]  }
 0x787   : > { %3776 = vmatpush3.bf16.msra.mxu1 %v4275_v60  ;;  %v4253_v60 = vld [vmem:[#allocation2 + $0x118] sm:$0xff]  }
 0x788   : > { %3777 = vmatprep.subr.bf16.mxu1 %v4278_v61  ;;  %v4254_v61 = vld [vmem:[#allocation2 + $0x150] sm:$0xff]  }
 0x78b   : > { %3778 = vmatpush3.bf16.msra.mxu1 %v4279_v62  ;;  %v4255_v62 = vld [vmem:[#allocation2 + $0x110] sm:$0xff]  }
 0x78c   : > { %3779 = vmatprep.subr.bf16.mxu1 %v4282_v63  ;;  %v4256_v63 = vld [vmem:[#allocation2 + $0x148] sm:$0xff]  }
 0x78f   : > { %3780 = vmatpush3.bf16.msra.mxu1 %v4283_v3 }
 0x790   : > { %3781 = vmatprep.subr.bf16.mxu1 %v4286_v4  ;;  %v4257_v4 = vld [vmem:[#allocation2 + $0x108] sm:$0xff]  }
 0x793   : > { %3782 = vmatpush3.bf16.msra.mxu1 %v4287_v5  ;;  %v4260_v5 = vld [vmem:[#allocation2 + $0x140] sm:$0xff]  }
 0x794   : > { %3811 = vmatprep.subr.bf16.mxu1 %v4290_v6 }
 0x7f6   : > { %v2017_v9 = vpop.f32.mrf.mxu1 }
 0x7f8   : > { %v2019_v10 = vpop.f32.mrf.mxu1 }
 0x7fa   : > { %v2021_v27 = vpop.f32.mrf.mxu1 }
 0x7fb   : > { %v1974_v15 = vpop.f32.mrf.mxu0 }
 0x7fc   : > { %v1975_v0 = vadd.f32 %v1974_v15, %v1443_v30  ;;  %v2023_v23 = vpop.f32.mrf.mxu1 }
 0x7fd   : > { %v1976_v1 = vpop.f32.mrf.mxu0 }
 0x7fe   : > { %v1977_v2 = vadd.f32 %v1976_v1, %v1447_v29  ;;  %v2018_v16 = vadd.f32 %v2017_v9, %v1975_v0 }
 0x7ff   : > { %v1978_v28 = vpop.f32.mrf.mxu0 }
 0x800   : > { %v1979_v17 = vadd.f32 %v1978_v28, %v1443_v30  ;;  %v2020_v19 = vadd.f32 %v2019_v10, %v1977_v2  ;;  %v2112_v24 = vmax.f32 %v2018_v16, 0.0  ;;  %v4261_v30 = vld [vmem:[#allocation2 + $0x100] sm:$0xff]   ;;  %v4264_v10 = vld [vmem:[#allocation2 + $0x278] sm:$0xff]   ;;  %v4268_v16 = vld [vmem:[#allocation2 + $0x270] sm:$0xff]  }
 0x801   : > { %v1980_v18 = vpop.f32.mrf.mxu0  ;;  %v4265_v2 = vld [vmem:[#allocation2 + $0x238] sm:$0xff]  }
 0x802   : > { %v2022_v20 = vadd.f32 %v2021_v27, %v1979_v17  ;;  %v1981_v21 = vadd.f32 %v1980_v18, %v1447_v29  ;;  %v2113_v13 = vmax.f32 %v2020_v19, 0.0  ;;  %v1450_v27 = vsub.s32 2, %v4792_v12 }
 0x803   : > { %v1454_v18 = vsub.s32 3, %v4792_v12  ;;  %v4276_v12 = vld [vmem:[#allocation2 + $0x260] sm:$0xff]  }
 0x804   : > { %v2116_v25 = vmax.f32 %v2022_v20, 0.0  ;;  %v2024_v31 = vadd.f32 %v2023_v23, %v1981_v21  ;;  %v1451_v21 = vrot.slane %v5170_v7, %v1450_v27  ;;  %v4269_v23 = vld [vmem:[#allocation2 + $0x230] sm:$0xff]  }
 0x806   : > { %v2120_v32 = vpack.c.bf16 %v2116_v25, %v2112_v24  ;;  %v2117_v33 = vmax.f32 %v2024_v31, 0.0  ;;  %v4272_v24 = vld [vmem:[#allocation2 + $0x268] sm:$0xff]   ;;  %v1455_v25 = vrot.slane %v5170_v7, %v1454_v18 }
 0x807   : > { %v4296_v18 = vld [vmem:[#allocation2 + $0x1e8] sm:$0xff]  }
 0x808   : > { %v2125_v34 = vshrl.u32 %v2120_v32, 16  ;;  %v2121_v35 = vpack.c.bf16 %v2117_v33, %v2113_v13  ;;  %v2128_v38 = vshll.u32 %v2120_v32, 16  ;;  %v4273_v33 = vld [vmem:[#allocation2 + $0x228] sm:$0xff]  }
 0x80a   : > { %v2132_v26 = vshrl.u32 %v2121_v35, 16  ;;  %v2127_v37 = vrot.slane %v2125_v34, 7  ;;  %v2135_v39 = vshll.u32 %v2121_v35, 16 }
 0x80c   : > { %v2134_v40 = vrot.slane %v2132_v26, 7  ;;  %v2130_v41 = vor.u32 %v2128_v38, %v2127_v37  ;;  %v5193_v6 = vsel %vm5007_vm8, %v2127_v37, 0 }
 0x80d   : > { %v2176_v29 = vshll.u32 %v5193_v6, 16 }
 0x80e   : > { %v2137_v42 = vor.u32 %v2135_v39, %v2134_v40  ;;  %v5179_v43 = vsel %vm5007_vm8, %v2134_v40, 0  ;;  %v5185_v48 = vsel %vm5007_vm8, 0, %v2130_v41  ;;  %v4277_v40 = vld [vmem:[#allocation2 + $0x220] sm:$0xff]  }
 0x80f   : > { %v2188_v36 = vshll.u32 %v5179_v43, 16  ;;  %v2171_v3 = vshll.u32 %v5185_v48, 16  ;;  %v2169_v9 = vshrl.u32 %v5185_v48, 16  ;;  %v2178_v1 = vrot.slane %v2176_v29, 1  ;;  %v4293_v29 = vld [vmem:[#allocation2 + $0x200] sm:$0xff]  }
 0x810   : > { %v2161_v45 = vsel %vm5007_vm8, 0, %v2137_v42  ;;  %v2232_v28 = vrot.slane %v5179_v43, 1  ;;  %v4280_v42 = vld [vmem:[#allocation2 + $0x258] sm:$0xff]  }
 0x811   : > { %v2183_v47 = vshll.u32 %v2161_v45, 16  ;;  %3051 = vmatprep.mubr.bf16.mxu0 %v2161_v45  ;;  %v2181_v49 = vshrl.u32 %v2161_v45, 16  ;;  %v2190_v54 = vrot.slane %v2188_v36, 1  ;;  %v2173_v8 = vrot.slane %v2171_v3, 1 }
 0x812   : > { %3052 = vmatmul.mubr.bf16.vlgmr.msra.gmra.mxu0 %v5185_v48  ;;  %v2231_v0 = vrot.slane %v2161_v45, 1 }
 0x813   : > { %v2185_v50 = vrot.slane %v2183_v47, 1  ;;  %3790 = vmatpush3.bf16.msra.mxu0 %v4245_v44  ;;  %v2174_v15 = vor.u32 %v2173_v8, %v2169_v9  ;;  %v4291_v9 = vld [vmem:[#allocation2 + $0x1b8] sm:$0xff]  }
 0x814   : > { %3791 = vmatprep.subr.bf16.mxu0 %v4246_v46  ;;  %v2233_v20 = vsel %vm1337_vm9, %v2231_v0, %v2232_v28 }
 0x815   : > { %v2186_v53 = vor.u32 %v2185_v50, %v2181_v49  ;;  %v2179_v17 = vsel %vm1321_vm10, %v2174_v15, %v2178_v1  ;;  %v4281_v49 = vld [vmem:[#allocation2 + $0x218] sm:$0xff]   ;;  %v4284_v50 = vld [vmem:[#allocation2 + $0x250] sm:$0xff]  }
 0x817   : > { %3792 = vmatpush3.bf16.msra.mxu0 %v4247_v51  ;;  %v2191_v55 = vsel %vm1321_vm10, %v2186_v53, %v2190_v54 }
 0x818   : > { %3133 = vmatprep.mubr.bf16.mxu0 %v2191_v55  ;;  %3793 = vmatprep.subr.bf16.mxu0 %v4248_v52 }
 0x81b   : > { %3794 = vmatpush3.bf16.msra.mxu0 %v4249_v56  ;;  %v2103_v19 = vpop.f32.mrf.mxu0  ;;  %v4285_v56 = vld [vmem:[#allocation2 + $0x210] sm:$0xff]  }
 0x81c   : > { %3795 = vmatprep.subr.bf16.mxu0 %v4250_v57  ;;  %v4288_v57 = vld [vmem:[#allocation2 + $0x248] sm:$0xff]  }
 0x81d   : > { %v2105_v31 = vpop.f32.mrf.mxu0 }
 0x81f   : > { %3796 = vmatpush3.bf16.msra.mxu0 %v4251_v58  ;;  %v2107_v26 = vpop.f32.mrf.mxu0 }
 0x820   : > { %3797 = vmatprep.subr.bf16.mxu0 %v4252_v59 }
 0x821   : > { %v2109_v45 = vpop.f32.mrf.mxu0 }
 0x823   : > { %3798 = vmatpush3.bf16.msra.mxu0 %v4253_v60 }
 0x824   : > { %3799 = vmatprep.subr.bf16.mxu0 %v4254_v61 }
 0x827   : > { %3800 = vmatpush3.bf16.msra.mxu0 %v4255_v62  ;;  %v4289_v62 = vld [vmem:[#allocation2 + $0x208] sm:$0xff]  }
 0x828   : > { %3801 = vmatprep.subr.bf16.mxu0 %v4256_v63 }
 0x82b   : > { %3802 = vmatpush3.bf16.msra.mxu0 %v4257_v4  ;;  %v4292_v4 = vld [vmem:[#allocation2 + $0x240] sm:$0xff]  }
 0x82c   : > { %3803 = vmatprep.subr.bf16.mxu0 %v4260_v5 }
 0x82f   : > { %3804 = vmatpush3.bf16.msra.mxu0 %v4261_v30 }
 0x830   : > { %3833 = vmatprep.subr.bf16.mxu0 %v4264_v10  ;;  %v4294_v10 = vld [vmem:[#allocation2 + $0x1f0] sm:$0xff]  }
 0x832   : > { %3134 = vmatmul.mubr.bf16.vlgmr.msra.gmra.mxu0 %v2179_v17  ;;  %v2229_v17 = vrot.slane %v5193_v6, 1  ;;  %v4302_v6 = vld [vmem:[#allocation2 + $0x1d0] sm:$0xff]  }
 0x833   : > { %3834 = vmatpush3.bf16.msra.mxu0 %v4265_v2  ;;  %3215 = vmatprep.mubr.bf16.mxu0 %v2233_v20  ;;  %v2228_v2 = vrot.slane %v5185_v48, 1 }
 0x834   : > { %3835 = vmatprep.subr.bf16.mxu0 %v4268_v16  ;;  %v4295_v16 = vld [vmem:[#allocation2 + $0x1b0] sm:$0xff]  }
 0x836   : > { %v2060_v13 = vpop.f32.mrf.mxu1 }
 0x837   : > { %v2061_v32 = vadd.f32 %v2060_v13, %v1451_v21  ;;  %3836 = vmatpush3.bf16.msra.mxu0 %v4269_v23  ;;  %v4297_v23 = vld [vmem:[#allocation2 + $0x1a8] sm:$0xff]   ;;  %v4301_v13 = vld [vmem:[#allocation2 + $0x198] sm:$0xff]  }
 0x838   : > { %v2062_v34 = vpop.f32.mrf.mxu1  ;;  %3837 = vmatprep.subr.bf16.mxu0 %v4272_v24  ;;  %v4298_v24 = vld [vmem:[#allocation2 + $0x1e0] sm:$0xff]  }
 0x839   : > { %v2063_v35 = vadd.f32 %v2062_v34, %v1455_v25  ;;  %v2104_v38 = vadd.f32 %v2103_v19, %v2061_v32  ;;  %v4303_v32 = vld [vmem:[#allocation2 + $0x190] sm:$0xff]  }
 0x83a   : > { %v2064_v37 = vpop.f32.mrf.mxu1 }
 0x83b   : > { %v2065_v39 = vadd.f32 %v2064_v37, %v1451_v21  ;;  %3838 = vmatpush3.bf16.msra.mxu0 %v4273_v33  ;;  %v2106_v43 = vadd.f32 %v2105_v31, %v2063_v35  ;;  %v2114_v46 = vmax.f32 %v2104_v38, 0.0  ;;  %v2230_v21 = vsel %vm1337_vm9, %v2228_v2, %v2229_v17  ;;  %v4300_v31 = vld [vmem:[#allocation2 + $0x1d8] sm:$0xff]   ;;  %v4304_v33 = vld [vmem:[#allocation2 + $0x1c8] sm:$0xff]   ;;  %v4306_v35 = vld [vmem:[#allocation2 + $0x1c0] sm:$0xff]  }
 0x83c   : > { %v2066_v41 = vpop.f32.mrf.mxu1  ;;  %3839 = vmatprep.subr.bf16.mxu0 %v4276_v12  ;;  %v4305_v12 = vld [vmem:[#allocation2 + $0x188] sm:$0xff]  }
 0x83d   : > { %v2108_v7 = vadd.f32 %v2107_v26, %v2065_v39  ;;  %v2067_v44 = vadd.f32 %v2066_v41, %v1455_v25  ;;  %v2115_v51 = vmax.f32 %v2106_v43, 0.0  ;;  %v4299_v25 = vld [vmem:[#allocation2 + $0x1a0] sm:$0xff]   ;;  %v4308_v41 = vld [vmem:[#allocation2 + $0x2f8] sm:$0xff]  }
 0x83e   : > { %v4307_v39 = vld [vmem:[#allocation2 + $0x180] sm:$0xff]  }
 0x83f   : > { %v2118_v47 = vmax.f32 %v2108_v7, 0.0  ;;  %v2110_v36 = vadd.f32 %v2109_v45, %v2067_v44  ;;  %3840 = vmatpush3.bf16.msra.mxu0 %v4277_v40  ;;  %v4309_v44 = vld [vmem:[#allocation2 + $0x2b8] sm:$0xff]  }
 0x840   : > { %3841 = vmatprep.subr.bf16.mxu0 %v4280_v42 }
 0x841   : > { %v2122_v52 = vpack.c.bf16 %v2118_v47, %v2114_v46  ;;  %v2119_v53 = vmax.f32 %v2110_v36, 0.0  ;;  %v4310_v46 = vld [vmem:[#allocation2 + $0x2f0] sm:$0xff]  }
 0x842   : > { %v4311_v36 = vld [vmem:[#allocation2 + $0x2b0] sm:$0xff]  }
 0x843   : > { %v2139_v54 = vshrl.u32 %v2122_v52, 16  ;;  %v2123_v55 = vpack.c.bf16 %v2119_v53, %v2115_v51  ;;  %3842 = vmatpush3.bf16.msra.mxu0 %v4281_v49  ;;  %v2142_v60 = vshll.u32 %v2122_v52, 16  ;;  %v4312_v49 = vld [vmem:[#allocation2 + $0x2e8] sm:$0xff]   ;;  %v4314_v51 = vld [vmem:[#allocation2 + $0x2e0] sm:$0xff]   ;;  %v4316_v53 = vld [vmem:[#allocation2 + $0x2d8] sm:$0xff]  }
 0x844   : > { %3843 = vmatprep.subr.bf16.mxu0 %v4284_v50  ;;  %v4313_v50 = vld [vmem:[#allocation2 + $0x2a8] sm:$0xff]   ;;  %v4315_v52 = vld [vmem:[#allocation2 + $0x2a0] sm:$0xff]  }
 0x845   : > { %v2146_v58 = vshrl.u32 %v2123_v55, 16  ;;  %v2141_v59 = vrot.slane %v2139_v54, 7  ;;  %v2149_v61 = vshll.u32 %v2123_v55, 16  ;;  %v4317_v54 = vld [vmem:[#allocation2 + $0x298] sm:$0xff]   ;;  %v4318_v55 = vld [vmem:[#allocation2 + $0x2d0] sm:$0xff]  }
 0x847   : > { %3844 = vmatpush3.bf16.msra.mxu0 %v4285_v56  ;;  %v2148_v63 = vrot.slane %v2146_v58, 7  ;;  %v2144_v3 = vor.u32 %v2142_v60, %v2141_v59  ;;  %v2166_v26 = vsel %vm5007_vm8, %v2141_v59, 0  ;;  %v4319_v56 = vld [vmem:[#allocation2 + $0x290] sm:$0xff]   ;;  %v4321_v58 = vld [vmem:[#allocation2 + $0x288] sm:$0xff]   ;;  %v4322_v59 = vld [vmem:[#allocation2 + $0x2c0] sm:$0xff]  }
 0x848   : > { %3845 = vmatprep.subr.bf16.mxu0 %v4288_v57  ;;  %v2200_v40 = vshll.u32 %v2166_v26, 16  ;;  %v4320_v57 = vld [vmem:[#allocation2 + $0x2c8] sm:$0xff]   ;;  %v4323_v60 = vld [vmem:[#allocation2 + $0x280] sm:$0xff]  }
 0x849   : > { %v2151_v5 = vor.u32 %v2149_v61, %v2148_v63  ;;  %v5206_v8 = vsel %vm5007_vm8, %v2148_v63, 0  ;;  %v5216_v0 = vsel %vm5007_vm8, 0, %v2144_v3 }
 0x84a   : > { %v2212_v1 = vshll.u32 %v5206_v8, 16  ;;  %v2195_v34 = vshll.u32 %v5216_v0, 16  ;;  %v2193_v38 = vshrl.u32 %v5216_v0, 16  ;;  %v2202_v7 = vrot.slane %v2200_v40, 1 }
 0x84b   : > { %3846 = vmatpush3.bf16.msra.mxu0 %v4289_v62  ;;  %v5210_v30 = vsel %vm5007_vm8, 0, %v2151_v5  ;;  %v2238_v45 = vrot.slane %v5206_v8, 1  ;;  %v2234_v61 = vrot.slane %v5216_v0, 1  ;;  %v2235_v62 = vrot.slane %v2166_v26, 1 }
 0x84c   : > { %v2207_v15 = vshll.u32 %v5210_v30, 16  ;;  %3092 = vmatprep.mubr.bf16.mxu1 %v5210_v30  ;;  %3847 = vmatprep.subr.bf16.mxu0 %v4292_v4  ;;  %v2205_v27 = vshrl.u32 %v5210_v30, 16  ;;  %v2214_v20 = vrot.slane %v2212_v1, 1  ;;  %v2197_v37 = vrot.slane %v2195_v34, 1 }
 0x84d   : > { %3093 = vmatmul.mubr.bf16.vlgmr.msra.gmra.mxu1 %v5216_v0  ;;  %v2237_v43 = vrot.slane %v5210_v30, 1  ;;  %v2236_v63 = vsel %vm1337_vm9, %v2234_v61, %v2235_v62 }
 0x84e   : > { %v2209_v28 = vrot.slane %v2207_v15, 1  ;;  %3812 = vmatpush3.bf16.msra.mxu1 %v4291_v9  ;;  %v2198_v42 = vor.u32 %v2197_v37, %v2193_v38 }
 0x84f   : > { %3848 = vmatpush3.bf16.msra.mxu0 %v4293_v29  ;;  %3813 = vmatprep.subr.bf16.mxu1 %v4294_v10  ;;  %v2239_v47 = vsel %vm1337_vm9, %v2237_v43, %v2238_v45 }
 0x850   : > { %v2210_v19 = vor.u32 %v2209_v28, %v2205_v27  ;;  %v2203_v22 = vsel %vm1321_vm10, %v2198_v42, %v2202_v7 }
 0x852   : > { %3814 = vmatpush3.bf16.msra.mxu1 %v4295_v16  ;;  %3216 = vmatmul.mubr.bf16.vlgmr.msra.gmra.mxu0 %v2230_v21  ;;  %v2215_v48 = vsel %vm1321_vm10, %v2210_v19, %v2214_v20 }
 0x853   : > { %3174 = vmatprep.mubr.bf16.mxu1 %v2215_v48  ;;  %3815 = vmatprep.subr.bf16.mxu1 %v4296_v18 }
 0x856   : > { %3816 = vmatpush3.bf16.msra.mxu1 %v4297_v23 }
 0x857   : > { %3817 = vmatprep.subr.bf16.mxu1 %v4298_v24 }
 0x85a   : > { %3818 = vmatpush3.bf16.msra.mxu1 %v4299_v25 }
 0x85b   : > { %3819 = vmatprep.subr.bf16.mxu1 %v4300_v31 }
 0x85e   : > { %3820 = vmatpush3.bf16.msra.mxu1 %v4301_v13 }
 0x85f   : > { %3821 = vmatprep.subr.bf16.mxu1 %v4302_v6 }
 0x862   : > { %3822 = vmatpush3.bf16.msra.mxu1 %v4303_v32 }
 0x863   : > { %3823 = vmatprep.subr.bf16.mxu1 %v4304_v33 }
 0x866   : > { %3824 = vmatpush3.bf16.msra.mxu1 %v4305_v12 }
 0x867   : > { %3825 = vmatprep.subr.bf16.mxu1 %v4306_v35 }
 0x86a   : > { %3826 = vmatpush3.bf16.msra.mxu1 %v4307_v39 }
 0x86b   : > { %3855 = vmatprep.subr.bf16.mxu1 %v4308_v41 }
 0x86d   : > { %3175 = vmatmul.mubr.bf16.vlgmr.msra.gmra.mxu1 %v2203_v22 }
 0x86e   : > { %3856 = vmatpush3.bf16.msra.mxu1 %v4309_v44  ;;  %3256 = vmatprep.mubr.bf16.mxu1 %v2239_v47 }
 0x86f   : > { %3857 = vmatprep.subr.bf16.mxu1 %v4310_v46 }
 0x872   : > { %3858 = vmatpush3.bf16.msra.mxu1 %v4311_v36 }
 0x873   : > { %3859 = vmatprep.subr.bf16.mxu1 %v4312_v49 }
 0x876   : > { %3860 = vmatpush3.bf16.msra.mxu1 %v4313_v50 }
 0x877   : > { %3861 = vmatprep.subr.bf16.mxu1 %v4314_v51 }
 0x87a   : > { %3862 = vmatpush3.bf16.msra.mxu1 %v4315_v52 }
 0x87b   : > { %3863 = vmatprep.subr.bf16.mxu1 %v4316_v53 }
 0x87e   : > { %3864 = vmatpush3.bf16.msra.mxu1 %v4317_v54 }
 0x87f   : > { %3865 = vmatprep.subr.bf16.mxu1 %v4318_v55 }
 0x882   : > { %3866 = vmatpush3.bf16.msra.mxu1 %v4319_v56 }
 0x883   : > { %3867 = vmatprep.subr.bf16.mxu1 %v4320_v57 }
 0x886   : > { %3868 = vmatpush3.bf16.msra.mxu1 %v4321_v58 }
 0x887   : > { %3869 = vmatprep.subr.bf16.mxu1 %v4322_v59 }
 0x88a   : > { %3870 = vmatpush3.bf16.msra.mxu1 %v4323_v60 }
 0x88d   : > { %3257 = vmatmul.mubr.bf16.vlgmr.msra.gmra.mxu1 %v2236_v63 }
 0x88e   : > { %4367 = shalt.err (!%p4364_p1)
}
 0x88f   : > { %s4368_s22 = scalar_lea.hbm %s5240_s21, 512  ;;  %s4372_s5 = scalar_lea.hbm %s5342_s19, 1024 }
 0x890   : > { %p4369_p2 = scmp.ne.s32.totalorder %s5240_s21, %s4368_s22  ;;  %p4373_p7 = scmp.lt.s32.totalorder %s5240_s21, %s5342_s19 }
 0x891   : > { %p4374_p8 = scmp.lt.s32.totalorder %s4372_s5, %s4368_s22 }
 0x892   : > { %p4370_p3 = pnand %p4369_p2, %p4625_p5 }
 0x893   : > { %p4375_p6 = por %p4374_p8, %p4373_p7 }
 0x894   : > { %p4371_p4 = pneg %p4370_p3 }
 0x896   : > { %p4376_p9 = pnand %p4375_p6, %p4371_p4 }
 0x898   : > { %4379 = shalt.err (!%p4376_p9)
}
 0x899   : > { %s4482_s24 = smov 64   ;;  %s4483_s28 = smov 4   ;;  %v3596_v28 = vld [vmem:[%s5340_s17] ss:$0 sm:$0xff] }
 0x89a   : > { %3962 = dma.vmem_to_hbm [thread:$0]  (%p4625_p5), %s5242_s26, 512, %s5240_s21, %s3275_s23, %s4482_s24, %s4482_s24, %s4483_s28  }
 0x89b   : > { %s3709_s26 = sshll.u32 %s4608_s1, 8  ;;  %s3288_s21 = sshll.u32 %s4684_s25, 4  ;;  %s5279_s21 = int_to_ptr.vmem [resolvable:$true] %s3288_s21 }
 0x89c   : > { %s5277_s2 = scalar_lea.hbm %s5341_s18, %s3709_s26  ;;  %s3270_s5 = scalar_lea.sflag [#allocation4], %s4672_s0 }
 0x89d   : > { %s4380_s4 = scalar_lea.vmem %s5279_s21, 256  ;;  %s4484_s1 = smov [#allocation5]  }
 0x89e   : > { %p4381_p10 = scmp.ne.s32.totalorder %s5279_s21, %s4380_s4  ;;  %s4384_s27 = sshll.u32 %s4484_s1, 4  ;;  %s4385_s27 = int_to_ptr.vmem [resolvable:$false] %s4384_s27 }
 0x89f   : > { %s4386_s24 = scalar_lea.vmem %s4385_s27, 512  ;;  %p4387_p13 = scmp.lt.s32.totalorder %s5279_s21, %s4385_s27 }
 0x8a0   : > { %p4382_p11 = pnand %p4381_p10, %p4625_p5  ;;  %p4388_p0 = scmp.lt.s32.totalorder %s4386_s24, %s4380_s4 }
 0x8a2   : > { %p4383_p12 = pneg %p4382_p11  ;;  %p4389_p1 = por %p4388_p0, %p4387_p13 }
 0x8a4   : > { %p4390_p2 = pnand %p4389_p1, %p4383_p12 }
 0x8d2   : > { %v3761_v3 = vpop.f32.mrf.mxu0 }
 0x8d4   : > { %v3762_v4 = vpop.f32.mrf.mxu0 }
 0x8d5   : > { %v3763_v27 = vadd.f32 %v3762_v4, %v3761_v3 }
 0x8d6   : > { %v3764_v5 = vpop.f32.mrf.mxu0 }
 0x8d7   : > { %v3054_v20 = vadd.f32 %v3763_v27, %v3596_v28 }
 0x8d8   : > { %v3765_v9 = vpop.f32.mrf.mxu0 }
 0x8d9   : > { %v3766_v21 = vadd.f32 %v3765_v9, %v3764_v5 }
 0x8db   : > { %v3057_v31 = vadd.f32 %v3766_v21, %v3596_v28 }
 0x8f2   : > { %v3805_v29 = vpop.f32.mrf.mxu0 }
 0x8f4   : > { %v3806_v15 = vpop.f32.mrf.mxu0 }
 0x8f5   : > { %v3807_v13 = vadd.f32 %v3806_v15, %v3805_v29 }
 0x8f6   : > { %v3808_v1 = vpop.f32.mrf.mxu0 }
 0x8f8   : > { %v3809_v16 = vpop.f32.mrf.mxu0 }
 0x8f9   : > { %v3810_v35 = vadd.f32 %v3809_v16, %v3808_v1 }
 0x90d   : > { %v3783_v8 = vpop.f32.mrf.mxu1 }
 0x90f   : > { %v3784_v30 = vpop.f32.mrf.mxu1 }
 0x910   : > { %v3785_v18 = vadd.f32 %v3784_v30, %v3783_v8 }
 0x911   : > { %v3786_v10 = vpop.f32.mrf.mxu1 }
 0x912   : > { %v3849_v19 = vpop.f32.mrf.mxu0  ;;  %v3095_v23 = vadd.f32 %v3785_v18, %v3054_v20 }
 0x913   : > { %v3787_v0 = vpop.f32.mrf.mxu1 }
 0x914   : > { %v3788_v24 = vadd.f32 %v3787_v0, %v3786_v10  ;;  %v3850_v25 = vpop.f32.mrf.mxu0  ;;  %v3136_v34 = vadd.f32 %v3807_v13, %v3095_v23 }
 0x915   : > { %v3851_v39 = vadd.f32 %v3850_v25, %v3849_v19 }
 0x916   : > { %v3098_v33 = vadd.f32 %v3788_v24, %v3057_v31  ;;  %v3852_v12 = vpop.f32.mrf.mxu0 }
 0x918   : > { %v3139_v40 = vadd.f32 %v3810_v35, %v3098_v33  ;;  %v3853_v41 = vpop.f32.mrf.mxu0 }
 0x919   : > { %v3854_v46 = vadd.f32 %v3853_v41, %v3852_v12 }
 0x92d   : > { %v3827_v2 = vpop.f32.mrf.mxu1 }
 0x92f   : > { %v3828_v17 = vpop.f32.mrf.mxu1 }
 0x930   : > { %v3829_v6 = vadd.f32 %v3828_v17, %v3827_v2 }
 0x931   : > { %v3830_v48 = vpop.f32.mrf.mxu1 }
 0x932   : > { %v3177_v26 = vadd.f32 %v3829_v6, %v3136_v34 }
 0x933   : > { %v3831_v32 = vpop.f32.mrf.mxu1 }
 0x934   : > { %v3832_v37 = vadd.f32 %v3831_v32, %v3830_v48  ;;  %v3218_v7 = vadd.f32 %v3851_v39, %v3177_v26 }
 0x936   : > { %v3180_v43 = vadd.f32 %v3832_v37, %v3139_v40 }
 0x938   : > { %v3221_v49 = vadd.f32 %v3854_v46, %v3180_v43 }
 0x94d   : > { %v3871_v38 = vpop.f32.mrf.mxu1 }
 0x94f   : > { %v3872_v42 = vpop.f32.mrf.mxu1 }
 0x950   : > { %v3873_v44 = vadd.f32 %v3872_v42, %v3871_v38 }
 0x951   : > { %v3874_v45 = vpop.f32.mrf.mxu1 }
 0x952   : > { %v3259_v22 = vadd.f32 %v3873_v44, %v3218_v7 }
 0x953   : > { %v3875_v47 = vpop.f32.mrf.mxu1 }
 0x954   : > { %v3265_v36 = vadd.f32 %v3259_v22, %v4832_v11  ;;  %v3876_v50 = vadd.f32 %v3875_v47, %v3874_v45 }
 0x956   : > { %3267 = vst [vmem:[%s4684_s25] sm:$0xff] %v3265_v36  ;;  %v3262_v51 = vadd.f32 %v3876_v50, %v3221_v49 }
 0x958   : > { %v3266_v52 = vadd.f32 %v3262_v51, %v4835_v14 }
 0x95a   : > { %3268 = vst [vmem:[%s4684_s25 + $0x8] sm:$0xff] %v3266_v52 }
 0x95b   : > { %4393 = shalt.err (!%p4390_p2)
}
 0x95c   : > { %s4394_s25 = scalar_lea.hbm %s5277_s2, 256  ;;  %s4398_s22 = scalar_lea.hbm %s5341_s18, 512 }
 0x95d   : > { %p4395_p3 = scmp.ne.s32.totalorder %s5277_s2, %s4394_s25  ;;  %p4399_p8 = scmp.lt.s32.totalorder %s5277_s2, %s5341_s18 }
 0x95e   : > { %p4400_p6 = scmp.lt.s32.totalorder %s4398_s22, %s4394_s25 }
 0x95f   : > { %p4396_p4 = pnand %p4395_p3, %p4625_p5 }
 0x960   : > { %p4401_p9 = por %p4400_p6, %p4399_p8 }
 0x961   : > { %p4397_p7 = pneg %p4396_p4 }
 0x963   : > { %p4402_p10 = pnand %p4401_p9, %p4397_p7 }
 0x965   : > { %4405 = shalt.err (!%p4402_p10)
}
 0x966   : > { %s4485_s20 = smov 128   ;;  %s4486_s4 = smov 8  }
 0x967   : > { %3961 = dma.vmem_to_hbm [thread:$0]  (%p4625_p5), %s5279_s21, 256, %s5277_s2, %s3270_s5, %s4485_s20, %s4485_s20, %s4486_s4  }
 0x968 PF: > { %s5374_s1 = sld [smem:[#allocation13_spill]] }
 0x969   : > { %s5375_s27 = sld [smem:[#allocation11_spill]] }
 0x96a   : > { %s5376_s24 = sld [smem:[#allocation16_spill]] }
 0x96e   : > { %p3978_p11 = scmp.ge.s32.totalorder %s5374_s1, 2 }
 0x96f   : > { %s3319_s28 = sand.u32 1, %s5375_s27  }
 0x970   : > { %p5377_p12 = scmp.ne.s32.totalorder %s5376_s24, 0  ;;  %s3320_s25 = scalar_lea.sflag [#allocation4], %s3319_s28 }
 0x972   : > { %p3970_p13 = pnand %p3978_p11, %p5377_p12 }
 0x974   : > { %p3971_p0 = pneg %p3970_p13 }
 0x976   : > { %4439 = dma.done.wait (%p3971_p0), %s3320_s25, 256  }
 0x977   : > { %4441 = vsyncadd (%p3971_p0), %s3320_s25, 4294967040  ;;  %s3329_s29 = scalar_lea.sflag [#allocation7], %s3319_s28 }
 0x978   : > { %4443 = dma.done.wait (%p3971_p0), %s3329_s29, 512  }
 0x979   : > { %4445 = vsyncadd (%p3971_p0), %s3329_s29, 4294966784  ;;  %s5378_s21 = sld [smem:[#allocation14_spill]]  ;;  %s5381_s0 = smov %s4452_s30 }
 0x97a   : > { %s5379_s3 = sld [smem:[#allocation12_spill]] }
 0x97b   : > { %s5380_s20 = sld [smem:[#allocation15_spill]] }
 0x97f   : > { %p34_p5 = scmp.ge.s32.totalorder %s5378_s21, 4  }
 0x980   : > { %s5382_s30 = smov %s5379_s3 }
 0x981   :  { %36 = sbr.rel (!%p34_p5) target bundleno = 13 (0xd), region = 178 }
 0x986   :  { %3334 = vsyncpa [#allocation3], 1 }
 0x987   :  { %3336 = vsyncpa [#allocation3 + $0x1], 1 }
 0x988   :  { %3337 = vsyncpa [#allocation4], 1 }
 0x989   :  { %3339 = vsyncpa [#allocation4 + $0x1], 1 }
 0x98a   :  { %3340 = vsyncpa [#allocation7], 1 }
 0x98b   :  { %3342 = vsyncpa [#allocation7 + $0x1], 1 }

</bundles_post_ra>
